<compile_context>
chip_gen: v7x
topology: tpu7x:2x2x1
jax: 0.10.0
libtpu: 0.0.40
codegen_flags: <defaults>
</compile_context>

<pallas_src>
import functools

import jax
import jax.numpy as jnp
from jax.experimental import pallas as pl
from jax.experimental.pallas import tpu as pltpu


def _round_up(x, m):
    return (x + m - 1) // m * m


def _reflect_pad_into(xp_ref, img, H, W):
    """Write img (H, W, C) into xp_ref with a 1-px reflection halo.

    Halo rows/cols are built directly from the `img` value (no re-read of the
    scratch), so the three stores below carry no RAW dependency on xp_ref.
    """
    body = jnp.concatenate(
        [img[:, 1:2, :], img, img[:, W - 2:W - 1, :]], axis=1)    # (H, W+2, C)
    xp_ref[1:H + 1, 0:W + 2, :] = body
    xp_ref[0:1, 0:W + 2, :] = body[1:2]                  # top    <- row 1
    xp_ref[H + 1:H + 2, 0:W + 2, :] = body[H - 2:H - 1]  # bottom <- row H-2


def _conv3x3_im2col(xp_ref, w_ref, H, W, C):
    """3x3 conv on the padded scratch as ONE (H*W, 9C) x (9C, C) bf16 matmul."""
    taps = [xp_ref[kh:kh + H, kw:kw + W, :]
            for kh in range(3) for kw in range(3)]       # 9 x (H, W, C) bf16
    patch = jnp.concatenate(taps, axis=-1)               # (H, W, 9C)
    patch = patch.reshape(H * W, 9 * C)
    return jnp.dot(patch, w_ref[...], preferred_element_type=jnp.float32)


def _resnet_block_kernel(x_ref, w1_ref, ss1_ref, w2_ref, ss2_ref, o_ref,
                         xp_ref, *, H, W, C):
    x = x_ref[0]                                         # (H, W, C) bf16

    # --- stage 1: reflect-pad -> conv1 -> folded bias+BN -> ReLU ------------
    _reflect_pad_into(xp_ref, x, H, W)
    y = _conv3x3_im2col(xp_ref, w1_ref, H, W, C)         # (H*W, C) f32
    y = y * ss1_ref[0:1, :] + ss1_ref[1:2, :]
    y = jnp.maximum(y, 0.0)
    # Dropout(0.5) is identity in eval mode.

    # --- stage 2: reflect-pad -> conv2 -> folded bias+BN -> + residual ------
    _reflect_pad_into(xp_ref, y.astype(jnp.bfloat16).reshape(H, W, C), H, W)
    z = _conv3x3_im2col(xp_ref, w2_ref, H, W, C)         # (H*W, C) f32
    z = z * ss2_ref[0:1, :] + ss2_ref[1:2, :]

    out = x.astype(jnp.float32).reshape(H * W, C) + z
    o_ref[0] = out.reshape(H, W, C).astype(jnp.bfloat16)


def _fold_bn(bias, gamma, beta, mean, var, eps=1e-5):
    """Fold conv bias + eval-mode BatchNorm into per-channel (scale, shift)."""
    scale = gamma / jnp.sqrt(var + eps)
    shift = (bias - mean) * scale + beta
    return jnp.stack([scale, shift]).astype(jnp.float32)       # (2, C)


def _w_to_im2col(w_oihw):
    """Torch OIHW 3x3 weight -> (9*Cin, Cout) bf16 im2col matmul weight."""
    c_out, c_in = w_oihw.shape[0], w_oihw.shape[1]
    w = jnp.transpose(w_oihw, (2, 3, 1, 0))                    # (kh, kw, Cin, Cout)
    return w.reshape(9 * c_in, c_out).astype(jnp.bfloat16)


def fold_params(params, eps=1e-5):
    """One-time wrapper-side weight layout + BN folding (kept out of the kernel)."""
    return dict(
        w1=_w_to_im2col(params["w1"]),
        ss1=_fold_bn(params["b1"], params["g1"], params["beta1"],
                     params["m1"], params["v1"], eps),
        w2=_w_to_im2col(params["w2"]),
        ss2=_fold_bn(params["b2"], params["g2"], params["beta2"],
                     params["m2"], params["v2"], eps),
    )


def resnet_block_nhwc(x_nhwc, folded):
    """Fused ResnetBlock on NHWC input; returns NHWC bf16.

    Use this entry point when stacking blocks so the NCHW<->NHWC transposes
    happen once per stack rather than once per block.
    """
    N, H, W, C = x_nhwc.shape
    x_bf = x_nhwc.astype(jnp.bfloat16)                   # halve input HBM traffic

    wp = _round_up(W + 2, 16)                            # bf16 sublane tile
    img_spec = pl.BlockSpec((1, H, W, C), lambda n: (n, 0, 0, 0))
    w_spec = pl.BlockSpec((9 * C, C), lambda n: (0, 0))
    ss_spec = pl.BlockSpec((2, C), lambda n: (0, 0))

    # Explicit VMEM budget: double-buffered bf16 in/out blocks, weights,
    # padded scratch, im2col patch + f32 temporaries, with 2x headroom.
    blk = H * W * C
    est = (2 * 2 * blk * 2                       # in + out blocks, double-buffered
           + 2 * 9 * C * C * 2 + 2 * 2 * C * 4   # weights + scale/shift
           + (H + 2) * wp * C * 2                # padded reflection scratch
           + blk * 9 * 2 + 3 * blk * 4)          # im2col patch + f32 temporaries
    vmem_limit = int(min(64 * 2 ** 20, max(16 * 2 ** 20, 2 * est)))

    return pl.pallas_call(
        functools.partial(_resnet_block_kernel, H=H, W=W, C=C),
        out_shape=jax.ShapeDtypeStruct((N, H, W, C), jnp.bfloat16),
        grid=(N,),
        in_specs=[img_spec, w_spec, ss_spec, w_spec, ss_spec],
        out_specs=img_spec,
        scratch_shapes=[pltpu.VMEM((H + 2, wp, C), jnp.bfloat16)],
        compiler_params=pltpu.CompilerParams(
            dimension_semantics=("parallel",),
            vmem_limit_bytes=vmem_limit),
    )(x_bf, folded["w1"], folded["ss1"], folded["w2"], folded["ss2"])


def resnet_block_forward(x_nchw, params, eps=1e-5):
    """Single-block NCHW f32 adapter around the NHWC/bf16 kernel."""
    folded = fold_params(params, eps)
    x = jnp.transpose(x_nchw, (0, 2, 3, 1))              # NCHW -> NHWC
    y = resnet_block_nhwc(x, folded)
    return jnp.transpose(y, (0, 3, 1, 2)).astype(jnp.float32)


def _reference_forward(x_nchw, params, eps=1e-5):
    """Pure-JAX f32 reference of the eval-mode ResnetBlock forward."""
    x = jnp.transpose(x_nchw, (0, 2, 3, 1)).astype(jnp.float32)

    def conv3x3_reflect(x, w_oihw, b):
        xp = jnp.pad(x, ((0, 0), (1, 1), (1, 1), (0, 0)), mode="reflect")
        w = jnp.transpose(w_oihw, (2, 3, 1, 0))  # HWIO
        y = jax.lax.conv_general_dilated(
            xp, w, (1, 1), "VALID",
            dimension_numbers=("NHWC", "HWIO", "NHWC"))
        return y + b.reshape(1, 1, 1, -1)

    def bn(y, g, beta, m, v):
        return (y - m) / jnp.sqrt(v + eps) * g + beta

    y = conv3x3_reflect(x, params["w1"], params["b1"])
    y = bn(y, params["g1"], params["beta1"], params["m1"], params["v1"])
    y = jnp.maximum(y, 0.0)
    y = conv3x3_reflect(y, params["w2"], params["b2"])
    y = bn(y, params["g2"], params["beta2"], params["m2"], params["v2"])
    out = x + y
    return jnp.transpose(out, (0, 3, 1, 2))


def _init_params(key, dim):
    ks = jax.random.split(key, 12)
    return {
        "w1": 0.1 * jax.random.normal(ks[0], (dim, dim, 3, 3), jnp.float32),
        "b1": 0.1 * jax.random.normal(ks[1], (dim,), jnp.float32),
        "g1": jax.random.uniform(ks[2], (dim,), jnp.float32, 0.5, 1.5),
        "beta1": 0.1 * jax.random.normal(ks[3], (dim,), jnp.float32),
        "m1": 0.1 * jax.random.normal(ks[4], (dim,), jnp.float32),
        "v1": jax.random.uniform(ks[5], (dim,), jnp.float32, 0.5, 1.5),
        "w2": 0.1 * jax.random.normal(ks[6], (dim, dim, 3, 3), jnp.float32),
        "b2": 0.1 * jax.random.normal(ks[7], (dim,), jnp.float32),
        "g2": jax.random.uniform(ks[8], (dim,), jnp.float32, 0.5, 1.5),
        "beta2": 0.1 * jax.random.normal(ks[9], (dim,), jnp.float32),
        "m2": 0.1 * jax.random.normal(ks[10], (dim,), jnp.float32),
        "v2": jax.random.uniform(ks[11], (dim,), jnp.float32, 0.5, 1.5),
    }


if __name__ == "__main__":
    key = jax.random.PRNGKey(0)
    k_x, k_p = jax.random.split(key)

    N, C, H, W = 2, 4, 16, 16           # dim = 4 (toy config; see TODOs at top)
    x = jax.random.normal(k_x, (N, C, H, W), jnp.float32)
    params = _init_params(k_p, C)

    out = jax.block_until_ready(resnet_block_forward(x, params))
    ref = jax.block_until_ready(_reference_forward(x, params))

    assert out.shape == (N, C, H, W)
    max_err = jnp.max(jnp.abs(out - ref))
    # bf16 matmul operands / activations / output vs f32 reference -> loosened tol.
    assert jnp.allclose(out, ref, atol=5e-2, rtol=5e-2), f"max abs err {max_err}"

    print("KERNEL_OK")
</pallas_src>

<mosaic_0001>
module attributes {stable_mosaic.version = 11 : i64} {
  func.func @_resnet_block_kernel(%arg0: i32, %arg1: memref<1x16x16x4xbf16, #tpu.memory_space<vmem>>, %arg2: memref<36x4xbf16, #tpu.memory_space<vmem>>, %arg3: memref<2x4xf32, #tpu.memory_space<vmem>>, %arg4: memref<36x4xbf16, #tpu.memory_space<vmem>>, %arg5: memref<2x4xf32, #tpu.memory_space<vmem>>, %arg6: memref<1x16x16x4xbf16, #tpu.memory_space<vmem>>, %arg7: memref<18x32x4xbf16, #tpu.memory_space<vmem>>) attributes {dimension_semantics = [#tpu.dimension_semantics<parallel>], iteration_bounds = array<i64: 2>, scalar_prefetch = 0 : i64, scratch_operands = 1 : i64, tpu.core_type = #tpu.core_type<tc>, window_params = [{transform_indices = @transform_0, window_bounds = array<i64: 1, 16, 16, 4>}, {pipeline_mode = #tpu.pipeline_mode<synchronous>, transform_indices = @transform_1, window_bounds = array<i64: 36, 4>}, {pipeline_mode = #tpu.pipeline_mode<synchronous>, transform_indices = @transform_2, window_bounds = array<i64: 2, 4>}, {pipeline_mode = #tpu.pipeline_mode<synchronous>, transform_indices = @transform_3, window_bounds = array<i64: 36, 4>}, {pipeline_mode = #tpu.pipeline_mode<synchronous>, transform_indices = @transform_4, window_bounds = array<i64: 2, 4>}, {transform_indices = @transform_5, window_bounds = array<i64: 1, 16, 16, 4>}]} {
    %c0 = arith.constant 0 : index
    %c0_0 = arith.constant 0 : index
    %c0_1 = arith.constant 0 : index
    %c0_2 = arith.constant 0 : index
    %0 = vector.load %arg1[%c0, %c0_0, %c0_1, %c0_2] : memref<1x16x16x4xbf16, #tpu.memory_space<vmem>>, vector<1x16x16x4xbf16>
    %1 = vector.shape_cast %0 : vector<1x16x16x4xbf16> to vector<16x16x4xbf16>
    %2 = vector.extract_strided_slice %1 {offsets = [0, 1, 0], sizes = [16, 1, 4], strides = [1, 1, 1]} : vector<16x16x4xbf16> to vector<16x1x4xbf16>
    %3 = vector.extract_strided_slice %1 {offsets = [0, 14, 0], sizes = [16, 1, 4], strides = [1, 1, 1]} : vector<16x16x4xbf16> to vector<16x1x4xbf16>
    %4 = tpu.concatenate %2, %1, %3 in 1 : vector<16x1x4xbf16>, vector<16x16x4xbf16>, vector<16x1x4xbf16> -> vector<16x18x4xbf16>
    %c1 = arith.constant 1 : index
    %c0_3 = arith.constant 0 : index
    %c0_4 = arith.constant 0 : index
    %5 = vector.load %arg7[%c1, %c0_3, %c0_4] : memref<18x32x4xbf16, #tpu.memory_space<vmem>>, vector<16x18x4xbf16>
    tpu.vector_store %arg7[%c1, %c0_3, %c0_4], %4 {strides = array<i32>} : memref<18x32x4xbf16, #tpu.memory_space<vmem>>, vector<16x18x4xbf16>,
    %6 = vector.extract_strided_slice %4 {offsets = [1, 0, 0], sizes = [1, 18, 4], strides = [1, 1, 1]} : vector<16x18x4xbf16> to vector<1x18x4xbf16>
    %c0_5 = arith.constant 0 : index
    %c0_6 = arith.constant 0 : index
    %c0_7 = arith.constant 0 : index
    %7 = vector.load %arg7[%c0_5, %c0_6, %c0_7] : memref<18x32x4xbf16, #tpu.memory_space<vmem>>, vector<1x18x4xbf16>
    tpu.vector_store %arg7[%c0_5, %c0_6, %c0_7], %6 {strides = array<i32>} : memref<18x32x4xbf16, #tpu.memory_space<vmem>>, vector<1x18x4xbf16>,
    %8 = vector.extract_strided_slice %4 {offsets = [14, 0, 0], sizes = [1, 18, 4], strides = [1, 1, 1]} : vector<16x18x4xbf16> to vector<1x18x4xbf16>
    %c17 = arith.constant 17 : index
    %c0_8 = arith.constant 0 : index
    %c0_9 = arith.constant 0 : index
    %9 = vector.load %arg7[%c17, %c0_8, %c0_9] : memref<18x32x4xbf16, #tpu.memory_space<vmem>>, vector<1x18x4xbf16>
    tpu.vector_store %arg7[%c17, %c0_8, %c0_9], %8 {strides = array<i32>} : memref<18x32x4xbf16, #tpu.memory_space<vmem>>, vector<1x18x4xbf16>,
    %c0_10 = arith.constant 0 : index
    %c0_11 = arith.constant 0 : index
    %c0_12 = arith.constant 0 : index
    %10 = vector.load %arg7[%c0_10, %c0_11, %c0_12] : memref<18x32x4xbf16, #tpu.memory_space<vmem>>, vector<16x16x4xbf16>
    %c0_13 = arith.constant 0 : index
    %c1_14 = arith.constant 1 : index
    %c0_15 = arith.constant 0 : index
    %11 = vector.load %arg7[%c0_13, %c1_14, %c0_15] : memref<18x32x4xbf16, #tpu.memory_space<vmem>>, vector<16x16x4xbf16>
    %c0_16 = arith.constant 0 : index
    %c2 = arith.constant 2 : index
    %c0_17 = arith.constant 0 : index
    %12 = vector.load %arg7[%c0_16, %c2, %c0_17] : memref<18x32x4xbf16, #tpu.memory_space<vmem>>, vector<16x16x4xbf16>
    %c1_18 = arith.constant 1 : index
    %c0_19 = arith.constant 0 : index
    %c0_20 = arith.constant 0 : index
    %13 = vector.load %arg7[%c1_18, %c0_19, %c0_20] : memref<18x32x4xbf16, #tpu.memory_space<vmem>>, vector<16x16x4xbf16>
    %c1_21 = arith.constant 1 : index
    %c1_22 = arith.constant 1 : index
    %c0_23 = arith.constant 0 : index
    %14 = vector.load %arg7[%c1_21, %c1_22, %c0_23] : memref<18x32x4xbf16, #tpu.memory_space<vmem>>, vector<16x16x4xbf16>
    %c1_24 = arith.constant 1 : index
    %c2_25 = arith.constant 2 : index
    %c0_26 = arith.constant 0 : index
    %15 = vector.load %arg7[%c1_24, %c2_25, %c0_26] : memref<18x32x4xbf16, #tpu.memory_space<vmem>>, vector<16x16x4xbf16>
    %c2_27 = arith.constant 2 : index
    %c0_28 = arith.constant 0 : index
    %c0_29 = arith.constant 0 : index
    %16 = vector.load %arg7[%c2_27, %c0_28, %c0_29] : memref<18x32x4xbf16, #tpu.memory_space<vmem>>, vector<16x16x4xbf16>
    %c2_30 = arith.constant 2 : index
    %c1_31 = arith.constant 1 : index
    %c0_32 = arith.constant 0 : index
    %17 = vector.load %arg7[%c2_30, %c1_31, %c0_32] : memref<18x32x4xbf16, #tpu.memory_space<vmem>>, vector<16x16x4xbf16>
    %c2_33 = arith.constant 2 : index
    %c2_34 = arith.constant 2 : index
    %c0_35 = arith.constant 0 : index
    %18 = vector.load %arg7[%c2_33, %c2_34, %c0_35] : memref<18x32x4xbf16, #tpu.memory_space<vmem>>, vector<16x16x4xbf16>
    %19 = tpu.concatenate %10, %11, %12, %13, %14, %15, %16, %17, %18 in 2 : vector<16x16x4xbf16>, vector<16x16x4xbf16>, vector<16x16x4xbf16>, vector<16x16x4xbf16>, vector<16x16x4xbf16>, vector<16x16x4xbf16>, vector<16x16x4xbf16>, vector<16x16x4xbf16>, vector<16x16x4xbf16> -> vector<16x16x36xbf16>
    %20 = vector.shape_cast %19 : vector<16x16x36xbf16> to vector<256x36xbf16>
    %c0_36 = arith.constant 0 : index
    %c0_37 = arith.constant 0 : index
    %21 = vector.load %arg2[%c0_36, %c0_37] : memref<36x4xbf16, #tpu.memory_space<vmem>>, vector<36x4xbf16>
    %cst = arith.constant dense<0.000000e+00> : vector<256x4xf32>
    %22 = tpu.matmul %20, %21, %cst {dimension_numbers = #tpu.dot_dimension_numbers<[1], [0], [0], [1], [0, 0, 1, 1], [], []>} : vector<256x36xbf16>, vector<36x4xbf16>, vector<256x4xf32> -> vector<256x4xf32>
    %c0_38 = arith.constant 0 : index
    %c0_39 = arith.constant 0 : index
    %23 = vector.load %arg3[%c0_38, %c0_39] : memref<2x4xf32, #tpu.memory_space<vmem>>, vector<1x4xf32>
    %24 = vector.broadcast %23 : vector<1x4xf32> to vector<256x4xf32>
    %25 = arith.mulf %22, %24 : vector<256x4xf32>
    %c1_40 = arith.constant 1 : index
    %c0_41 = arith.constant 0 : index
    %26 = vector.load %arg3[%c1_40, %c0_41] : memref<2x4xf32, #tpu.memory_space<vmem>>, vector<1x4xf32>
    %27 = vector.broadcast %26 : vector<1x4xf32> to vector<256x4xf32>
    %28 = arith.addf %25, %27 : vector<256x4xf32>
    %cst_42 = arith.constant 0.000000e+00 : f32
    %29 = vector.broadcast %cst_42 : f32 to vector<256x4xf32>
    %30 = arith.maximumf %28, %29 : vector<256x4xf32>
    %31 = arith.truncf %30 : vector<256x4xf32> to vector<256x4xbf16>
    %32 = vector.shape_cast %31 : vector<256x4xbf16> to vector<16x16x4xbf16>
    %33 = vector.extract_strided_slice %32 {offsets = [0, 1, 0], sizes = [16, 1, 4], strides = [1, 1, 1]} : vector<16x16x4xbf16> to vector<16x1x4xbf16>
    %34 = vector.extract_strided_slice %32 {offsets = [0, 14, 0], sizes = [16, 1, 4], strides = [1, 1, 1]} : vector<16x16x4xbf16> to vector<16x1x4xbf16>
    %35 = tpu.concatenate %33, %32, %34 in 1 : vector<16x1x4xbf16>, vector<16x16x4xbf16>, vector<16x1x4xbf16> -> vector<16x18x4xbf16>
    %c1_43 = arith.constant 1 : index
    %c0_44 = arith.constant 0 : index
    %c0_45 = arith.constant 0 : index
    %36 = vector.load %arg7[%c1_43, %c0_44, %c0_45] : memref<18x32x4xbf16, #tpu.memory_space<vmem>>, vector<16x18x4xbf16>
    tpu.vector_store %arg7[%c1_43, %c0_44, %c0_45], %35 {strides = array<i32>} : memref<18x32x4xbf16, #tpu.memory_space<vmem>>, vector<16x18x4xbf16>,
    %37 = vector.extract_strided_slice %35 {offsets = [1, 0, 0], sizes = [1, 18, 4], strides = [1, 1, 1]} : vector<16x18x4xbf16> to vector<1x18x4xbf16>
    %c0_46 = arith.constant 0 : index
    %c0_47 = arith.constant 0 : index
    %c0_48 = arith.constant 0 : index
    %38 = vector.load %arg7[%c0_46, %c0_47, %c0_48] : memref<18x32x4xbf16, #tpu.memory_space<vmem>>, vector<1x18x4xbf16>
    tpu.vector_store %arg7[%c0_46, %c0_47, %c0_48], %37 {strides = array<i32>} : memref<18x32x4xbf16, #tpu.memory_space<vmem>>, vector<1x18x4xbf16>,
    %39 = vector.extract_strided_slice %35 {offsets = [14, 0, 0], sizes = [1, 18, 4], strides = [1, 1, 1]} : vector<16x18x4xbf16> to vector<1x18x4xbf16>
    %c17_49 = arith.constant 17 : index
    %c0_50 = arith.constant 0 : index
    %c0_51 = arith.constant 0 : index
    %40 = vector.load %arg7[%c17_49, %c0_50, %c0_51] : memref<18x32x4xbf16, #tpu.memory_space<vmem>>, vector<1x18x4xbf16>
    tpu.vector_store %arg7[%c17_49, %c0_50, %c0_51], %39 {strides = array<i32>} : memref<18x32x4xbf16, #tpu.memory_space<vmem>>, vector<1x18x4xbf16>,
    %c0_52 = arith.constant 0 : index
    %c0_53 = arith.constant 0 : index
    %c0_54 = arith.constant 0 : index
    %41 = vector.load %arg7[%c0_52, %c0_53, %c0_54] : memref<18x32x4xbf16, #tpu.memory_space<vmem>>, vector<16x16x4xbf16>
    %c0_55 = arith.constant 0 : index
    %c1_56 = arith.constant 1 : index
    %c0_57 = arith.constant 0 : index
    %42 = vector.load %arg7[%c0_55, %c1_56, %c0_57] : memref<18x32x4xbf16, #tpu.memory_space<vmem>>, vector<16x16x4xbf16>
    %c0_58 = arith.constant 0 : index
    %c2_59 = arith.constant 2 : index
    %c0_60 = arith.constant 0 : index
    %43 = vector.load %arg7[%c0_58, %c2_59, %c0_60] : memref<18x32x4xbf16, #tpu.memory_space<vmem>>, vector<16x16x4xbf16>
    %c1_61 = arith.constant 1 : index
    %c0_62 = arith.constant 0 : index
    %c0_63 = arith.constant 0 : index
    %44 = vector.load %arg7[%c1_61, %c0_62, %c0_63] : memref<18x32x4xbf16, #tpu.memory_space<vmem>>, vector<16x16x4xbf16>
    %c1_64 = arith.constant 1 : index
    %c1_65 = arith.constant 1 : index
    %c0_66 = arith.constant 0 : index
    %45 = vector.load %arg7[%c1_64, %c1_65, %c0_66] : memref<18x32x4xbf16, #tpu.memory_space<vmem>>, vector<16x16x4xbf16>
    %c1_67 = arith.constant 1 : index
    %c2_68 = arith.constant 2 : index
    %c0_69 = arith.constant 0 : index
    %46 = vector.load %arg7[%c1_67, %c2_68, %c0_69] : memref<18x32x4xbf16, #tpu.memory_space<vmem>>, vector<16x16x4xbf16>
    %c2_70 = arith.constant 2 : index
    %c0_71 = arith.constant 0 : index
    %c0_72 = arith.constant 0 : index
    %47 = vector.load %arg7[%c2_70, %c0_71, %c0_72] : memref<18x32x4xbf16, #tpu.memory_space<vmem>>, vector<16x16x4xbf16>
    %c2_73 = arith.constant 2 : index
    %c1_74 = arith.constant 1 : index
    %c0_75 = arith.constant 0 : index
    %48 = vector.load %arg7[%c2_73, %c1_74, %c0_75] : memref<18x32x4xbf16, #tpu.memory_space<vmem>>, vector<16x16x4xbf16>
    %c2_76 = arith.constant 2 : index
    %c2_77 = arith.constant 2 : index
    %c0_78 = arith.constant 0 : index
    %49 = vector.load %arg7[%c2_76, %c2_77, %c0_78] : memref<18x32x4xbf16, #tpu.memory_space<vmem>>, vector<16x16x4xbf16>
    %50 = tpu.concatenate %41, %42, %43, %44, %45, %46, %47, %48, %49 in 2 : vector<16x16x4xbf16>, vector<16x16x4xbf16>, vector<16x16x4xbf16>, vector<16x16x4xbf16>, vector<16x16x4xbf16>, vector<16x16x4xbf16>, vector<16x16x4xbf16>, vector<16x16x4xbf16>, vector<16x16x4xbf16> -> vector<16x16x36xbf16>
    %51 = vector.shape_cast %50 : vector<16x16x36xbf16> to vector<256x36xbf16>
    %c0_79 = arith.constant 0 : index
    %c0_80 = arith.constant 0 : index
    %52 = vector.load %arg4[%c0_79, %c0_80] : memref<36x4xbf16, #tpu.memory_space<vmem>>, vector<36x4xbf16>
    %cst_81 = arith.constant dense<0.000000e+00> : vector<256x4xf32>
    %53 = tpu.matmul %51, %52, %cst_81 {dimension_numbers = #tpu.dot_dimension_numbers<[1], [0], [0], [1], [0, 0, 1, 1], [], []>} : vector<256x36xbf16>, vector<36x4xbf16>, vector<256x4xf32> -> vector<256x4xf32>
    %c0_82 = arith.constant 0 : index
    %c0_83 = arith.constant 0 : index
    %54 = vector.load %arg5[%c0_82, %c0_83] : memref<2x4xf32, #tpu.memory_space<vmem>>, vector<1x4xf32>
    %55 = vector.broadcast %54 : vector<1x4xf32> to vector<256x4xf32>
    %56 = arith.mulf %53, %55 : vector<256x4xf32>
    %c1_84 = arith.constant 1 : index
    %c0_85 = arith.constant 0 : index
    %57 = vector.load %arg5[%c1_84, %c0_85] : memref<2x4xf32, #tpu.memory_space<vmem>>, vector<1x4xf32>
    %58 = vector.broadcast %57 : vector<1x4xf32> to vector<256x4xf32>
    %59 = arith.addf %56, %58 : vector<256x4xf32>
    %60 = arith.extf %1 : vector<16x16x4xbf16> to vector<16x16x4xf32>
    %61 = vector.shape_cast %60 : vector<16x16x4xf32> to vector<256x4xf32>
    %62 = arith.addf %61, %59 : vector<256x4xf32>
    %63 = vector.shape_cast %62 : vector<256x4xf32> to vector<16x16x4xf32>
    %64 = arith.truncf %63 : vector<16x16x4xf32> to vector<16x16x4xbf16>
    %c0_86 = arith.constant 0 : index
    %c0_87 = arith.constant 0 : index
    %c0_88 = arith.constant 0 : index
    %c0_89 = arith.constant 0 : index
    %65 = vector.load %arg6[%c0_86, %c0_87, %c0_88, %c0_89] : memref<1x16x16x4xbf16, #tpu.memory_space<vmem>>, vector<1x16x16x4xbf16>
    %66 = vector.shape_cast %65 : vector<1x16x16x4xbf16> to vector<16x16x4xbf16>
    %67 = vector.shape_cast %64 : vector<16x16x4xbf16> to vector<1x16x16x4xbf16>
    tpu.vector_store %arg6[%c0_86, %c0_87, %c0_88, %c0_89], %67 {strides = array<i32>} : memref<1x16x16x4xbf16, #tpu.memory_space<vmem>>, vector<1x16x16x4xbf16>,
    return
  }
  func.func @transform_0(%arg0: i32) -> (i32, i32, i32, i32) {
    %c0_i32 = arith.constant 0 : i32
    %c0_i32_0 = arith.constant 0 : i32
    %c0_i32_1 = arith.constant 0 : i32
    %c0_i32_2 = arith.constant 0 : i32
    return %arg0, %c0_i32, %c0_i32_0, %c0_i32_1 : i32, i32, i32, i32
  }
  func.func @transform_1(%arg0: i32) -> (i32, i32) {
    %c0_i32 = arith.constant 0 : i32
    %c0_i32_0 = arith.constant 0 : i32
    %c0_i32_1 = arith.constant 0 : i32
    return %c0_i32, %c0_i32_0 : i32, i32
  }
  func.func @transform_2(%arg0: i32) -> (i32, i32) {
    %c0_i32 = arith.constant 0 : i32
    %c0_i32_0 = arith.constant 0 : i32
    %c0_i32_1 = arith.constant 0 : i32
    return %c0_i32, %c0_i32_0 : i32, i32
  }
  func.func @transform_3(%arg0: i32) -> (i32, i32) {
    %c0_i32 = arith.constant 0 : i32
    %c0_i32_0 = arith.constant 0 : i32
    %c0_i32_1 = arith.constant 0 : i32
    return %c0_i32, %c0_i32_0 : i32, i32
  }
  func.func @transform_4(%arg0: i32) -> (i32, i32) {
    %c0_i32 = arith.constant 0 : i32
    %c0_i32_0 = arith.constant 0 : i32
    %c0_i32_1 = arith.constant 0 : i32
    return %c0_i32, %c0_i32_0 : i32, i32
  }
  func.func @transform_5(%arg0: i32) -> (i32, i32, i32, i32) {
    %c0_i32 = arith.constant 0 : i32
    %c0_i32_0 = arith.constant 0 : i32
    %c0_i32_1 = arith.constant 0 : i32
    %c0_i32_2 = arith.constant 0 : i32
    return %arg0, %c0_i32, %c0_i32_0, %c0_i32_1 : i32, i32, i32, i32
  }
}

</mosaic_0001>

<bundles_post_ra>
// kernel: tpu_custom_call.1
= control target key start
LH: loop header
LB: loop body
LE: loop exit
PB: predicated region body
PF: predicated region fallthrough
CT: control target
= control target key end

     0   :  { %s5358_s18 = smov 0   ;;  %s7288_s0 = inlined_call_operand.vmem [shape: bf16[2,16,16,4], index: 0, kind: input, shape index: {}]   ;;  %s7289_s1 = inlined_call_operand.vmem [shape: bf16[36,4], index: 1, kind: input, shape index: {}]   ;;  %s7290_s2 = inlined_call_operand.vmem [shape: f32[2,4], index: 2, kind: input, shape index: {}]   ;;  %s7291_s3 = inlined_call_operand.vmem [shape: bf16[36,4], index: 3, kind: input, shape index: {}]   ;;  %s7292_s4 = inlined_call_operand.vmem [shape: f32[2,4], index: 4, kind: input, shape index: {}]   ;;  %s7293_s5 = inlined_call_operand.vmem [shape: bf16[2,16,16,4], index: 5, kind: output, shape index: {}]  }
   0x1 LB: > { %s4921_s19 = sadd.s32 4294967295, %s5318_s18   ;;  %p4925_p0 = scmp.ge.s32.totalorder %s5318_s18, 1  ;;  %s5318_s18 = sphi %s5358_s18, %s15_s18  }
   0x2   : > { %p187_p1 = scmp.lt.s32.totalorder %s5318_s18, 3 }
   0x4   : > { %p188_p2 = pnand %p4925_p0, %p187_p1 }
   0x5   : > { %p215_p3 = scmp.lt.s32.totalorder (!%p188_p2), %s4921_s19, 1  ;;  %vm659_vm0 = vsmask.f32 (!%p188_p2), 256  ;;  %vm658_vm1 = vcmask (!%p188_p2), 1040384   ;;  %vm694_vm2 = vcmask (!%p188_p2), 31744   ;;  %vm696_vm3 = vcmask (!%p188_p2), 24576  }
   0x6   : > { %191 = sbr.rel (%p188_p2) target bundleno = 1028 (0x404), region = 40  ;;  %vm5386_vm4 = vmand (!%p188_p2), %vm658_vm1, %vm659_vm0  ;;  %s5320_s24 = smov (!%p188_p2), 12   ;;  %vm1135_vm5 = vcmask (!%p188_p2), 1046528   ;;  %vm878_vm6 = vsmask.f32 (!%p188_p2), 7424  ;;  %vm2300_vm7 = vcmask (!%p188_p2), 1041408  }
   0x7   : > { %s5321_s25 = smov (!%p188_p2), 24   ;;  %s5322_s26 = smov (!%p188_p2), 8   ;;  %vm2016_vm8 = vcmask (!%p188_p2), 64512   ;;  %vm2049_vm9 = vcmask (!%p188_p2), 97280   ;;  %vm2082_vm10 = vcmask (!%p188_p2), 130048   ;;  %vm2115_vm11 = vcmask (!%p188_p2), 162816  }
   0x8   : > { %s5323_s29 = smov (!%p188_p2), 20   ;;  %s5324_s7 = smov (!%p188_p2), 32   ;;  %vm2148_vm12 = vcmask (!%p188_p2), 195584   ;;  %vm2214_vm13 = vcmask (!%p188_p2), 261120   ;;  %vm2181_vm14 = vcmask (!%p188_p2), 228352   ;;  %vm2267_vm15 = vcmask (!%p188_p2), 293888  }
   0x9   : > { %s5325_s8 = smov (!%p188_p2), 4   ;;  %s5326_s9 = smov (!%p188_p2), 16   ;;  %vm4833_vm0 = vcmask (!%p188_p2), 27648  }
   0xa   : > { %s5327_s10 = smov (!%p188_p2), 28  }
   0xd   : > { %s7297_s19 = smov (!%p215_p3, %s4921_s19), 1 }
   0xe   : > { %s5054_s20 = sshll.u32 %s7297_s19, 7 }
   0xf   : > { %s5374_s23 = scalar_lea.vmem %s7288_s0, %s5054_s20 }
  0x10   : > { %v228_v0 = vld [vmem:[%s5374_s23 + $0x8] sm:$0xf]  ;;  %v229_v1 = vld [vmem:[%s5374_s23 + $0xc] sm:$0xf]  ;;  %v226_v2 = vld [vmem:[%s5374_s23] sm:$0xf] }
  0x11   : > { %v4931_v3 = vcombine.low %v228_v0, %v228_v0  ;;  %v4947_v4 = vcombine.low %v228_v0, %v229_v1  ;;  %v227_v5 = vld [vmem:[%s5374_s23 + $0x4] sm:$0xf]  ;;  %v4930_v6 = vcombine.low %v226_v2, %v226_v2  ;;  %v230_v7 = vld [vmem:[%s5374_s23 + $0x10] sm:$0xf]  ;;  %v231_v8 = vld [vmem:[%s5374_s23 + $0x14] sm:$0xf]  ;;  %v4963_v9 = vcombine.low %v229_v1, %v229_v1 }
  0x12   : > { %v4946_v10 = vcombine.low %v226_v2, %v227_v5  ;;  %v4932_v11 = vcombine.low %v230_v7, %v230_v7  ;;  %v4948_v12 = vcombine.low %v230_v7, %v231_v8  ;;  %v4962_v13 = vcombine.low %v227_v5, %v227_v5  ;;  %v232_v18 = vld [vmem:[%s5374_s23 + $0x18] sm:$0xf]  ;;  %v233_v23 = vld [vmem:[%s5374_s23 + $0x1c] sm:$0xf]  ;;  %v234_v40 = vld [vmem:[%s5374_s23 + $0x20] sm:$0xf] }
  0x13   : > { %v310_v14 = vshrl.u32 %v4931_v3, 16  ;;  %v426_v15 = vshrl.u32 %v4947_v4, 16  ;;  %v429_v16 = vshll.u32 %v4947_v4, 16  ;;  %v307_v17 = vshrl.u32 %v4930_v6, 16  ;;  %v235_v41 = vld [vmem:[%s5374_s23 + $0x24] sm:$0xf] }
  0x14   : > { %v419_v19 = vshrl.u32 %v4946_v10, 16  ;;  %v422_v20 = vshll.u32 %v4946_v10, 16  ;;  %v313_v21 = vshrl.u32 %v4932_v11, 16  ;;  %v433_v22 = vshrl.u32 %v4948_v12, 16 }
  0x15   : > { %v428_v24 = vrot.slane %v426_v15, 7  ;;  %v436_v25 = vshll.u32 %v4948_v12, 16  ;;  %v583_v26 = vshll.u32 %v4963_v9, 16  ;;  %v579_v27 = vshll.u32 %v4962_v13, 16 }
  0x16   : > { %v421_v29 = vrot.slane %v419_v19, 7  ;;  %v435_v30 = vrot.slane %v433_v22, 7  ;;  %v4964_v31 = vcombine.low %v231_v8, %v231_v8  ;;  %v4933_v32 = vcombine.low %v232_v18, %v232_v18 }
  0x17   : > { %v431_v33 = vor.u32 %v429_v16, %v428_v24  ;;  %v585_v34 = vrot.slane %v583_v26, 3  ;;  %v581_v35 = vrot.slane %v579_v27, 3  ;;  %v4949_v36 = vcombine.low %v232_v18, %v233_v23 }
  0x18   : > { %v424_v37 = vor.u32 %v422_v20, %v421_v29  ;;  %v438_v38 = vor.u32 %v436_v25, %v435_v30  ;;  %v587_v39 = vshll.u32 %v4964_v31, 16  ;;  %v316_v50 = vshrl.u32 %v4933_v32, 16 }
  0x19   : > { %v662_v42 = vsel %vm5386_vm4, %v310_v14, %v431_v33  ;;  %v678_v43 = vsel %vm5386_vm4, %v428_v24, %v585_v34  ;;  %v677_v44 = vsel %vm5386_vm4, %v421_v29, %v581_v35  ;;  %v440_v45 = vshrl.u32 %v4949_v36, 16 }
  0x1a   : > { %698 = vst.msk [vmem:[#allocation2 + $0x20] sm:$0xff] %vm694_vm2, %v662_v42  ;;  %728 = vst.msk [vmem:[#allocation2] sm:$0xff] %vm694_vm2, %v662_v42  ;;  %v661_v46 = vsel %vm5386_vm4, %v307_v17, %v424_v37  ;;  %v663_v47 = vsel %vm5386_vm4, %v313_v21, %v438_v38  ;;  %v589_v48 = vrot.slane %v587_v39, 3  ;;  %v443_v49 = vshll.u32 %v4949_v36, 16  ;;  %v5451_v39 = vld [vmem:[%s5374_s23 + $0x28] sm:$0xf] }
  0x1b   : > { %729 = vst.msk [vmem:[#allocation2 + $0x8] sm:$0x1] %vm696_vm3, %v678_v43  ;;  %699 = vst.msk [vmem:[#allocation2 + $0x28] sm:$0x1] %vm696_vm3, %v678_v43  ;;  %v442_v51 = vrot.slane %v440_v45, 7  ;;  %v4965_v52 = vcombine.low %v233_v23, %v233_v23  ;;  %v4950_v53 = vcombine.low %v234_v40, %v235_v41  ;;  %v4934_v55 = vcombine.low %v234_v40, %v234_v40  ;;  %v5238_v45 = vld [vmem:[%s7289_s1] sm:$0xff]  }
  0x1c   : > { %697 = vst.msk [vmem:[#allocation2 + $0x18] sm:$0x1] %vm696_vm3, %v677_v44  ;;  %v679_v54 = vsel %vm5386_vm4, %v435_v30, %v589_v48  ;;  %v4966_v56 = vcombine.low %v235_v41, %v235_v41  ;;  %v5454_v40 = vld [vmem:[%s5374_s23 + $0x2c] sm:$0xf]  ;;  %5126 = vmatprep.subr.bf16.mxu0 %v5238_v45 }
  0x1d   : > { %695 = vst.msk [vmem:[#allocation2 + $0x10] sm:$0xff] %vm694_vm2, %v661_v46  ;;  %700 = vst.msk [vmem:[#allocation2 + $0x30] sm:$0xff] %vm694_vm2, %v663_v47  ;;  %v445_v57 = vor.u32 %v443_v49, %v442_v51  ;;  %v591_v58 = vshll.u32 %v4965_v52, 16  ;;  %v447_v59 = vshrl.u32 %v4950_v53, 16  ;;  %v450_v60 = vshll.u32 %v4950_v53, 16  ;;  %5127 = vmatpush3.bf16.msra.mxu0 %v5238_v45 }
  0x1e   : > { %701 = vst.msk [vmem:[#allocation2 + $0x38] sm:$0x1] %vm696_vm3, %v679_v54  ;;  %v595_v61 = vshll.u32 %v4966_v56, 16  ;;  %v319_v1 = vshrl.u32 %v4934_v55, 16  ;;  %v4951_v55 = vcombine.low %v5451_v39, %v5454_v40  ;;  %v5241_v56 = vld [vmem:[%s7289_s1 + $0x8] sm:$0xff]  }
  0x1f   : > { %v664_v62 = vsel %vm5386_vm4, %v316_v50, %v445_v57  ;;  %v593_v63 = vrot.slane %v591_v58, 3  ;;  %v449_v0 = vrot.slane %v447_v59, 7  ;;  %5128 = vmatprep.subr.bf16.mxu0 %v5241_v56 }
  0x20   : > { %702 = vst.msk [vmem:[#allocation2 + $0x40] sm:$0xff] %vm694_vm2, %v664_v62  ;;  %v597_v10 = vrot.slane %v595_v61, 3 }
  0x21   : > { %v5415_v2 = vld [vmem:[#allocation2 + $0x20] sm:$0xff]  ;;  %v680_v5 = vsel %vm5386_vm4, %v442_v51, %v593_v63  ;;  %v452_v6 = vor.u32 %v450_v60, %v449_v0  ;;  %5129 = vmatpush3.bf16.msra.mxu0 %v5241_v56 }
  0x22   : > { %v749_v3 = vld [vmem:[#allocation2 + $0x8] sm:$0x1]  ;;  %v765_v4 = vld [vmem:[#allocation2] sm:$0xfe]  ;;  %1234 = vrot.lane.b32.xlu1 %v5415_v2, %s5320_s24  ;;  %703 = vst.msk [vmem:[#allocation2 + $0x48] sm:$0x1] %vm696_vm3, %v680_v5  ;;  %v681_v26 = vsel %vm5386_vm4, %v449_v0, %v597_v10 }
  0x23   : > { %v1136_v8 = vrot.slane %v765_v4, 1  ;;  %v1137_v9 = vrot.slane %v749_v3, 1  ;;  %v5428_v12 = vld [vmem:[#allocation2 + $0x18] sm:$0x1]  ;;  %v5431_v15 = vld [vmem:[#allocation2 + $0x28] sm:$0x1]  ;;  %v665_v16 = vsel %vm5386_vm4, %v319_v1, %v452_v6 }
  0x24   : > { %v5421_v7 = vld [vmem:[#allocation2 + $0x10] sm:$0xff]  ;;  %v1521_v14 = vrot.slane %v5428_v12, 1  ;;  %v1279_v17 = vshll.u32 %v5415_v2, 16  ;;  %v862_v20 = vld [vmem:[#allocation2 + $0x20] sm:$0xfe]  ;;  %704 = vst.msk [vmem:[#allocation2 + $0x50] sm:$0xff] %vm694_vm2, %v665_v16 }
  0x25   : > { %1232 = vrot.lane.b32.xlu0 %v5421_v7, %s5320_s24  ;;  %v5426_v11 = vld [vmem:[#allocation2 + $0x30] sm:$0xff]  ;;  %v1267_v18 = vshll.u32 %v5421_v7, 16  ;;  %v1138_v21 = vsel %vm1135_vm5, %v1136_v8, %v1137_v9  ;;  %v1905_v22 = vrot.slane %v5431_v15, 1  ;;  %v750_v23 = vld [vmem:[#allocation2 + $0x18] sm:$0x1]  ;;  %v733_v25 = vld [vmem:[#allocation2] sm:$0xff] }
  0x26   : > { %v813_v13 = vld [vmem:[#allocation2 + $0x10] sm:$0xfe]  ;;  %1618 = vrot.lane.b32.xlu1 %v5426_v11, %s5321_s25  ;;  %v1904_v27 = vrot.slane %v862_v20, 1  ;;  %v1140_v30 = vrot.slane %v750_v23, 1  ;;  %v880_v31 = vshrl.u32 %v733_v25, 16  ;;  %v882_v33 = vshll.u32 %v733_v25, 16 }
  0x27   : > { %v1520_v19 = vrot.slane %v813_v13, 1  ;;  %v766_v24 = vld [vmem:[#allocation2 + $0x10] sm:$0xfe]  ;;  %705 = vst.msk [vmem:[#allocation2 + $0x58] sm:$0x1] %vm696_vm3, %v681_v26  ;;  %v887_v34 = vshll.u32 %v749_v3, 16 }
  0x28   : > { %v1139_v29 = vrot.slane %v766_v24, 1  ;;  %v798_v35 = vld [vmem:[#allocation2 + $0x28] sm:$0x1]  ;;  %v814_v36 = vld [vmem:[#allocation2 + $0x20] sm:$0xfe]  ;;  %v1277_v37 = vshrl.u32 %v5415_v2, 16  ;;  %v1906_v50 = vsel %vm1135_vm5, %v1904_v27, %v1905_v22  ;;  %v4967_v27 = vcombine.low %v5454_v40, %v5454_v40 }
  0x29   : > { %1616 = vrot.lane.b32.xlu0 %v5415_v2, %s5321_s25  ;;  %v1522_v32 = vsel %vm1135_vm5, %v1520_v19, %v1521_v14  ;;  %v1265_v38 = vshrl.u32 %v5421_v7, 16  ;;  %v1281_v41 = vrot.slane %v1279_v17, 1  ;;  %v1269_v42 = vrot.slane %v1267_v18, 1  ;;  %v5464_v54 = vld [vmem:[#allocation2 + $0x38] sm:$0x1] }
  0x2a   : > { %v1663_v43 = vshll.u32 %v5426_v11, 16  ;;  %1184 = vrot.lane.b32.xlu1 %v1138_v21, %s5322_s26  ;;  %v884_v44 = vrot.slane %v882_v33, 1  ;;  %v1141_v46 = vsel %vm1135_vm5, %v1139_v29, %v1140_v30  ;;  %v1523_v47 = vrot.slane %v814_v36, 1  ;;  %v5478_v3 = vld [vmem:[#allocation2 + $0x28] sm:$0x1] }
  0x2b   : > { %v1524_v48 = vrot.slane %v798_v35, 1  ;;  %v1284_v49 = vshll.u32 %v798_v35, 16  ;;  %v889_v52 = vrot.slane %v887_v34, 1  ;;  %v899_v53 = vshll.u32 %v750_v23, 16  ;;  %v5486_v9 = vld [vmem:[#allocation2 + $0x38] sm:$0x1] }
  0x2c   : > { %v885_v51 = vor.u32 %v884_v44, %v880_v31  ;;  %v1661_v57 = vshrl.u32 %v5426_v11, 16  ;;  %v1665_v58 = vrot.slane %v1663_v43, 1  ;;  %v1282_v60 = vor.u32 %v1281_v41, %v1277_v37  ;;  %v863_v21 = vld [vmem:[#allocation2 + $0x30] sm:$0xfe]  ;;  %v767_v34 = vld [vmem:[#allocation2 + $0x20] sm:$0xfe] }
  0x2d   : > { %1568 = vrot.lane.b32.xlu0 %v1522_v32, %s5323_s29  ;;  %v1525_v59 = vsel %vm1135_vm5, %v1523_v47, %v1524_v48  ;;  %v1286_v61 = vrot.slane %v1284_v49, 1  ;;  %v1668_v62 = vshll.u32 %v5464_v54, 16  ;;  %v897_v0 = vor.u32 %v1269_v42, %v1265_v38  ;;  %v238_v23 = vld [vmem:[%s5374_s23 + $0x30] sm:$0xf]  ;;  %v239_v24 = vld [vmem:[%s5374_s23 + $0x34] sm:$0xf] }
  0x2e   : > { %1186 = vrot.lane.b32.xlu1 %v1141_v46, %s5322_s26  ;;  %v890_v63 = vsel %vm878_vm6, %v885_v51, %v889_v52  ;;  %v901_v1 = vrot.slane %v899_v53, 1  ;;  %v1272_v2 = vshll.u32 %v5428_v12, 16  ;;  %v454_v4 = vshrl.u32 %v4951_v55, 16  ;;  %v768_v32 = vld [vmem:[#allocation2 + $0x30] sm:$0xfe]  ;;  %v5507_v37 = vld [vmem:[#allocation2 + $0x40] sm:$0xff] }
  0x2f   : > { %v1287_v5 = vsel %vm878_vm6, %v1282_v60, %v1286_v61  ;;  %v5483_v6 = vor.u32 %v1665_v58, %v1661_v57  ;;  %v1670_v7 = vrot.slane %v1668_v62, 1  ;;  %v911_v8 = vshll.u32 %v5478_v3, 16  ;;  %v240_v47 = vld [vmem:[%s5374_s23 + $0x38] sm:$0xf]  ;;  %v241_v48 = vld [vmem:[%s5374_s23 + $0x3c] sm:$0xf] }
  0x30   : > { %v902_v10 = vsel %vm878_vm6, %v897_v0, %v901_v1  ;;  %v1274_v12 = vrot.slane %v1272_v2, 1  ;;  %v1656_v13 = vshll.u32 %v5431_v15, 16  ;;  %v4935_v14 = vcombine.low %v5451_v39, %v5451_v39  ;;  %v5522_v51 = vld [vmem:[#allocation2 + $0x48] sm:$0x1]  ;;  %v5525_v58 = vld [vmem:[#allocation2 + $0x38] sm:$0x1] }
  0x31   : > { %1952 = vrot.lane.b32.xlu0 %v1906_v50, %s5324_s7  ;;  %v456_v16 = vrot.slane %v454_v4, 7  ;;  %v457_v17 = vshll.u32 %v4951_v55, 16  ;;  %v923_v18 = vshll.u32 %v5486_v9, 16  ;;  %v1671_v19 = vsel %vm878_vm6, %v5483_v6, %v1670_v7 }
  0x32   : > { %1570 = vrot.lane.b32.xlu1 %v1525_v59, %s5323_s29  ;;  %v913_v20 = vrot.slane %v911_v8, 1  ;;  %v1275_v22 = vsel %vm878_vm6, %v897_v0, %v1274_v12  ;;  %v1658_v15 = vrot.slane %v1656_v13, 1  ;;  %v322_v25 = vshrl.u32 %v4935_v14, 16 }
  0x33   : > { %v459_v26 = vor.u32 %v457_v17, %v456_v16  ;;  %v925_v29 = vrot.slane %v923_v18, 1  ;;  %v1907_v30 = vrot.slane %v863_v21, 1  ;;  %v1908_v31 = vrot.slane %v5464_v54, 1 }
  0x34   : > { %v914_v33 = vsel %vm878_vm6, %v1282_v60, %v913_v20  ;;  %v4952_v35 = vcombine.low %v238_v23, %v239_v24  ;;  %v1659_v36 = vsel %vm878_vm6, %v1282_v60, %v1658_v15  ;;  %v4936_v38 = vcombine.low %v238_v23, %v238_v23 }
  0x35   : > { %1071 = vrot.lane.b32.xlu0 %v890_v63, %s5325_s8  ;;  %v4968_v39 = vcombine.low %v239_v24, %v239_v24  ;;  %v1145_v40 = vrot.slane %v768_v32, 1  ;;  %v666_v41 = vsel %vm5386_vm4, %v322_v25, %v459_v26  ;;  %v599_v42 = vshll.u32 %v4967_v27, 16  ;;  %v816_v24 = vld [vmem:[#allocation2 + $0x40] sm:$0xfe]  ;;  %v5548_v25 = vld [vmem:[#allocation2 + $0x50] sm:$0xff] }
  0x36   : > { %1458 = vrot.lane.b32.xlu1 %v1287_v5, %s5326_s9  ;;  %v926_v43 = vsel %vm878_vm6, %v5483_v6, %v925_v29  ;;  %v1909_v44 = vsel %vm1135_vm5, %v1907_v30, %v1908_v31  ;;  %v1146_v45 = vrot.slane %v5486_v9, 1  ;;  %v1142_v46 = vrot.slane %v767_v34, 1  ;;  %706 = vst.msk [vmem:[#allocation2 + $0x60] sm:$0xff] %vm694_vm2, %v666_v41  ;;  %v243_v9 = vld [vmem:[%s5374_s23 + $0x44] sm:$0xf] }
  0x37   : > { %v1143_v49 = vrot.slane %v5478_v3, 1  ;;  %v1303_v50 = vshll.u32 %v5507_v37, 16  ;;  %v601_v52 = vrot.slane %v599_v42, 3  ;;  %v461_v53 = vshrl.u32 %v4952_v35, 16  ;;  %v242_v3 = vld [vmem:[%s5374_s23 + $0x40] sm:$0xf] }
  0x38   : > { %v1301_v54 = vshrl.u32 %v5507_v37, 16  ;;  %v325_v55 = vshrl.u32 %v4936_v38, 16  ;;  %v464_v56 = vshll.u32 %v4952_v35, 16  ;;  %v603_v57 = vshll.u32 %v4968_v39, 16  ;;  %v815_v26 = vld [vmem:[#allocation2 + $0x30] sm:$0xfe] }
  0x39   : > { %1073 = vrot.lane.b32.xlu0 %v902_v10, %s5325_s8  ;;  %v682_v59 = vsel %vm5386_vm4, %v456_v16, %v601_v52  ;;  %v463_v60 = vrot.slane %v461_v53, 7  ;;  %v4937_v61 = vcombine.low %v240_v47, %v240_v47  ;;  %v4953_v62 = vcombine.low %v240_v47, %v241_v48  ;;  %v5567_v39 = vld [vmem:[#allocation2 + $0x58] sm:$0x1] }
  0x3a   : > { %1842 = vrot.lane.b32.xlu1 %v1671_v19, %s5327_s10  ;;  %v1147_v63 = vsel %vm1135_vm5, %v1145_v40, %v1146_v45  ;;  %v1308_v0 = vshll.u32 %v5522_v51, 16  ;;  %707 = vst.msk [vmem:[#allocation2 + $0x68] sm:$0x1] %vm696_vm3, %v682_v59  ;;  %v605_v1 = vrot.slane %v603_v57, 3  ;;  %v4969_v2 = vcombine.low %v241_v48, %v241_v48  ;;  %v848_v40 = vld [vmem:[#allocation2 + $0x48] sm:$0x1] }
  0x3b   : > { %v1305_v4 = vrot.slane %v1303_v50, 1  ;;  %v466_v5 = vor.u32 %v464_v56, %v463_v60  ;;  %v468_v7 = vshrl.u32 %v4953_v62, 16  ;;  %v471_v8 = vshll.u32 %v4953_v62, 16  ;;  %v244_v56 = vld [vmem:[%s5374_s23 + $0x48] sm:$0xf] }
  0x3c   : > { %v1144_v10 = vsel %vm1135_vm5, %v1142_v46, %v1143_v49  ;;  %v1296_v12 = vshll.u32 %v5525_v58, 16  ;;  %v683_v13 = vsel %vm5386_vm4, %v463_v60, %v605_v1  ;;  %v607_v14 = vshll.u32 %v4969_v2, 16  ;;  %v5575_v49 = vld [vmem:[#allocation2 + $0x48] sm:$0x1]  ;;  %v245_v57 = vld [vmem:[%s5374_s23 + $0x4c] sm:$0xf] }
  0x3d   : > { %1456 = vrot.lane.b32.xlu0 %v1275_v22, %s5326_s9  ;;  %v667_v16 = vsel %vm5386_vm4, %v325_v55, %v466_v5  ;;  %709 = vst.msk [vmem:[#allocation2 + $0x78] sm:$0x1] %vm696_vm3, %v683_v13  ;;  %v328_v17 = vshrl.u32 %v4937_v61, 16  ;;  %v470_v18 = vrot.slane %v468_v7, 7  ;;  %v4954_v19 = vcombine.low %v242_v3, %v243_v9  ;;  %v864_v59 = vld [vmem:[#allocation2 + $0x40] sm:$0xfe] }
  0x3e   : > { %1075 = vrot.lane.b32.xlu1 %v914_v33, %s5325_s8  ;;  %708 = vst.msk [vmem:[#allocation2 + $0x70] sm:$0xff] %vm694_vm2, %v667_v16  ;;  %v5546_v20 = vor.u32 %v1305_v4, %v1301_v54  ;;  %v1310_v21 = vrot.slane %v1308_v0, 1  ;;  %v609_v15 = vrot.slane %v607_v14, 3  ;;  %v1298_v23 = vrot.slane %v1296_v12, 1  ;;  %v5584_v60 = vld [vmem:[#allocation2 + $0x58] sm:$0x1] }
  0x3f   : > { %v473_v22 = vor.u32 %v471_v8, %v470_v18  ;;  %v475_v30 = vshrl.u32 %v4954_v19, 16  ;;  %v1529_v32 = vrot.slane %v816_v24, 1  ;;  %v1530_v33 = vrot.slane %v5522_v51, 1  ;;  %v865_v4 = vld [vmem:[#allocation2 + $0x50] sm:$0xfe] }
  0x40   : > { %v684_v29 = vsel %vm5386_vm4, %v470_v18, %v609_v15  ;;  %v1311_v31 = vsel %vm878_vm6, %v5546_v20, %v1310_v21  ;;  %v1687_v34 = vshll.u32 %v5548_v25, 16  ;;  %v1299_v35 = vsel %vm878_vm6, %v5483_v6, %v1298_v23  ;;  %v5242_v13 = vld [vmem:[%s7289_s1 + $0x10] ss:$0 sps:$4 sm:$0x33]   ;;  %v5609_v18 = vld [vmem:[#allocation2 + $0x60] sm:$0xff] }
  0x41   : > { %1840 = vrot.lane.b32.xlu0 %v1659_v36, %s5327_s10  ;;  %v668_v27 = vsel %vm5386_vm4, %v328_v17, %v473_v22  ;;  %711 = vst.msk [vmem:[#allocation2 + $0x88] sm:$0x1] %vm696_vm3, %v684_v29  ;;  %v1526_v36 = vrot.slane %v815_v26, 1  ;;  %v1527_v38 = vrot.slane %v5525_v58, 1  ;;  %v477_v41 = vrot.slane %v475_v30, 7  ;;  %5202 = vmatprep.subr.msk.bf16.mxu0 %vm2300_vm7, %v5242_v13 }
  0x42   : > { %1077 = vrot.lane.b32.xlu1 %v926_v43, %s5325_s8  ;;  %710 = vst.msk [vmem:[#allocation2 + $0x80] sm:$0xff] %vm694_vm2, %v668_v27  ;;  %v478_v42 = vshll.u32 %v4954_v19, 16  ;;  %v4970_v43 = vcombine.low %v243_v9, %v243_v9  ;;  %v1685_v6 = vshrl.u32 %v5548_v25, 16  ;;  %v1689_v45 = vrot.slane %v1687_v34, 1  ;;  %v770_v22 = vld [vmem:[#allocation2 + $0x50] sm:$0xfe] }
  0x43   : > { %v1692_v46 = vshll.u32 %v5567_v39, 16  ;;  %v1528_v47 = vsel %vm1135_vm5, %v1526_v36, %v1527_v38  ;;  %v1680_v48 = vshll.u32 %v848_v40, 16  ;;  %v935_v55 = vshll.u32 %v5575_v49, 16  ;;  %v769_v24 = vld [vmem:[#allocation2 + $0x40] sm:$0xfe] }
  0x44   : > { %v480_v51 = vor.u32 %v478_v42, %v477_v41  ;;  %v611_v52 = vshll.u32 %v4970_v43, 16  ;;  %v5579_v53 = vor.u32 %v1689_v45, %v1685_v6  ;;  %v1910_v2 = vrot.slane %v864_v59, 1  ;;  %v246_v30 = vld [vmem:[%s5374_s23 + $0x50] sm:$0xf] }
  0x45   : > { %1954 = vrot.lane.b32.xlu0 %v1909_v44, %s5324_s7  ;;  %v1531_v44 = vsel %vm1135_vm5, %v1529_v32, %v1530_v33  ;;  %v1694_v54 = vrot.slane %v1692_v46, 1  ;;  %v1682_v58 = vrot.slane %v1680_v48, 1  ;;  %v937_v1 = vrot.slane %v935_v55, 1 }
  0x46   : > { %1190 = vrot.lane.b32.xlu1 %v1147_v63, %s5322_s26  ;;  %v613_v62 = vrot.slane %v611_v52, 3  ;;  %v4955_v63 = vcombine.low %v244_v56, %v245_v57  ;;  %v1911_v7 = vrot.slane %v848_v40, 1  ;;  %v4939_v9 = vcombine.low %v244_v56, %v244_v56  ;;  %v249_v52 = vld [vmem:[%s5374_s23 + $0x5c] sm:$0xf] }
  0x47   : > { %v1695_v0 = vsel %vm878_vm6, %v5579_v53, %v1694_v54  ;;  %v1683_v5 = vsel %vm878_vm6, %v5546_v20, %v1682_v58  ;;  %v938_v14 = vsel %vm878_vm6, %v5546_v20, %v937_v1  ;;  %v1914_v17 = vrot.slane %v5567_v39, 1  ;;  %v802_v39 = vld [vmem:[#allocation2 + $0x68] sm:$0x1] }
  0x48   : > { %v685_v8 = vsel %vm5386_vm4, %v477_v41, %v613_v62  ;;  %v482_v12 = vshrl.u32 %v4955_v63, 16  ;;  %v485_v19 = vshll.u32 %v4955_v63, 16  ;;  %v1912_v21 = vsel %vm1135_vm5, %v1910_v2, %v1911_v7  ;;  %v5626_v41 = vld [vmem:[#allocation2 + $0x58] sm:$0x1] }
  0x49   : > { %1188 = vrot.lane.b32.xlu0 %v1144_v10, %s5322_s26  ;;  %713 = vst.msk [vmem:[#allocation2 + $0x98] sm:$0x1] %vm696_vm3, %v685_v8  ;;  %v1913_v10 = vrot.slane %v865_v4, 1  ;;  %v334_v15 = vshrl.u32 %v4939_v9, 16  ;;  %v1327_v20 = vshll.u32 %v5609_v18, 16  ;;  %v2302_v29 = vsel %vm2300_vm7, %v5242_v13, 0 }
  0x4a   : > { %1238 = vrot.lane.b32.xlu1 %v5507_v37, %s5320_s24  ;;  %v484_v23 = vrot.slane %v482_v12, 7  ;;  %v1151_v34 = vrot.slane %v770_v22, 1  ;;  %5131 = vmatpush3.bf16.msra.mxu0 %v2302_v29  ;;  %v1148_v36 = vrot.slane %v769_v24, 1  ;;  %v1149_v38 = vrot.slane %v5575_v49, 1  ;;  %v817_v4 = vld [vmem:[#allocation2 + $0x50] sm:$0xfe] }
  0x4b   : > { %v1915_v33 = vsel %vm1135_vm5, %v1913_v10, %v1914_v17  ;;  %v1325_v43 = vshrl.u32 %v5609_v18, 16  ;;  %v4940_v48 = vcombine.low %v246_v30, %v246_v30  ;;  %v5655_v10 = vld [vmem:[#allocation2 + $0x78] sm:$0x1]  ;;  %v1532_v17 = vrot.slane %v817_v4, 1 }
  0x4c   : > { %v487_v27 = vor.u32 %v485_v19, %v484_v23  ;;  %v1150_v49 = vsel %vm1135_vm5, %v1148_v36, %v1149_v38  ;;  %v1533_v19 = vrot.slane %v5626_v41, 1  ;;  %v252_v38 = vld [vmem:[%s5374_s23 + $0x68] sm:$0xf] }
  0x4d   : > { %1236 = vrot.lane.b32.xlu0 %v5426_v11, %s5320_s24  ;;  %v4938_v11 = vcombine.low %v242_v3, %v242_v3  ;;  %v947_v3 = vshll.u32 %v5584_v60, 16 }
  0x4e   : > { %1462 = vrot.lane.b32.xlu1 %v1311_v31, %s5326_s9  ;;  %v247_v31 = vld [vmem:[%s5374_s23 + $0x54] sm:$0xf]  ;;  %v670_v40 = vsel %vm5386_vm4, %v334_v15, %v487_v27  ;;  %v5667_v15 = vld [vmem:[#allocation2 + $0x68] sm:$0x1] }
  0x4f   : > { %v331_v50 = vshrl.u32 %v4938_v11, 16  ;;  %v949_v16 = vrot.slane %v947_v3, 1  ;;  %714 = vst.msk [vmem:[#allocation2 + $0xa0] sm:$0xff] %vm694_vm2, %v670_v40  ;;  %v4956_v42 = vcombine.low %v246_v30, %v247_v31  ;;  %v4972_v45 = vcombine.low %v247_v31, %v247_v31  ;;  %v5673_v27 = vld [vmem:[#allocation2 + $0x68] sm:$0x1] }
  0x50   : > { %v1536_v3 = vrot.slane %v802_v39, 1 }
  0x51   : > { %1460 = vrot.lane.b32.xlu0 %v1299_v35, %s5326_s9  ;;  %v669_v61 = vsel %vm5386_vm4, %v331_v50, %v480_v51  ;;  %v950_v32 = vsel %vm878_vm6, %v5579_v53, %v949_v16  ;;  %v1152_v35 = vrot.slane %v5584_v60, 1  ;;  %v1320_v50 = vshll.u32 %v5626_v41, 16  ;;  %v248_v51 = vld [vmem:[%s5374_s23 + $0x58] sm:$0xf]  ;;  %v5644_v60 = vld [vmem:[#allocation2 + $0x70] sm:$0xff] }
  0x52   : > { %1574 = vrot.lane.b32.xlu1 %v1531_v44, %s5323_s29  ;;  %712 = vst.msk [vmem:[#allocation2 + $0x90] sm:$0xff] %vm694_vm2, %v669_v61  ;;  %v1329_v44 = vrot.slane %v1327_v20, 1  ;;  %v489_v54 = vshrl.u32 %v4956_v42, 16  ;;  %v492_v55 = vshll.u32 %v4956_v42, 16  ;;  %v619_v58 = vshll.u32 %v4972_v45, 16 }
  0x53   : > { %v1153_v46 = vsel %vm1135_vm5, %v1151_v34, %v1152_v35  ;;  %v337_v61 = vshrl.u32 %v4940_v48, 16  ;;  %v4957_v63 = vcombine.low %v248_v51, %v249_v52  ;;  %v1711_v7 = vshll.u32 %v5644_v60, 16  ;;  %v5686_v42 = vld [vmem:[#allocation2 + $0x78] sm:$0x1]  ;;  %v866_v48 = vld [vmem:[#allocation2 + $0x60] sm:$0xfe] }
  0x54   : > { %v5641_v56 = vor.u32 %v1329_v44, %v1325_v43  ;;  %v491_v62 = vrot.slane %v489_v54, 7  ;;  %v621_v1 = vrot.slane %v619_v58, 3  ;;  %v4941_v9 = vcombine.low %v248_v51, %v248_v51 }
  0x55   : > { %1572 = vrot.lane.b32.xlu0 %v1528_v47, %s5323_s29  ;;  %v1332_v47 = vshll.u32 %v802_v39, 16  ;;  %v496_v13 = vshrl.u32 %v4957_v63, 16  ;;  %v1709_v24 = vshrl.u32 %v5644_v60, 16  ;;  %v1704_v34 = vshll.u32 %v5667_v15, 16  ;;  %v5679_v39 = vld [vmem:[%s5374_s23 + $0x6c] sm:$0xf] }
  0x56   : > { %1622 = vrot.lane.b32.xlu1 %v5548_v25, %s5321_s25  ;;  %v687_v8 = vsel %vm5386_vm4, %v491_v62, %v621_v1  ;;  %v340_v20 = vshrl.u32 %v4941_v9, 16  ;;  %v959_v41 = vshll.u32 %v5673_v27, 16 }
  0x57   : > { %v1334_v59 = vrot.slane %v1332_v47, 1  ;;  %717 = vst.msk [vmem:[#allocation2 + $0xb8] sm:$0x1] %vm696_vm3, %v687_v8  ;;  %v498_v29 = vrot.slane %v496_v13, 7  ;;  %v4959_v47 = vcombine.low %v252_v38, %v5679_v39  ;;  %v5712_v8 = vld [vmem:[#allocation2 + $0x80] sm:$0xff]  ;;  %v1920_v13 = vrot.slane %v5655_v10, 1 }
  0x58   : > { %v961_v51 = vrot.slane %v959_v41, 1  ;;  %v256_v41 = vld [vmem:[%s5374_s23 + $0x78] sm:$0xf] }
  0x59   : > { %1620 = vrot.lane.b32.xlu0 %v5507_v37, %s5321_s25  ;;  %v4971_v37 = vcombine.low %v245_v57, %v245_v57  ;;  %v818_v57 = vld [vmem:[#allocation2 + $0x60] sm:$0xfe] }
  0x5a   : > { %1846 = vrot.lane.b32.xlu1 %v1695_v0, %s5327_s10  ;;  %v1322_v0 = vrot.slane %v1320_v50, 1  ;;  %v1535_v2 = vrot.slane %v818_v57, 1 }
  0x5b   : > { %v615_v26 = vshll.u32 %v4971_v37, 16  ;;  %v1335_v37 = vsel %vm878_vm6, %v5641_v56, %v1334_v59 }
  0x5c   : > { %v1323_v16 = vsel %vm878_vm6, %v5579_v53, %v1322_v0  ;;  %v1537_v22 = vsel %vm1135_vm5, %v1535_v2, %v1536_v3  ;;  %v1716_v53 = vshll.u32 %v5655_v10, 16  ;;  %v867_v0 = vld [vmem:[#allocation2 + $0x70] sm:$0xfe]  ;;  %v4943_v3 = vcombine.low %v252_v38, %v252_v38 }
  0x5d   : > { %1844 = vrot.lane.b32.xlu0 %v1683_v5, %s5327_s10  ;;  %v617_v11 = vrot.slane %v615_v26, 3  ;;  %v494_v5 = vor.u32 %v492_v55, %v491_v62  ;;  %v1713_v26 = vrot.slane %v1711_v7, 1  ;;  %v1917_v62 = vrot.slane %v5667_v15, 1  ;;  %v804_v15 = vld [vmem:[#allocation2 + $0x88] sm:$0x1] }
  0x5e   : > { %1079 = vrot.lane.b32.xlu1 %v938_v14, %s5325_s8  ;;  %v4973_v14 = vcombine.low %v249_v52, %v249_v52  ;;  %v971_v52 = vshll.u32 %v5686_v42, 16 }
  0x5f   : > { %v686_v6 = vsel %vm5386_vm4, %v484_v23, %v617_v11  ;;  %v671_v12 = vsel %vm5386_vm4, %v337_v61, %v494_v5  ;;  %v499_v23 = vshll.u32 %v4957_v63, 16  ;;  %v5682_v40 = vor.u32 %v1713_v26, %v1709_v24 }
  0x60   : > { %715 = vst.msk [vmem:[#allocation2 + $0xa8] sm:$0x1] %vm696_vm3, %v686_v6  ;;  %v623_v30 = vshll.u32 %v4973_v14, 16  ;;  %v1718_v11 = vrot.slane %v1716_v53, 1  ;;  %v1916_v61 = vrot.slane %v866_v48, 1  ;;  %v510_v63 = vshrl.u32 %v4959_v47, 16 }
  0x61   : > { %1956 = vrot.lane.b32.xlu0 %v1912_v21, %s5324_s7  ;;  %716 = vst.msk [vmem:[#allocation2 + $0xb0] sm:$0xff] %vm694_vm2, %v671_v12  ;;  %v251_v21 = vld [vmem:[%s5374_s23 + $0x64] sm:$0xf]  ;;  %v501_v35 = vor.u32 %v499_v23, %v498_v29  ;;  %v962_v5 = vsel %vm878_vm6, %v5641_v56, %v961_v51  ;;  %v973_v7 = vrot.slane %v971_v52, 1  ;;  %v1919_v12 = vrot.slane %v867_v0, 1 }
  0x62   : > { %1081 = vrot.lane.b32.xlu1 %v950_v32, %s5325_s8  ;;  %v4974_v32 = vcombine.low %v251_v21, %v251_v21  ;;  %v625_v36 = vrot.slane %v623_v30, 3  ;;  %v1719_v54 = vsel %vm878_vm6, %v5682_v40, %v1718_v11  ;;  %v512_v4 = vrot.slane %v510_v63, 7  ;;  %v772_v14 = vld [vmem:[#allocation2 + $0x70] sm:$0xfe]  ;;  %v5729_v53 = vld [vmem:[#allocation2 + $0x78] sm:$0x1] }
  0x63   : > { %v672_v43 = vsel %vm5386_vm4, %v340_v20, %v501_v35  ;;  %v974_v10 = vsel %vm878_vm6, %v5682_v40, %v973_v7  ;;  %v1921_v23 = vsel %vm1135_vm5, %v1919_v12, %v1920_v13  ;;  %v1155_v26 = vrot.slane %v5673_v27, 1  ;;  %v254_v30 = vld [vmem:[%s5374_s23 + $0x70] sm:$0xf]  ;;  %v852_v7 = vld [vmem:[#allocation2 + $0x88] sm:$0x1] }
  0x64   : > { %v627_v45 = vshll.u32 %v4974_v32, 16  ;;  %718 = vst.msk [vmem:[#allocation2 + $0xc0] sm:$0xff] %vm694_vm2, %v672_v43  ;;  %v1349_v32 = vshrl.u32 %v5712_v8, 16  ;;  %v819_v51 = vld [vmem:[#allocation2 + $0x70] sm:$0xfe] }
  0x65   : > { %1958 = vrot.lane.b32.xlu0 %v1915_v33, %s5324_s7  ;;  %v1534_v33 = vsel %vm1135_vm5, %v1532_v17, %v1533_v19  ;;  %v346_v17 = vshrl.u32 %v4943_v3, 16  ;;  %v1538_v3 = vrot.slane %v819_v51, 1 }
  0x66   : > { %1194 = vrot.lane.b32.xlu1 %v1153_v46, %s5322_s26  ;;  %v1706_v46 = vrot.slane %v1704_v34, 1  ;;  %v629_v58 = vrot.slane %v627_v45, 3  ;;  %v1356_v34 = vshll.u32 %v804_v15, 16  ;;  %v5748_v45 = vld [vmem:[#allocation2 + $0x90] sm:$0xff] }
  0x68   : > { %v1707_v59 = vsel %vm878_vm6, %v5641_v56, %v1706_v46  ;;  %v4975_v56 = vcombine.low %v5679_v39, %v5679_v39 }
  0x69   : > { %1192 = vrot.lane.b32.xlu0 %v1150_v49, %s5322_s26  ;;  %v688_v49 = vsel %vm5386_vm4, %v498_v29, %v625_v36  ;;  %v1344_v36 = vshll.u32 %v5729_v53, 16 }
  0x6a   : > { %1242 = vrot.lane.b32.xlu1 %v5609_v18, %s5320_s24  ;;  %719 = vst.msk [vmem:[#allocation2 + $0xc8] sm:$0x1] %vm696_vm3, %v688_v49  ;;  %v631_v29 = vshll.u32 %v4975_v56, 16 }
  0x6b   : > { %v1346_v48 = vrot.slane %v1344_v36, 1 }
  0x6c   : > { %v633_v39 = vrot.slane %v631_v29, 3 }
  0x6d   : > { %1240 = vrot.lane.b32.xlu0 %v5548_v25, %s5320_s24  ;;  %v250_v25 = vld [vmem:[%s5374_s23 + $0x60] sm:$0xf] }
  0x6e   : > { %1466 = vrot.lane.b32.xlu1 %v1335_v37, %s5326_s9  ;;  %v4958_v31 = vcombine.low %v250_v25, %v251_v21  ;;  %v4942_v44 = vcombine.low %v250_v25, %v250_v25  ;;  %v1918_v37 = vsel %vm1135_vm5, %v1916_v61, %v1917_v62  ;;  %v1351_v25 = vshll.u32 %v5712_v8, 16 }
  0x6f   : > { %v1157_v21 = vrot.slane %v772_v14, 1  ;;  %v690_v46 = vsel %vm5386_vm4, %v512_v4, %v633_v39  ;;  %v1735_v61 = vshll.u32 %v5748_v45, 16  ;;  %v1733_v14 = vshrl.u32 %v5748_v45, 16 }
  0x70   : > { %v503_v6 = vshrl.u32 %v4958_v31, 16  ;;  %v506_v50 = vshll.u32 %v4958_v31, 16  ;;  %v343_v55 = vshrl.u32 %v4942_v44, 16  ;;  %v255_v31 = vld [vmem:[%s5374_s23 + $0x74] sm:$0xf]  ;;  %v1358_v44 = vrot.slane %v1356_v34, 1 }
  0x71   : > { %1464 = vrot.lane.b32.xlu0 %v1323_v16, %s5326_s9  ;;  %v771_v16 = vld [vmem:[#allocation2 + $0x60] sm:$0xfe]  ;;  %v4960_v38 = vcombine.low %v254_v30, %v255_v31  ;;  %v4976_v11 = vcombine.low %v255_v31, %v255_v31  ;;  %723 = vst.msk [vmem:[#allocation2 + $0xe8] sm:$0x1] %vm696_vm3, %v690_v46  ;;  %v758_v31 = vld [vmem:[#allocation2 + $0x98] sm:$0x1] }
  0x72   : > { %1578 = vrot.lane.b32.xlu1 %v1537_v22, %s5323_s29  ;;  %v505_v57 = vrot.slane %v503_v6, 7  ;;  %v1158_v22 = vrot.slane %v5686_v42, 1  ;;  %v1154_v24 = vrot.slane %v771_v16, 1  ;;  %v257_v42 = vld [vmem:[%s5374_s23 + $0x7c] sm:$0xf]  ;;  %v1737_v16 = vrot.slane %v1735_v61, 1 }
  0x73   : > { %v820_v6 = vld [vmem:[#allocation2 + $0x80] sm:$0xfe]  ;;  %v517_v49 = vshrl.u32 %v4960_v38, 16  ;;  %v520_v52 = vshll.u32 %v4960_v38, 16 }
  0x74   : > { %v508_v1 = vor.u32 %v506_v50, %v505_v57  ;;  %v689_v2 = vsel %vm5386_vm4, %v505_v57, %v629_v58  ;;  %v1159_v27 = vsel %vm1135_vm5, %v1157_v21, %v1158_v22  ;;  %v1156_v35 = vsel %vm1135_vm5, %v1154_v24, %v1155_v26 }
  0x75   : > { %1576 = vrot.lane.b32.xlu0 %v1534_v33, %s5323_s29  ;;  %721 = vst.msk [vmem:[#allocation2 + $0xd8] sm:$0x1] %vm696_vm3, %v689_v2  ;;  %v1353_v33 = vrot.slane %v1351_v25, 1  ;;  %v4961_v50 = vcombine.low %v256_v41, %v257_v42  ;;  %v1541_v58 = vrot.slane %v820_v6, 1  ;;  %v519_v63 = vrot.slane %v517_v49, 7 }
  0x76   : > { %1626 = vrot.lane.b32.xlu1 %v5644_v60, %s5321_s25  ;;  %v673_v9 = vsel %vm5386_vm4, %v343_v55, %v508_v1  ;;  %v4977_v55 = vcombine.low %v257_v42, %v257_v42  ;;  %v4945_v1 = vcombine.low %v256_v41, %v256_v41  ;;  %v1347_v2 = vsel %vm878_vm6, %v5682_v40, %v1346_v48  ;;  %v869_v42 = vld [vmem:[#allocation2 + $0x90] sm:$0xfe] }
  0x77   : > { %720 = vst.msk [vmem:[#allocation2 + $0xd0] sm:$0xff] %vm694_vm2, %v673_v9  ;;  %v5745_v43 = vor.u32 %v1353_v33, %v1349_v32  ;;  %v522_v9 = vor.u32 %v520_v52, %v519_v63  ;;  %v527_v12 = vshll.u32 %v4961_v50, 16  ;;  %v1728_v21 = vshll.u32 %v852_v7, 16  ;;  %v868_v33 = vld [vmem:[#allocation2 + $0x80] sm:$0xfe] }
  0x78   : > { %v352_v25 = vshrl.u32 %v4945_v1, 16  ;;  %v5784_v24 = vor.u32 %v1737_v16, %v1733_v14  ;;  %v1922_v39 = vrot.slane %v868_v33, 1  ;;  %v774_v49 = vld [vmem:[#allocation2 + $0x90] sm:$0xfe]  ;;  %v773_v52 = vld [vmem:[#allocation2 + $0x80] sm:$0xfe] }
  0x79   : > { %1624 = vrot.lane.b32.xlu0 %v5609_v18, %s5321_s25  ;;  %v513_v18 = vshll.u32 %v4959_v47, 16  ;;  %v4944_v47 = vcombine.low %v254_v30, %v254_v30  ;;  %v1359_v57 = vsel %vm878_vm6, %v5745_v43, %v1358_v44  ;;  %v1730_v30 = vrot.slane %v1728_v21, 1  ;;  %v805_v1 = vld [vmem:[#allocation2 + $0x98] sm:$0x1]  ;;  %v5259_v21 = vld [vmem:[#allocation2 + $0x10] sm:$0xff] }
  0x7a   : > { %1850 = vrot.lane.b32.xlu1 %v1719_v54, %s5327_s10  ;;  %v635_v54 = vshll.u32 %v4976_v11, 16  ;;  %v1923_v11 = vrot.slane %v852_v7, 1  ;;  %v1160_v61 = vrot.slane %v773_v52, 1  ;;  %v5872_v52 = vld [vmem:[#allocation2 + $0xa8] sm:$0x1] }
  0x7b   : > { %v515_v19 = vor.u32 %v513_v18, %v512_v4  ;;  %v349_v62 = vshrl.u32 %v4944_v47, 16  ;;  %v1539_v18 = vrot.slane %v5729_v53, 1  ;;  %v5763_v4 = vld [vmem:[#allocation2 + $0x98] sm:$0x1]  ;;  %v1731_v38 = vsel %vm878_vm6, %v5745_v43, %v1730_v30 }
  0x7c   : > { %v637_v0 = vrot.slane %v635_v54, 3  ;;  %v1924_v46 = vsel %vm1135_vm5, %v1922_v39, %v1923_v11  ;;  %v1925_v47 = vrot.slane %v869_v42, 1  ;;  %v1926_v48 = vrot.slane %v5763_v4, 1  ;;  %v5849_v30 = vld [vmem:[#allocation2 + $0xb8] sm:$0x1] }
  0x7d   : > { %1848 = vrot.lane.b32.xlu0 %v1707_v59, %s5327_s10  ;;  %v674_v20 = vsel %vm5386_vm4, %v346_v17, %v515_v19  ;;  %v1542_v59 = vrot.slane %v804_v15, 1  ;;  %v1740_v17 = vshll.u32 %v5763_v4, 16  ;;  %v5774_v19 = vld [vmem:[#allocation2 + $0x88] sm:$0x1]  ;;  %v675_v56 = vsel %vm5386_vm4, %v349_v62, %v522_v9 }
  0x7e   : > { %1083 = vrot.lane.b32.xlu1 %v962_v5, %s5325_s8  ;;  %722 = vst.msk [vmem:[#allocation2 + $0xe0] sm:$0xff] %vm694_vm2, %v674_v20  ;;  %v524_v5 = vshrl.u32 %v4961_v50, 16  ;;  %724 = vst.msk [vmem:[#allocation2 + $0xf0] sm:$0xff] %vm694_vm2, %v675_v56  ;;  %v5814_v50 = vld [vmem:[#allocation2 + $0xa0] sm:$0xff]  ;;  %v1163_v54 = vrot.slane %v774_v49, 1  ;;  %v1161_v62 = vrot.slane %v5774_v19, 1 }
  0x7f   : > { %v1543_v13 = vsel %vm1135_vm5, %v1541_v58, %v1542_v59  ;;  %731 = vst.msk [vmem:[#allocation2 + $0x110] sm:$0xff] %vm694_vm2, %v675_v56  ;;  %v1742_v26 = vrot.slane %v1740_v17, 1  ;;  %v1927_v59 = vsel %vm1135_vm5, %v1925_v47, %v1926_v48  ;;  %v1368_v9 = vshll.u32 %v805_v1, 16  ;;  %v854_v11 = vld [vmem:[#allocation2 + $0xa8] sm:$0x1] }
  0x80   : > { %v526_v40 = vrot.slane %v524_v5, 7  ;;  %v1162_v7 = vsel %vm1135_vm5, %v1160_v61, %v1161_v62  ;;  %v1752_v49 = vshll.u32 %v854_v11, 16 }
  0x81   : > { %1960 = vrot.lane.b32.xlu0 %v1918_v37, %s5324_s7  ;;  %v691_v37 = vsel %vm5386_vm4, %v519_v63, %v637_v0  ;;  %v1743_v34 = vsel %vm878_vm6, %v5784_v24, %v1742_v26  ;;  %v806_v63 = vld [vmem:[#allocation2 + $0xa8] sm:$0x1]  ;;  %v1370_v17 = vrot.slane %v1368_v9, 1  ;;  %v1929_v9 = vrot.slane %v854_v11, 1 }
  0x82   : > { %1085 = vrot.lane.b32.xlu1 %v974_v10, %s5325_s8  ;;  %725 = vst.msk [vmem:[#allocation2 + $0xf8] sm:$0x1] %vm696_vm3, %v691_v37  ;;  %732 = vst.msk [vmem:[#allocation2 + $0x118] sm:$0x1] %vm696_vm3, %v691_v37  ;;  %v1540_v10 = vsel %vm1135_vm5, %v1538_v3, %v1539_v18  ;;  %v529_v22 = vor.u32 %v527_v12, %v526_v40  ;;  %v1373_v3 = vshrl.u32 %v5814_v50, 16  ;;  %v1380_v4 = vshll.u32 %v806_v63, 16 }
  0x83   : > { %v5258_v12 = vld [vmem:[#allocation2] sm:$0xff]  ;;  %v1754_v61 = vrot.slane %v1752_v49, 1 }
  0x84   : > { %v676_v53 = vsel %vm5386_vm4, %v352_v25, %v529_v22  ;;  %v1382_v14 = vrot.slane %v1380_v4, 1  ;;  %v821_v25 = vld [vmem:[#allocation2 + $0x90] sm:$0xfe] }
  0x85   : > { %1962 = vrot.lane.b32.xlu0 %v1921_v23, %s5324_s7  ;;  %v983_v23 = vshll.u32 %v5774_v19, 16  ;;  %726 = vst.msk [vmem:[#allocation2 + $0x100] sm:$0xff] %vm694_vm2, %v676_v53  ;;  %v5837_v19 = vld [vmem:[#allocation2 + $0xb0] sm:$0xff] }
  0x86   : > { %1198 = vrot.lane.b32.xlu1 %v1159_v27, %s5322_s26 }
  0x87   : > { %v985_v27 = vrot.slane %v983_v23, 1  ;;  %v1548_v23 = vrot.slane %v806_v63, 1 }
  0x89   : > { %1196 = vrot.lane.b32.xlu0 %v1156_v35, %s5322_s26  ;;  %v995_v35 = vshll.u32 %v758_v31, 16 }
  0x8a   : > { %1246 = vrot.lane.b32.xlu1 %v5712_v8, %s5320_s24 }
  0x8b   : > { %v997_v44 = vrot.slane %v995_v35, 1  ;;  %v1545_v35 = vrot.slane %v805_v1, 1  ;;  %v870_v1 = vld [vmem:[#allocation2 + $0xa0] sm:$0xfe] }
  0x8d   : > { %1244 = vrot.lane.b32.xlu0 %v5644_v60, %s5320_s24  ;;  %v639_v60 = vshll.u32 %v4977_v55, 16  ;;  %v1164_v55 = vrot.slane %v758_v31, 1 }
  0x8e   : > { %1470 = vrot.lane.b32.xlu1 %v1359_v57, %s5326_s9  ;;  %v1375_v57 = vshll.u32 %v5814_v50, 16 }
  0x8f   : > { %v641_v15 = vrot.slane %v639_v60, 3 }
  0x90   : > { %v1377_v18 = vrot.slane %v1375_v57, 1 }
  0x91   : > { %1468 = vrot.lane.b32.xlu0 %v1347_v2, %s5326_s9  ;;  %v692_v20 = vsel %vm5386_vm4, %v526_v40, %v641_v15  ;;  %v1165_v2 = vsel %vm1135_vm5, %v1163_v54, %v1164_v55  ;;  %v822_v40 = vld [vmem:[#allocation2 + $0xa0] sm:$0xfe] }
  0x92   : > { %1582 = vrot.lane.b32.xlu1 %v1543_v13, %s5323_s29  ;;  %727 = vst.msk [vmem:[#allocation2 + $0x108] sm:$0x1] %vm696_vm3, %v692_v20  ;;  %v5835_v13 = vor.u32 %v1377_v18, %v1373_v3  ;;  %v1547_v15 = vrot.slane %v822_v40, 1  ;;  %v1759_v20 = vshll.u32 %v5837_v19, 16 }
  0x94   : > { %v5790_v29 = vpop.permute.xlu1 %1234  ;;  %v1383_v53 = vsel %vm878_vm6, %v5835_v13, %v1382_v14 }
  0x95   : > { %1580 = vrot.lane.b32.xlu0 %v1540_v10, %s5323_s29 }
  0x96   : > { %1630 = vrot.lane.b32.xlu1 %v5748_v45, %s5321_s25 }
  0x97   : > { %v5794_v32 = vpop.permute.xlu0 %1232 }
  0x98   : > { %v5802_v36 = vpop.permute.xlu1 %1618 }
  0x99   : > { %1628 = vrot.lane.b32.xlu0 %v5712_v8, %s5321_s25  ;;  %v986_v8 = vsel %vm878_vm6, %v5745_v43, %v985_v27  ;;  %v998_v43 = vsel %vm878_vm6, %v5784_v24, %v997_v44  ;;  %v1544_v27 = vrot.slane %v821_v25, 1  ;;  %v776_v25 = vld [vmem:[#allocation2 + $0xb0] sm:$0xfe] }
  0x9a   : > { %1854 = vrot.lane.b32.xlu1 %v1743_v34, %s5327_s10  ;;  %v1371_v34 = vsel %vm878_vm6, %v5784_v24, %v1370_v17 }
  0x9b   : > { %v5806_v41 = vpop.permute.xlu0 %1616  ;;  %v1546_v48 = vsel %vm1135_vm5, %v1544_v27, %v1545_v35  ;;  %v807_v27 = vld [vmem:[#allocation2 + $0xb8] sm:$0x1] }
  0x9c   : > { %v1185_v6 = vpop.permute.xlu1 %1184 }
  0x9d   : > { %1852 = vrot.lane.b32.xlu0 %v1731_v38, %s5327_s10 }
  0x9e   : > { %1087 = vrot.lane.b32.xlu1 %v986_v8, %s5325_s8  ;;  %v1764_v8 = vshll.u32 %v5849_v30, 16 }
  0x9f   : > { %v5816_v51 = vpop.permute.xlu0 %1568 }
  0xa0   : > { %v1187_v58 = vpop.permute.xlu1 %1186  ;;  %v1766_v57 = vrot.slane %v1764_v8, 1 }
  0xa1   : > { %1964 = vrot.lane.b32.xlu0 %v1924_v46, %s5324_s7 }
  0xa2   : > { %1089 = vrot.lane.b32.xlu1 %v998_v43, %s5325_s8 }
  0xa3   : > { %v5825_v0 = vpop.permute.xlu0 %1952 }
  0xa4   : > { %v1571_v5 = vpop.permute.xlu1 %1570 }
  0xa5   : > { %1966 = vrot.lane.b32.xlu0 %v1927_v59, %s5324_s7 }
  0xa6   : > { %1202 = vrot.lane.b32.xlu1 %v1165_v2, %s5322_s26 }
  0xa7   : > { %v1072_v37 = vpop.permute.xlu0 %1071 }
  0xa8   : > { %v1985_v60 = vsel %vm694_vm2, %v5258_v12, %v1072_v37  ;;  %v1459_v16 = vpop.permute.xlu1 %1458  ;;  %v871_v12 = vld [vmem:[#allocation2 + $0xb0] sm:$0xfe] }
  0xa9   : > { %1200 = vrot.lane.b32.xlu0 %v1162_v7, %s5322_s26  ;;  %v2018_v10 = vsel %vm2016_vm8, %v1985_v60, %v1185_v6  ;;  %v1757_v6 = vshrl.u32 %v5837_v19, 16  ;;  %v1928_v7 = vrot.slane %v870_v1, 1  ;;  %v1931_v17 = vrot.slane %v871_v12, 1 }
  0xaa   : > { %1250 = vrot.lane.b32.xlu1 %v5814_v50, %s5320_s24  ;;  %v2051_v38 = vsel %vm2049_vm9, %v2018_v10, %v5794_v32  ;;  %v1761_v32 = vrot.slane %v1759_v20, 1  ;;  %v5908_v10 = vld [vmem:[#allocation2 + $0xc0] sm:$0xff] }
  0xab   : > { %v1074_v56 = vpop.permute.xlu0 %1073 }
  0xac   : > { %v1987_v22 = vsel %vm694_vm2, %v5259_v21, %v1074_v56  ;;  %v1843_v33 = vpop.permute.xlu1 %1842  ;;  %v5881_v55 = vor.u32 %v1761_v32, %v1757_v6  ;;  %v1932_v56 = vrot.slane %v5849_v30, 1  ;;  %v824_v6 = vld [vmem:[#allocation2 + $0xc0] sm:$0xfe] }
  0xad   : > { %v2020_v26 = vsel %vm2016_vm8, %v1987_v22, %v1187_v58  ;;  %1248 = vrot.lane.b32.xlu0 %v5748_v45, %s5320_s24  ;;  %v1007_v58 = vshll.u32 %v5872_v52, 16  ;;  %v775_v22 = vld [vmem:[#allocation2 + $0xa0] sm:$0xfe] }
  0xae   : > { %v2053_v31 = vsel %vm2049_vm9, %v2020_v26, %v5790_v29  ;;  %1474 = vrot.lane.b32.xlu1 %v1383_v53, %s5326_s9  ;;  %v1549_v29 = vsel %vm1135_vm5, %v1547_v15, %v1548_v23  ;;  %v1169_v15 = vrot.slane %v776_v25, 1  ;;  %v1399_v26 = vshll.u32 %v5908_v10, 16 }
  0xaf   : > { %v2086_v45 = vsel %vm2082_vm10, %v2053_v31, %v1459_v16  ;;  %v1457_v39 = vpop.permute.xlu0 %1456  ;;  %v1009_v3 = vrot.slane %v1007_v58, 1  ;;  %v1930_v16 = vsel %vm1135_vm5, %v1928_v7, %v1929_v9  ;;  %v1933_v20 = vsel %vm1135_vm5, %v1931_v17, %v1932_v56  ;;  %v5261_v9 = vld [vmem:[#allocation2 + $0x30] sm:$0xff] }
  0xb0   : > { %v2084_v42 = vsel %vm2082_vm10, %v2051_v38, %v1457_v39  ;;  %v2119_v24 = vsel %vm2115_vm11, %v2086_v45, %v1571_v5  ;;  %v5867_v46 = vpop.permute.xlu1 %1075  ;;  %v1755_v5 = vsel %vm878_vm6, %v5835_v13, %v1754_v61  ;;  %v1166_v30 = vrot.slane %v775_v22, 1  ;;  %v5939_v61 = vld [vmem:[#allocation2 + $0xd8] sm:$0x1] }
  0xb1   : > { %v2117_v44 = vsel %vm2115_vm11, %v2084_v42, %v5816_v51  ;;  %1472 = vrot.lane.b32.xlu0 %v1371_v34, %s5326_s9  ;;  %v2152_v51 = vsel %vm2148_vm12, %v2119_v24, %v5802_v36  ;;  %v760_v36 = vld [vmem:[#allocation2 + $0xb8] sm:$0x1]  ;;  %v1010_v60 = vsel %vm878_vm6, %v5835_v13, %v1009_v3  ;;  %v1167_v31 = vrot.slane %v5872_v52, 1  ;;  %v823_v52 = vld [vmem:[#allocation2 + $0xb0] sm:$0xfe] }
  0xb2   : > { %v2150_v47 = vsel %vm2148_vm12, %v2117_v44, %v5806_v41  ;;  %1586 = vrot.lane.b32.xlu1 %v1549_v29, %s5323_s29  ;;  %v2185_v62 = vsel %vm2181_vm14, %v2152_v51, %v1843_v33  ;;  %v1019_v18 = vshll.u32 %v760_v36, 16  ;;  %v1170_v23 = vrot.slane %v760_v36, 1  ;;  %v808_v33 = vld [vmem:[#allocation2 + $0xc8] sm:$0x1] }
  0xb3   : > { %v1841_v43 = vpop.permute.xlu0 %1840  ;;  %v1397_v45 = vshrl.u32 %v5908_v10, 16  ;;  %v1401_v38 = vrot.slane %v1399_v26, 1  ;;  %v1404_v39 = vshll.u32 %v808_v33, 16  ;;  %v1168_v42 = vsel %vm1135_vm5, %v1166_v30, %v1167_v31  ;;  %v856_v3 = vld [vmem:[#allocation2 + $0xc8] sm:$0x1] }
  0xb4   : > { %v2183_v54 = vsel %vm2181_vm14, %v2150_v47, %v1841_v43  ;;  %v5885_v59 = vpop.permute.xlu1 %1077  ;;  %v1021_v14 = vrot.slane %v1019_v18, 1  ;;  %v1171_v35 = vsel %vm1135_vm5, %v1169_v15, %v1170_v23  ;;  %v1392_v29 = vshll.u32 %v807_v27, 16 }
  0xb5   : > { %1584 = vrot.lane.b32.xlu0 %v1546_v48, %s5323_s29  ;;  %v2216_v41 = vsel %vm2214_vm13, %v2183_v54, %v5825_v0  ;;  %v1767_v0 = vsel %vm878_vm6, %v5881_v55, %v1766_v57  ;;  %v5926_v24 = vor.u32 %v1401_v38, %v1397_v45  ;;  %v1406_v44 = vrot.slane %v1404_v39, 1  ;;  %v5928_v48 = vld [vmem:[#allocation2 + $0xd0] sm:$0xff]  ;;  %v5260_v54 = vld [vmem:[#allocation2 + $0x20] sm:$0xff] }
  0xb6   : > { %5132 = vmatprep.mubr.msk.bf16.mxu0 %vm2267_vm15, %v2216_v41  ;;  %1634 = vrot.lane.b32.xlu1 %v5837_v19, %s5321_s25  ;;  %v1022_v13 = vsel %vm878_vm6, %v5881_v55, %v1021_v14  ;;  %v1394_v47 = vrot.slane %v1392_v29, 1  ;;  %v1553_v43 = vrot.slane %v824_v6, 1  ;;  %v1554_v51 = vrot.slane %v808_v33, 1  ;;  %v762_v33 = vld [vmem:[#allocation2 + $0xd8] sm:$0x1] }
  0xb7   : > { %v1955_v63 = vpop.permute.xlu0 %1954  ;;  %v1989_v41 = vsel %vm694_vm2, %v5260_v54, %v5867_v46  ;;  %v1407_v57 = vsel %vm878_vm6, %v5926_v24, %v1406_v44  ;;  %v1783_v58 = vshll.u32 %v5928_v48, 16  ;;  %v1550_v1 = vrot.slane %v823_v52, 1 }
  0xb8   : > { %v2218_v2 = vsel %vm2214_vm13, %v2185_v62, %v1955_v63  ;;  %v5896_v4 = vpop.permute.xlu1 %1190  ;;  %v1395_v63 = vsel %vm878_vm6, %v5881_v55, %v1394_v47  ;;  %v1788_v7 = vshll.u32 %v5939_v61, 16  ;;  %v1781_v12 = vshrl.u32 %v5928_v48, 16 }
  0xb9   : > { %1632 = vrot.lane.b32.xlu0 %v5814_v50, %s5321_s25  ;;  %5133 = vmatmul.mubr.msk.bf16.vlgmr.msra.gmra.mrb[0].mxu0 %vm2267_vm15, %v2218_v2  ;;  %v1551_v2 = vrot.slane %v807_v27, 1  ;;  %v1776_v25 = vshll.u32 %v856_v3, 16  ;;  %v1935_v44 = vrot.slane %v856_v3, 1  ;;  %v1938_v54 = vrot.slane %v5939_v61, 1  ;;  %v810_v3 = vld [vmem:[#allocation2 + $0xe8] sm:$0x1] }
  0xba   : > { %1858 = vrot.lane.b32.xlu1 %v1767_v0, %s5327_s10 }
  0xbb   : > { %v1189_v37 = vpop.permute.xlu0 %1188  ;;  %v1552_v56 = vsel %vm1135_vm5, %v1550_v1, %v1551_v2 }
  0xbc   : > { %v5904_v40 = vpop.permute.xlu1 %1238  ;;  %v2022_v36 = vsel %vm2016_vm8, %v1989_v41, %v1189_v37  ;;  %v1991_v37 = vsel %vm694_vm2, %v5261_v9, %v5885_v59  ;;  %v778_v41 = vld [vmem:[#allocation2 + $0xd0] sm:$0xfe] }
  0xbd   : > { %1856 = vrot.lane.b32.xlu0 %v1755_v5, %s5327_s10  ;;  %v1555_v5 = vsel %vm1135_vm5, %v1553_v43, %v1554_v51  ;;  %v2024_v14 = vsel %vm2016_vm8, %v1991_v37, %v5896_v4 }
  0xbe   : > { %1091 = vrot.lane.b32.xlu1 %v1010_v60, %s5325_s8  ;;  %v1785_v60 = vrot.slane %v1783_v58, 1  ;;  %v2057_v59 = vsel %vm2049_vm9, %v2024_v14, %v5904_v40 }
  0xbf   : > { %v1237_v21 = vpop.permute.xlu0 %1236 }
  0xc0   : > { %v5915_v53 = vpop.permute.xlu1 %1462  ;;  %v2055_v46 = vsel %vm2049_vm9, %v2022_v36, %v1237_v21  ;;  %v5960_v21 = vld [vmem:[#allocation2 + $0xc8] sm:$0x1]  ;;  %v5972_v26 = vor.u32 %v1785_v60, %v1781_v12  ;;  %v777_v36 = vld [vmem:[#allocation2 + $0xc0] sm:$0xfe] }
  0xc1   : > { %1968 = vrot.lane.b32.xlu0 %v1930_v16, %s5324_s7  ;;  %v2090_v15 = vsel %vm2082_vm10, %v2057_v59, %v5915_v53  ;;  %v1031_v40 = vshll.u32 %v5960_v21, 16  ;;  %v1778_v53 = vrot.slane %v1776_v25, 1 }
  0xc2   : > { %1093 = vrot.lane.b32.xlu1 %v1022_v13, %s5325_s8 }
  0xc3   : > { %v1461_v34 = vpop.permute.xlu0 %1460  ;;  %v1033_v39 = vrot.slane %v1031_v40, 1  ;;  %v1779_v29 = vsel %vm878_vm6, %v5926_v24, %v1778_v53  ;;  %v5262_v40 = vld [vmem:[#allocation2 + $0x40] sm:$0xff] }
  0xc4   : > { %v1575_v11 = vpop.permute.xlu1 %1574  ;;  %v2088_v18 = vsel %vm2082_vm10, %v2055_v46, %v1461_v34  ;;  %v1172_v46 = vrot.slane %v777_v36, 1 }
  0xc5   : > { %1970 = vrot.lane.b32.xlu0 %v1933_v20, %s5324_s7  ;;  %v2123_v23 = vsel %vm2115_vm11, %v2090_v15, %v1575_v11  ;;  %v1790_v20 = vrot.slane %v1788_v7, 1  ;;  %v1043_v11 = vshll.u32 %v762_v33, 16  ;;  %v1034_v47 = vsel %vm878_vm6, %v5926_v24, %v1033_v39 }
  0xc6   : > { %1206 = vrot.lane.b32.xlu1 %v1171_v35, %s5322_s26  ;;  %v872_v35 = vld [vmem:[#allocation2 + $0xc0] sm:$0xfe] }
  0xc7   : > { %v1573_v8 = vpop.permute.xlu0 %1572  ;;  %v1791_v38 = vsel %vm878_vm6, %v5972_v26, %v1790_v20  ;;  %v1560_v20 = vrot.slane %v810_v3, 1 }
  0xc8   : > { %v1623_v32 = vpop.permute.xlu1 %1622  ;;  %v2121_v55 = vsel %vm2115_vm11, %v2088_v18, %v1573_v8  ;;  %v1934_v8 = vrot.slane %v872_v35, 1 }
  0xc9   : > { %1204 = vrot.lane.b32.xlu0 %v1168_v42, %s5322_s26  ;;  %v2156_v30 = vsel %vm2148_vm12, %v2123_v23, %v1623_v32  ;;  %v873_v32 = vld [vmem:[#allocation2 + $0xd0] sm:$0xfe] }
  0xca   : > { %1254 = vrot.lane.b32.xlu1 %v5908_v10, %s5320_s24  ;;  %v1936_v43 = vsel %vm1135_vm5, %v1934_v8, %v1935_v44  ;;  %v1937_v51 = vrot.slane %v873_v32, 1 }
  0xcb   : > { %v1621_v49 = vpop.permute.xlu0 %1620 }
  0xcc   : > { %v1847_v62 = vpop.permute.xlu1 %1846  ;;  %v2154_v16 = vsel %vm2148_vm12, %v2121_v55, %v1621_v49  ;;  %v1045_v49 = vrot.slane %v1043_v11, 1  ;;  %v1939_v61 = vsel %vm1135_vm5, %v1937_v51, %v1938_v54  ;;  %v1428_v55 = vshll.u32 %v810_v3, 16 }
  0xcd   : > { %1252 = vrot.lane.b32.xlu0 %v5837_v19, %s5320_s24  ;;  %v2189_v34 = vsel %vm2181_vm14, %v2156_v30, %v1847_v62  ;;  %v1175_v62 = vrot.slane %v778_v41, 1 }
  0xce   : > { %1478 = vrot.lane.b32.xlu1 %v1407_v57, %s5326_s9  ;;  %v5999_v57 = vld [vmem:[#allocation2 + $0xe0] sm:$0xff]  ;;  %v1046_v24 = vsel %vm878_vm6, %v5972_v26, %v1045_v49  ;;  %v1430_v25 = vrot.slane %v1428_v55, 1 }
  0xcf   : > { %v1845_v0 = vpop.permute.xlu0 %1844  ;;  %v1423_v1 = vshll.u32 %v5999_v57, 16  ;;  %v1421_v9 = vshrl.u32 %v5999_v57, 16 }
  0xd0   : > { %v5957_v17 = vpop.permute.xlu1 %1079  ;;  %v2187_v22 = vsel %vm2181_vm14, %v2154_v16, %v1845_v0  ;;  %v1173_v0 = vrot.slane %v5960_v21, 1  ;;  %v826_v21 = vld [vmem:[#allocation2 + $0xe0] sm:$0xfe] }
  0xd1   : > { %1476 = vrot.lane.b32.xlu0 %v1395_v63, %s5326_s9  ;;  %v1176_v63 = vrot.slane %v762_v33, 1  ;;  %v1425_v37 = vrot.slane %v1423_v1, 1  ;;  %v1559_v23 = vrot.slane %v826_v21, 1  ;;  %v1993_v30 = vsel %vm694_vm2, %v5262_v40, %v5957_v17 }
  0xd2   : > { %1590 = vrot.lane.b32.xlu1 %v1555_v5, %s5323_s29  ;;  %v809_v5 = vld [vmem:[#allocation2 + $0xd8] sm:$0x1]  ;;  %v1174_v60 = vsel %vm1135_vm5, %v1172_v46, %v1173_v0 }
  0xd3   : > { %v1957_v13 = vpop.permute.xlu0 %1956  ;;  %v1177_v7 = vsel %vm1135_vm5, %v1175_v62, %v1176_v63  ;;  %v1416_v14 = vshll.u32 %v809_v5, 16  ;;  %v1557_v39 = vrot.slane %v809_v5, 1  ;;  %v1561_v44 = vsel %vm1135_vm5, %v1559_v23, %v1560_v20  ;;  %v764_v5 = vld [vmem:[#allocation2 + $0xf8] sm:$0x1] }
  0xd4   : > { %v2220_v4 = vsel %vm2214_vm13, %v2187_v22, %v1957_v13  ;;  %v5976_v31 = vpop.permute.xlu1 %1081  ;;  %v6019_v13 = vld [vmem:[#allocation2 + $0xf0] sm:$0xff] }
  0xd5   : > { %1588 = vrot.lane.b32.xlu0 %v1552_v56, %s5323_s29  ;;  %5136 = vmatprep.mubr.msk.bf16.mxu0 %vm2267_vm15, %v2220_v4  ;;  %v6017_v56 = vor.u32 %v1425_v37, %v1421_v9  ;;  %v1418_v22 = vrot.slane %v1416_v14, 1  ;;  %v825_v4 = vld [vmem:[#allocation2 + $0xd0] sm:$0xfe]  ;;  %v1807_v33 = vshll.u32 %v6019_v13, 16  ;;  %v1805_v49 = vshrl.u32 %v6019_v13, 16 }
  0xd6   : > { %1638 = vrot.lane.b32.xlu1 %v5928_v48, %s5321_s25  ;;  %v874_v37 = vld [vmem:[#allocation2 + $0xe0] sm:$0xfe]  ;;  %v1067_v14 = vshll.u32 %v764_v5, 16 }
  0xd7   : > { %v1959_v27 = vpop.permute.xlu0 %1958  ;;  %v1431_v53 = vsel %vm878_vm6, %v6017_v56, %v1430_v25  ;;  %v1940_v21 = vrot.slane %v874_v37, 1  ;;  %v861_v37 = vld [vmem:[#allocation2 + $0x118] sm:$0x1] }
  0xd8   : > { %v2222_v45 = vsel %vm2214_vm13, %v2189_v34, %v1959_v27  ;;  %v5987_v42 = vpop.permute.xlu1 %1194  ;;  %v6030_v34 = vld [vmem:[#allocation2 + $0xf8] sm:$0x1]  ;;  %v1069_v23 = vrot.slane %v1067_v14, 1 }
  0xd9   : > { %1636 = vrot.lane.b32.xlu0 %v5908_v10, %s5321_s25  ;;  %5137 = vmatmul.mubr.msk.bf16.gmra.mrb[4].mxu0 %vm2267_vm15, %v2222_v45  ;;  %v1419_v45 = vsel %vm878_vm6, %v5972_v26, %v1418_v22  ;;  %v1812_v32 = vshll.u32 %v6030_v34, 16 }
  0xda   : > { %1862 = vrot.lane.b32.xlu1 %v1791_v38, %s5327_s10  ;;  %v1556_v38 = vrot.slane %v825_v4, 1 }
  0xdb   : > { %v1193_v6 = vpop.permute.xlu0 %1192  ;;  %v1814_v0 = vrot.slane %v1812_v32, 1 }
  0xdc   : > { %v5995_v52 = vpop.permute.xlu1 %1242  ;;  %v2026_v27 = vsel %vm2016_vm8, %v1993_v30, %v1193_v6 }
  0xdd   : > { %1860 = vrot.lane.b32.xlu0 %v1779_v29, %s5327_s10  ;;  %v858_v29 = vld [vmem:[#allocation2 + $0xe8] sm:$0x1] }
  0xde   : > { %1095 = vrot.lane.b32.xlu1 %v1034_v47, %s5325_s8  ;;  %v5263_v47 = vld [vmem:[#allocation2 + $0x50] sm:$0xff]  ;;  %v1800_v36 = vshll.u32 %v858_v29, 16 }
  0xdf   : > { %v1241_v58 = vpop.permute.xlu0 %1240  ;;  %v1995_v6 = vsel %vm694_vm2, %v5263_v47, %v5976_v31  ;;  %v811_v47 = vld [vmem:[#allocation2 + $0xf8] sm:$0x1] }
  0xe0   : > { %v6006_v2 = vpop.permute.xlu1 %1466  ;;  %v2059_v17 = vsel %vm2049_vm9, %v2026_v27, %v1241_v58  ;;  %v2028_v51 = vsel %vm2016_vm8, %v1995_v6, %v5987_v42  ;;  %v1558_v58 = vsel %vm1135_vm5, %v1556_v38, %v1557_v39  ;;  %v6090_v27 = vld [vmem:[#allocation2 + $0x100] sm:$0xff]  ;;  %v1182_v39 = vrot.slane %v764_v5, 1 }
  0xe1   : > { %1972 = vrot.lane.b32.xlu0 %v1936_v43, %s5324_s7  ;;  %v1809_v43 = vrot.slane %v1807_v33, 1  ;;  %v2061_v31 = vsel %vm2049_vm9, %v2028_v51, %v5995_v52  ;;  %v780_v33 = vld [vmem:[#allocation2 + $0xf0] sm:$0xfe] }
  0xe2   : > { %1097 = vrot.lane.b32.xlu1 %v1046_v24, %s5325_s8  ;;  %v6051_v24 = vld [vmem:[#allocation2 + $0xe8] sm:$0x1]  ;;  %v2094_v1 = vsel %vm2082_vm10, %v2061_v31, %v6006_v2  ;;  %v1802_v2 = vrot.slane %v1800_v36, 1  ;;  %v1181_v38 = vrot.slane %v780_v33, 1 }
  0xe3   : > { %v1465_v18 = vpop.permute.xlu0 %1464  ;;  %v6063_v46 = vor.u32 %v1809_v43, %v1805_v49  ;;  %v1055_v52 = vshll.u32 %v6051_v24, 16 }
  0xe4   : > { %v1579_v12 = vpop.permute.xlu1 %1578  ;;  %v2092_v8 = vsel %vm2082_vm10, %v2059_v17, %v1465_v18  ;;  %v1803_v25 = vsel %vm878_vm6, %v6017_v56, %v1802_v2  ;;  %v1447_v17 = vshll.u32 %v6090_v27, 16  ;;  %v1183_v6 = vsel %vm1135_vm5, %v1181_v38, %v1182_v39 }
  0xe5   : > { %1974 = vrot.lane.b32.xlu0 %v1939_v61, %s5324_s7  ;;  %v2127_v61 = vsel %vm2115_vm11, %v2094_v1, %v1579_v12  ;;  %v1815_v12 = vsel %vm878_vm6, %v6063_v46, %v1814_v0  ;;  %v827_v0 = vld [vmem:[#allocation2 + $0xf0] sm:$0xfe] }
  0xe6   : > { %1210 = vrot.lane.b32.xlu1 %v1177_v7, %s5322_s26  ;;  %v1449_v49 = vrot.slane %v1447_v17, 1  ;;  %v1562_v14 = vrot.slane %v827_v0, 1 }
  0xe7   : > { %v1577_v16 = vpop.permute.xlu0 %1576 }
  0xe8   : > { %v1627_v59 = vpop.permute.xlu1 %1626  ;;  %v2125_v26 = vsel %vm2115_vm11, %v2092_v8, %v1577_v16  ;;  %v1179_v8 = vrot.slane %v6051_v24, 1 }
  0xe9   : > { %1208 = vrot.lane.b32.xlu0 %v1174_v60, %s5322_s26  ;;  %v2160_v3 = vsel %vm2148_vm12, %v2127_v61, %v1627_v59  ;;  %v1057_v60 = vrot.slane %v1055_v52, 1  ;;  %v1941_v59 = vrot.slane %v858_v29, 1 }
  0xea   : > { %1258 = vrot.lane.b32.xlu1 %v5999_v57, %s5320_s24 }
  0xeb   : > { %v1625_v15 = vpop.permute.xlu0 %1624  ;;  %v1058_v4 = vsel %vm878_vm6, %v6017_v56, %v1057_v60  ;;  %v1942_v40 = vsel %vm1135_vm5, %v1940_v21, %v1941_v59  ;;  %v1070_v56 = vsel %vm878_vm6, %v6063_v46, %v1069_v23  ;;  %v860_v59 = vld [vmem:[#allocation2 + $0x108] sm:$0x1]  ;;  %v1836_v23 = vshll.u32 %v861_v37, 16 }
  0xec   : > { %v1851_v35 = vpop.permute.xlu1 %1850  ;;  %v2158_v54 = vsel %vm2148_vm12, %v2125_v26, %v1625_v15  ;;  %v875_v15 = vld [vmem:[#allocation2 + $0xf0] sm:$0xfe]  ;;  %v1445_v26 = vshrl.u32 %v6090_v27, 16  ;;  %v1824_v38 = vshll.u32 %v860_v59, 16 }
  0xed   : > { %1256 = vrot.lane.b32.xlu0 %v5928_v48, %s5320_s24  ;;  %v2193_v7 = vsel %vm2181_vm14, %v2160_v3, %v1851_v35  ;;  %v1943_v30 = vrot.slane %v875_v15, 1  ;;  %v5264_v3 = vld [vmem:[#allocation2 + $0x60] sm:$0xff] }
  0xee   : > { %1482 = vrot.lane.b32.xlu1 %v1431_v53, %s5326_s9  ;;  %v1944_v53 = vrot.slane %v6030_v34, 1  ;;  %v6108_v24 = vor.u32 %v1449_v49, %v1445_v26  ;;  %v876_v49 = vld [vmem:[#allocation2 + $0x100] sm:$0xfe] }
  0xef   : > { %v1849_v11 = vpop.permute.xlu0 %1848 }
  0xf0   : > { %v6048_v41 = vpop.permute.xlu1 %1083  ;;  %v2191_v62 = vsel %vm2181_vm14, %v2158_v54, %v1849_v11  ;;  %v1945_v34 = vsel %vm1135_vm5, %v1943_v30, %v1944_v53 }
  0xf1   : > { %1480 = vrot.lane.b32.xlu0 %v1419_v45, %s5326_s9  ;;  %v779_v45 = vld [vmem:[#allocation2 + $0xe0] sm:$0xfe]  ;;  %v1997_v2 = vsel %vm694_vm2, %v5264_v3, %v6048_v41 }
  0xf2   : > { %1594 = vrot.lane.b32.xlu1 %v1561_v44, %s5323_s29  ;;  %v1178_v29 = vrot.slane %v779_v45, 1  ;;  %v812_v44 = vld [vmem:[#allocation2 + $0x108] sm:$0x1] }
  0xf3   : > { %v1961_v63 = vpop.permute.xlu0 %1960  ;;  %v1452_v43 = vshll.u32 %v812_v44, 16 }
  0xf4   : > { %v2224_v42 = vsel %vm2214_vm13, %v2191_v62, %v1961_v63  ;;  %v6067_v18 = vpop.permute.xlu1 %1085  ;;  %v1180_v54 = vsel %vm1135_vm5, %v1178_v29, %v1179_v8  ;;  %v845_v62 = vld [vmem:[#allocation2 + $0x110] sm:$0xff] }
  0xf5   : > { %1592 = vrot.lane.b32.xlu0 %v1558_v58, %s5323_s29  ;;  %5140 = vmatprep.mubr.msk.bf16.mxu0 %vm2267_vm15, %v2224_v42  ;;  %v1440_v58 = vshll.u32 %v811_v47, 16  ;;  %v1454_v31 = vrot.slane %v1452_v43, 1  ;;  %v828_v42 = vld [vmem:[#allocation2 + $0x100] sm:$0xfe]  ;;  %v1831_v52 = vshll.u32 %v845_v62, 16 }
  0xf6   : > { %1642 = vrot.lane.b32.xlu1 %v6019_v13, %s5321_s25 }
  0xf7   : > { %v1963_v9 = vpop.permute.xlu0 %1962  ;;  %v1442_v1 = vrot.slane %v1440_v58, 1  ;;  %v1455_v5 = vsel %vm878_vm6, %v6108_v24, %v1454_v31  ;;  %v1833_v53 = vrot.slane %v1831_v52, 1  ;;  %v1950_v58 = vrot.slane %v861_v37, 1 }
  0xf8   : > { %v2226_v55 = vsel %vm2214_vm13, %v2193_v7, %v1963_v9  ;;  %v6078_v16 = vpop.permute.xlu1 %1198  ;;  %v1565_v7 = vrot.slane %v828_v42, 1  ;;  %v1566_v9 = vrot.slane %v812_v44, 1  ;;  %v1838_v44 = vrot.slane %v1836_v23, 1 }
  0xf9   : > { %1640 = vrot.lane.b32.xlu0 %v5999_v57, %s5321_s25  ;;  %5141 = vmatmul.mubr.msk.bf16.gmra.mrb[8].mxu0 %vm2267_vm15, %v2226_v55  ;;  %v1443_v60 = vsel %vm878_vm6, %v6063_v46, %v1442_v1  ;;  %v1947_v1 = vrot.slane %v860_v59, 1 }
  0xfa   : > { %1866 = vrot.lane.b32.xlu1 %v1815_v12, %s5327_s10  ;;  %v1567_v46 = vsel %vm1135_vm5, %v1565_v7, %v1566_v9  ;;  %v5266_v9 = vld [vmem:[#allocation2 + $0x80] sm:$0xff] }
  0xfb   : > { %v1197_v22 = vpop.permute.xlu0 %1196 }
  0xfc   : > { %v6086_v20 = vpop.permute.xlu1 %1246  ;;  %v2030_v55 = vsel %vm2016_vm8, %v1997_v2, %v1197_v22 }
  0xfd   : > { %1864 = vrot.lane.b32.xlu0 %v1803_v25, %s5327_s10  ;;  %v1563_v25 = vrot.slane %v811_v47, 1  ;;  %v1826_v47 = vrot.slane %v1824_v38, 1 }
  0xfe   : > { %1099 = vrot.lane.b32.xlu1 %v1058_v4, %s5325_s8  ;;  %v1829_v4 = vshrl.u32 %v845_v62, 16 }
  0xff   : > { %v1245_v35 = vpop.permute.xlu0 %1244  ;;  %v1827_v31 = vsel %vm878_vm6, %v6108_v24, %v1826_v47 }
 0x100   : > { %v6097_v11 = vpop.permute.xlu1 %1470  ;;  %v2063_v21 = vsel %vm2049_vm9, %v2030_v55, %v1245_v35  ;;  %v1834_v8 = vor.u32 %v1833_v53, %v1829_v4 }
 0x101   : > { %1976 = vrot.lane.b32.xlu0 %v1942_v40, %s5324_s7  ;;  %v5265_v40 = vld [vmem:[#allocation2 + $0x70] sm:$0xff] }
 0x102   : > { %1101 = vrot.lane.b32.xlu1 %v1070_v56, %s5325_s8  ;;  %v1999_v22 = vsel %vm694_vm2, %v5265_v40, %v6067_v18  ;;  %v1564_v56 = vsel %vm1135_vm5, %v1562_v14, %v1563_v25 }
 0x103   : > { %v1469_v32 = vpop.permute.xlu0 %1468  ;;  %v2032_v33 = vsel %vm2016_vm8, %v1999_v22, %v6078_v16 }
 0x104   : > { %v1583_v51 = vpop.permute.xlu1 %1582  ;;  %v2096_v15 = vsel %vm2082_vm10, %v2063_v21, %v1469_v32  ;;  %v2065_v39 = vsel %vm2049_vm9, %v2032_v33, %v6086_v20  ;;  %v5267_v21 = vld [vmem:[#allocation2 + $0x90] sm:$0xff] }
 0x105   : > { %1978 = vrot.lane.b32.xlu0 %v1945_v34, %s5324_s7  ;;  %v2098_v34 = vsel %vm2082_vm10, %v2065_v39, %v6097_v11 }
 0x106   : > { %1214 = vrot.lane.b32.xlu1 %v1183_v6, %s5322_s26  ;;  %v2131_v16 = vsel %vm2115_vm11, %v2098_v34, %v1583_v51  ;;  %v877_v6 = vld [vmem:[#allocation2 + $0x110] sm:$0xfe]  ;;  %v1839_v51 = vsel %vm878_vm6, %v1834_v8, %v1838_v44 }
 0x107   : > { %v1581_v36 = vpop.permute.xlu0 %1580 }
 0x108   : > { %v1631_v63 = vpop.permute.xlu1 %1630  ;;  %v2129_v30 = vsel %vm2115_vm11, %v2096_v15, %v1581_v36 }
 0x109   : > { %1212 = vrot.lane.b32.xlu0 %v1180_v54, %s5322_s26  ;;  %v2164_v20 = vsel %vm2148_vm12, %v2131_v16, %v1631_v63  ;;  %v1949_v54 = vrot.slane %v877_v6, 1  ;;  %v1946_v63 = vrot.slane %v876_v49, 1 }
 0x10a   : > { %1262 = vrot.lane.b32.xlu1 %v6090_v27, %s5320_s24 }
 0x10b   : > { %v1629_v61 = vpop.permute.xlu0 %1628 }
 0x10c   : > { %v1855_v12 = vpop.permute.xlu1 %1854  ;;  %v2162_v35 = vsel %vm2148_vm12, %v2129_v30, %v1629_v61  ;;  %v1948_v61 = vsel %vm1135_vm5, %v1946_v63, %v1947_v1 }
 0x10d   : > { %1260 = vrot.lane.b32.xlu0 %v6019_v13, %s5320_s24  ;;  %v2197_v26 = vsel %vm2181_vm14, %v2164_v20, %v1855_v12 }
 0x10e   : > { %1486 = vrot.lane.b32.xlu1 %v1455_v5, %s5326_s9 }
 0x10f   : > { %v1853_v41 = vpop.permute.xlu0 %1852 }
 0x110   : > { %v1088_v45 = vpop.permute.xlu1 %1087  ;;  %v2195_v18 = vsel %vm2181_vm14, %v2162_v35, %v1853_v41 }
 0x111   : > { %1484 = vrot.lane.b32.xlu0 %v1443_v60, %s5326_s9  ;;  %v2001_v37 = vsel %vm694_vm2, %v5266_v9, %v1088_v45 }
 0x112   : > { %1598 = vrot.lane.b32.xlu1 %v1567_v46, %s5323_s29 }
 0x113   : > { %v1965_v17 = vpop.permute.xlu0 %1964 }
 0x114   : > { %v2228_v29 = vsel %vm2214_vm13, %v2195_v18, %v1965_v17  ;;  %v1090_v32 = vpop.permute.xlu1 %1089 }
 0x115   : > { %1596 = vrot.lane.b32.xlu0 %v1564_v56, %s5323_s29  ;;  %5144 = vmatprep.mubr.msk.bf16.mxu0 %vm2267_vm15, %v2228_v29  ;;  %v2003_v41 = vsel %vm694_vm2, %v5267_v21, %v1090_v32 }
 0x116   : > { %1646 = vrot.lane.b32.xlu1 %v845_v62, %s5321_s25  ;;  %v1951_v62 = vsel %vm1135_vm5, %v1949_v54, %v1950_v58 }
 0x117   : > { %v1967_v11 = vpop.permute.xlu0 %1966 }
 0x118   : > { %v2230_v43 = vsel %vm2214_vm13, %v2197_v26, %v1967_v11  ;;  %v1203_v36 = vpop.permute.xlu1 %1202 }
 0x119   : > { %1644 = vrot.lane.b32.xlu0 %v6090_v27, %s5321_s25  ;;  %5145 = vmatmul.mubr.msk.bf16.gmra.mrb[12].mxu0 %vm2267_vm15, %v2230_v43  ;;  %v2036_v15 = vsel %vm2016_vm8, %v2003_v41, %v1203_v36 }
 0x11a   : > { %1870 = vrot.lane.b32.xlu1 %v1839_v51, %s5327_s10 }
 0x11b   : > { %v1201_v42 = vpop.permute.xlu0 %1200 }
 0x11c   : > { %v1251_v27 = vpop.permute.xlu1 %1250  ;;  %v2034_v55 = vsel %vm2016_vm8, %v2001_v37, %v1201_v42 }
 0x11d   : > { %1868 = vrot.lane.b32.xlu0 %v1827_v31, %s5327_s10  ;;  %v2069_v40 = vsel %vm2049_vm9, %v2036_v15, %v1251_v27 }
 0x11e   : > { %1982 = vrot.lane.b32.xlu1 %v1951_v62, %s5324_s7 }
 0x11f   : > { %v1249_v0 = vpop.permute.xlu0 %1248 }
 0x120   : > { %v1475_v52 = vpop.permute.xlu1 %1474  ;;  %v2067_v60 = vsel %vm2049_vm9, %v2034_v55, %v1249_v0 }
 0x121   : > { %1980 = vrot.lane.b32.xlu0 %v1948_v61, %s5324_s7  ;;  %v2102_v46 = vsel %vm2082_vm10, %v2069_v40, %v1475_v52 }
 0x123   : > { %v1473_v3 = vpop.permute.xlu0 %1472 }
 0x124   : > { %v1587_v24 = vpop.permute.xlu1 %1586  ;;  %v2100_v25 = vsel %vm2082_vm10, %v2067_v60, %v1473_v3 }
 0x125   : > { %v2135_v33 = vsel %vm2115_vm11, %v2102_v46, %v1587_v24 }
 0x127   : > { %v1585_v2 = vpop.permute.xlu0 %1584 }
 0x128   : > { %v1635_v5 = vpop.permute.xlu1 %1634  ;;  %v2133_v59 = vsel %vm2115_vm11, %v2100_v25, %v1585_v2 }
 0x129   : > { %v2168_v35 = vsel %vm2148_vm12, %v2135_v33, %v1635_v5 }
 0x12b   : > { %v1633_v7 = vpop.permute.xlu0 %1632 }
 0x12c   : > { %v1859_v12 = vpop.permute.xlu1 %1858  ;;  %v2166_v4 = vsel %vm2148_vm12, %v2133_v59, %v1633_v7 }
 0x12d   : > { %v2201_v56 = vsel %vm2181_vm14, %v2168_v35, %v1859_v12 }
 0x12f   : > { %v1857_v14 = vpop.permute.xlu0 %1856 }
 0x130   : > { %v1092_v23 = vpop.permute.xlu1 %1091  ;;  %v2199_v22 = vsel %vm2181_vm14, %v2166_v4, %v1857_v14 }
 0x131   : > { %v2005_v6 = vsel %vm694_vm2, %v5814_v50, %v1092_v23 }
 0x133   : > { %v1969_v30 = vpop.permute.xlu0 %1968 }
 0x134   : > { %v2232_v53 = vsel %vm2214_vm13, %v2199_v22, %v1969_v30  ;;  %v1094_v45 = vpop.permute.xlu1 %1093 }
 0x135   : > { %5148 = vmatprep.mubr.msk.bf16.mxu0 %vm2267_vm15, %v2232_v53  ;;  %v2007_v54 = vsel %vm694_vm2, %v5837_v19, %v1094_v45 }
 0x137   : > { %v1971_v38 = vpop.permute.xlu0 %1970 }
 0x138   : > { %v2234_v39 = vsel %vm2214_vm13, %v2201_v56, %v1971_v38  ;;  %v1207_v18 = vpop.permute.xlu1 %1206 }
 0x139   : > { %5149 = vmatmul.mubr.msk.bf16.gmra.mrb[16].mxu0 %vm2267_vm15, %v2234_v39  ;;  %v2040_v36 = vsel %vm2016_vm8, %v2007_v54, %v1207_v18  ;;  %v6227_v54 = vld [vmem:[%s7290_s2 + $0x1] ss:$0 sm:$0xff] }
 0x13b   : > { %v1205_v17 = vpop.permute.xlu0 %1204 }
 0x13c   : > { %v1255_v34 = vpop.permute.xlu1 %1254  ;;  %v2038_v26 = vsel %vm2016_vm8, %v2005_v6, %v1205_v17 }
 0x13d   : > { %v2073_v50 = vsel %vm2049_vm9, %v2040_v36, %v1255_v34 }
 0x13f   : > { %v1253_v29 = vpop.permute.xlu0 %1252 }
 0x140   : > { %v1479_v16 = vpop.permute.xlu1 %1478  ;;  %v2071_v49 = vsel %vm2049_vm9, %v2038_v26, %v1253_v29 }
 0x141   : > { %v2106_v62 = vsel %vm2082_vm10, %v2073_v50, %v1479_v16 }
 0x143   : > { %v1477_v8 = vpop.permute.xlu0 %1476 }
 0x144   : > { %v1591_v44 = vpop.permute.xlu1 %1590  ;;  %v2104_v51 = vsel %vm2082_vm10, %v2071_v49, %v1477_v8 }
 0x145   : > { %v2139_v61 = vsel %vm2115_vm11, %v2106_v62, %v1591_v44 }
 0x147   : > { %v1589_v20 = vpop.permute.xlu0 %1588 }
 0x148   : > { %v1639_v32 = vpop.permute.xlu1 %1638  ;;  %v2137_v58 = vsel %vm2115_vm11, %v2104_v51, %v1589_v20 }
 0x149   : > { %v2172_v19 = vsel %vm2148_vm12, %v2139_v61, %v1639_v32 }
 0x14b   : > { %v1637_v47 = vpop.permute.xlu0 %1636 }
 0x14c   : > { %v1863_v11 = vpop.permute.xlu1 %1862  ;;  %v2170_v31 = vsel %vm2148_vm12, %v2137_v58, %v1637_v47 }
 0x14d   : > { %v2205_v52 = vsel %vm2181_vm14, %v2172_v19, %v1863_v11  ;;  %v6220_v11 = vld [vmem:[%s7290_s2] ss:$0 sm:$0xff] }
 0x14f   : > { %v1861_v43 = vpop.permute.xlu0 %1860 }
 0x150   : > { %v1096_v63 = vpop.permute.xlu1 %1095  ;;  %v2203_v1 = vsel %vm2181_vm14, %v2170_v31, %v1861_v43 }
 0x151   : > { %v2009_v21 = vsel %vm694_vm2, %v5908_v10, %v1096_v63 }
 0x153   : > { %v1973_v42 = vpop.permute.xlu0 %1972 }
 0x154   : > { %v2236_v27 = vsel %vm2214_vm13, %v2203_v1, %v1973_v42  ;;  %v1098_v0 = vpop.permute.xlu1 %1097 }
 0x155   : > { %5152 = vmatprep.mubr.msk.bf16.mxu0 %vm2267_vm15, %v2236_v27  ;;  %v2011_v40 = vsel %vm694_vm2, %v5928_v48, %v1098_v0 }
 0x157   : > { %v1975_v3 = vpop.permute.xlu0 %1974 }
 0x158   : > { %v2238_v24 = vsel %vm2214_vm13, %v2205_v52, %v1975_v3  ;;  %v1211_v2 = vpop.permute.xlu1 %1210 }
 0x159   : > { %5153 = vmatmul.mubr.msk.bf16.gmra.mrb[20].mxu0 %vm2267_vm15, %v2238_v24  ;;  %v2044_v30 = vsel %vm2016_vm8, %v2011_v40, %v1211_v2 }
 0x15b   : > { %v1209_v5 = vpop.permute.xlu0 %1208 }
 0x15c   : > { %v1259_v7 = vpop.permute.xlu1 %1258  ;;  %v2042_v41 = vsel %vm2016_vm8, %v2009_v21, %v1209_v5 }
 0x15d   : > { %v2077_v10 = vsel %vm2049_vm9, %v2044_v30, %v1259_v7 }
 0x15f   : > { %v1257_v9 = vpop.permute.xlu0 %1256 }
 0x160   : > { %v1483_v37 = vpop.permute.xlu1 %1482  ;;  %v2075_v15 = vsel %vm2049_vm9, %v2042_v41, %v1257_v9 }
 0x161   : > { %v2110_v45 = vsel %vm2082_vm10, %v2077_v10, %v1483_v37 }
 0x163   : > { %v1481_v55 = vpop.permute.xlu0 %1480 }
 0x164   : > { %v1595_v12 = vpop.permute.xlu1 %1594  ;;  %v2108_v23 = vsel %vm2082_vm10, %v2075_v15, %v1481_v55 }
 0x165   : > { %v2143_v38 = vsel %vm2115_vm11, %v2110_v45, %v1595_v12 }
 0x167   : > { %v1593_v60 = vpop.permute.xlu0 %1592 }
 0x168   : > { %v1643_v14 = vpop.permute.xlu1 %1642  ;;  %v2141_v22 = vsel %vm2115_vm11, %v2108_v23, %v1593_v60 }
 0x169   : > { %v2176_v48 = vsel %vm2148_vm12, %v2143_v38, %v1643_v14 }
 0x16b   : > { %v1641_v25 = vpop.permute.xlu0 %1640 }
 0x16c   : > { %v1867_v59 = vpop.permute.xlu1 %1866  ;;  %v2174_v46 = vsel %vm2148_vm12, %v2141_v22, %v1641_v25 }
 0x16d   : > { %v2209_v18 = vsel %vm2181_vm14, %v2176_v48, %v1867_v59 }
 0x16f   : > { %v1865_v4 = vpop.permute.xlu0 %1864 }
 0x170   : > { %v1100_v53 = vpop.permute.xlu1 %1099  ;;  %v2207_v33 = vsel %vm2181_vm14, %v2174_v46, %v1865_v4 }
 0x171   : > { %v2013_v58 = vsel %vm694_vm2, %v5999_v57, %v1100_v53 }
 0x173   : > { %v1977_v35 = vpop.permute.xlu0 %1976 }
 0x174   : > { %v2240_v56 = vsel %vm2214_vm13, %v2207_v33, %v1977_v35  ;;  %v1102_v39 = vpop.permute.xlu1 %1101 }
 0x175   : > { %5156 = vmatprep.mubr.msk.bf16.mxu0 %vm2267_vm15, %v2240_v56  ;;  %v2015_v43 = vsel %vm694_vm2, %v6019_v13, %v1102_v39 }
 0x177   : > { %v1979_v17 = vpop.permute.xlu0 %1978 }
 0x178   : > { %v2242_v34 = vsel %vm2214_vm13, %v2209_v18, %v1979_v17  ;;  %v1215_v29 = vpop.permute.xlu1 %1214 }
 0x179   : > { %5157 = vmatmul.mubr.msk.bf16.gmra.mrb[24].mxu0 %vm2267_vm15, %v2242_v34  ;;  %v2048_v36 = vsel %vm2016_vm8, %v2015_v43, %v1215_v29 }
 0x17b   : > { %v1213_v16 = vpop.permute.xlu0 %1212 }
 0x17c   : > { %v1263_v8 = vpop.permute.xlu1 %1262  ;;  %v2046_v50 = vsel %vm2016_vm8, %v2013_v58, %v1213_v16 }
 0x17d   : > { %v2081_v1 = vsel %vm2049_vm9, %v2048_v36, %v1263_v8 }
 0x17f   : > { %v1261_v44 = vpop.permute.xlu0 %1260 }
 0x180   : > { %v1487_v20 = vpop.permute.xlu1 %1486  ;;  %v2079_v27 = vsel %vm2049_vm9, %v2046_v50, %v1261_v44 }
 0x181   : > { %v2114_v61 = vsel %vm2082_vm10, %v2081_v1, %v1487_v20 }
 0x183   : > { %v1485_v32 = vpop.permute.xlu0 %1484 }
 0x184   : > { %v1599_v47 = vpop.permute.xlu1 %1598  ;;  %v2112_v3 = vsel %vm2082_vm10, %v2079_v27, %v1485_v32 }
 0x185   : > { %v2147_v24 = vsel %vm2115_vm11, %v2114_v61, %v1599_v47 }
 0x187   : > { %v1597_v6 = vpop.permute.xlu0 %1596 }
 0x188   : > { %v1647_v26 = vpop.permute.xlu1 %1646  ;;  %v2145_v7 = vsel %vm2115_vm11, %v2112_v3, %v1597_v6 }
 0x189   : > { %v2180_v9 = vsel %vm2148_vm12, %v2147_v24, %v1647_v26 }
 0x18b   : > { %v1645_v49 = vpop.permute.xlu0 %1644 }
 0x18c   : > { %v5134_v51 = vpop.f32.mrb[0].mxu0  ;;  %v1871_v62 = vpop.permute.xlu1 %1870  ;;  %v2178_v55 = vsel %vm2148_vm12, %v2145_v7, %v1645_v49 }
 0x18d   : > { %v2472_v31 = vmul.f32 %v5134_v51, %v6220_v11  ;;  %v2338_v63 = vpop.f32.mrb[1].mxu0  ;;  %v2213_v12 = vsel %vm2181_vm14, %v2180_v9, %v1871_v62 }
 0x18e   : > { %v2470_v13 = vmul.f32 %v6220_v11, %v2338_v63  ;;  %v5135_v42 = vpop.f32.mrb[2].mxu0 }
 0x18f   : > { %v2509_v19 = vadd.f32 %v6227_v54, %v2472_v31  ;;  %v2473_v57 = vmul.f32 %v5135_v42, %v6220_v11  ;;  %v2341_v0 = vpop.f32.mrb[3].mxu0  ;;  %v1869_v52 = vpop.permute.xlu0 %1868 }
 0x190   : > { %v2507_v2 = vadd.f32 %v6227_v54, %v2470_v13  ;;  %v2471_v5 = vmul.f32 %v6220_v11, %v2341_v0  ;;  %v1983_v14 = vpop.permute.xlu1 %1982  ;;  %v2211_v41 = vsel %vm2181_vm14, %v2178_v55, %v1869_v52 }
 0x191   : > { %v2510_v37 = vadd.f32 %v6227_v54, %v2473_v57  ;;  %v2541_v25 = vmax.f32 %v2509_v19, 0.0  ;;  %v2246_v59 = vsel %vm2214_vm13, %v2213_v12, %v1983_v14 }
 0x192   : > { %v2508_v60 = vadd.f32 %v6227_v54, %v2471_v5  ;;  %v2539_v4 = vmax.f32 %v2507_v2, 0.0 }
 0x193   : > { %v2542_v21 = vmax.f32 %v2510_v37, 0.0  ;;  %v1981_v15 = vpop.permute.xlu0 %1980 }
 0x194   : > { %v2540_v23 = vmax.f32 %v2508_v60, 0.0  ;;  %v2244_v40 = vsel %vm2214_vm13, %v2211_v41, %v1981_v15 }
 0x195   : > { %v2572_v22 = vpack.c.bf16 %v2542_v21, %v2541_v25  ;;  %5160 = vmatprep.mubr.msk.bf16.mxu0 %vm2267_vm15, %v2244_v40 }
 0x196   : > { %v2571_v30 = vpack.c.bf16 %v2540_v23, %v2539_v4  ;;  %5161 = vmatmul.mubr.msk.bf16.gmra.mrb[28].mxu0 %vm2267_vm15, %v2246_v59 }
 0x197   : > { %v2591_v46 = vshrl.u32 %v2572_v22, 16  ;;  %v2656_v53 = vshll.u32 %v2572_v22, 16 }
 0x198   : > { %v2588_v10 = vshrl.u32 %v2571_v30, 16  ;;  %v2652_v33 = vshll.u32 %v2571_v30, 16 }
 0x199   : > { %v2655_v35 = vrot.slane %v2591_v46, 7  ;;  %v2748_v45 = vrot.slane %v2656_v53, 7 }
 0x19a   : > { %v2651_v56 = vrot.slane %v2588_v10, 7  ;;  %v2747_v38 = vrot.slane %v2652_v33, 7 }
 0x19b   : > { %v2658_v48 = vor.u32 %v2656_v53, %v2655_v35  ;;  %v2796_v39 = vsel %vm5386_vm4, %v2655_v35, %v2748_v45 }
 0x19c   : > { %2814 = vst.msk [vmem:[#allocation2 + $0x28] sm:$0x1] %vm696_vm3, %v2796_v39  ;;  %2844 = vst.msk [vmem:[#allocation2 + $0x8] sm:$0x1] %vm696_vm3, %v2796_v39  ;;  %v2654_v18 = vor.u32 %v2652_v33, %v2651_v56  ;;  %v2795_v17 = vsel %vm5386_vm4, %v2651_v56, %v2747_v38 }
 0x19d   : > { %v2780_v34 = vsel %vm5386_vm4, %v2591_v46, %v2658_v48  ;;  %2812 = vst.msk [vmem:[#allocation2 + $0x18] sm:$0x1] %vm696_vm3, %v2795_v17 }
 0x19e   : > { %2813 = vst.msk [vmem:[#allocation2 + $0x20] sm:$0xff] %vm694_vm2, %v2780_v34  ;;  %2843 = vst.msk [vmem:[#allocation2] sm:$0xff] %vm694_vm2, %v2780_v34  ;;  %v2779_v29 = vsel %vm5386_vm4, %v2588_v10, %v2654_v18 }
 0x19f   : > { %2811 = vst.msk [vmem:[#allocation2 + $0x10] sm:$0xff] %vm694_vm2, %v2779_v29 }
 0x1a3   : > { %v2912_v16 = vld [vmem:[#allocation2 + $0x28] sm:$0x1] }
 0x1a4   : > { %v3635_v20 = vrot.slane %v2912_v16, 1  ;;  %v6272_v43 = vld [vmem:[#allocation2 + $0x18] sm:$0x1]  ;;  %v6274_v51 = vld [vmem:[#allocation2 + $0x8] sm:$0x1]  ;;  %v3395_v62 = vshll.u32 %v2912_v16, 16 }
 0x1a5   : > { %v2896_v8 = vld [vmem:[#allocation2 + $0x20] sm:$0xff]  ;;  %v3251_v13 = vrot.slane %v6272_v43, 1  ;;  %v3248_v42 = vrot.slane %v6274_v51, 1  ;;  %v6280_v27 = vld [vmem:[#allocation2 + $0x28] sm:$0x1]  ;;  %v3011_v48 = vshll.u32 %v6272_v43, 16 }
 0x1a6   : > { %v2928_v44 = vld [vmem:[#allocation2 + $0x20] sm:$0xfe]  ;;  %3345 = vrot.lane.b32.xlu1 %v2896_v8, %s5320_s24  ;;  %v3390_v32 = vshll.u32 %v2896_v8, 16  ;;  %3727 = vrot.lane.b32.xlu0 %v2896_v8, %s5321_s25  ;;  %v2880_v6 = vld [vmem:[#allocation2 + $0x10] sm:$0xfe]  ;;  %v3388_v1 = vshrl.u32 %v2896_v8, 16 }
 0x1a7   : > { %v3634_v47 = vrot.slane %v2928_v44, 1  ;;  %v2879_v26 = vld [vmem:[#allocation2] sm:$0xfe]  ;;  %v2895_v36 = vld [vmem:[#allocation2 + $0x10] sm:$0xff]  ;;  %v3250_v31 = vrot.slane %v2880_v6, 1  ;;  %v4016_v37 = vrot.slane %v6280_v27, 1 }
 0x1a8   : > { %v3392_v58 = vrot.slane %v3390_v32, 1  ;;  %v3247_v63 = vrot.slane %v2879_v26, 1  ;;  %v2975_v50 = vld [vmem:[#allocation2 + $0x20] sm:$0xfe]  ;;  %v3378_v61 = vshll.u32 %v2895_v36, 16  ;;  %v3397_v21 = vrot.slane %v3395_v62, 1 }
 0x1a9   : > { %v3636_v49 = vsel %vm1135_vm5, %v3634_v47, %v3635_v20  ;;  %v4015_v57 = vrot.slane %v2975_v50, 1  ;;  %v2865_v0 = vld [vmem:[#allocation2 + $0x28] sm:$0x1]  ;;  %v3252_v2 = vsel %vm1135_vm5, %v3250_v31, %v3251_v13  ;;  %v2881_v55 = vld [vmem:[#allocation2 + $0x20] sm:$0xfe]  ;;  %v3376_v10 = vshrl.u32 %v2895_v36, 16 }
 0x1aa   : > { %3681 = vrot.lane.b32.xlu1 %v3636_v49, %s5323_s29  ;;  %3343 = vrot.lane.b32.xlu0 %v2895_v36, %s5320_s24  ;;  %v6282_v52 = vor.u32 %v3392_v58, %v3388_v1  ;;  %v3249_v5 = vsel %vm1135_vm5, %v3247_v63, %v3248_v42  ;;  %v6291_v12 = vld [vmem:[#allocation2] sm:$0xff]  ;;  %v3023_v41 = vshll.u32 %v2865_v0, 16  ;;  %v3380_v59 = vrot.slane %v3378_v61, 1  ;;  %v2927_v46 = vld [vmem:[#allocation2 + $0x10] sm:$0xfe] }
 0x1ab   : > { %v4017_v23 = vsel %vm1135_vm5, %v4015_v57, %v4016_v37  ;;  %v3253_v30 = vrot.slane %v2881_v55, 1  ;;  %v2994_v53 = vshll.u32 %v6291_v12, 16  ;;  %v3254_v35 = vrot.slane %v2865_v0, 1  ;;  %v2911_v39 = vld [vmem:[#allocation2 + $0x18] sm:$0x1] }
 0x1ac   : > { %v5138_v19 = vpop.f32.mrb[4].mxu0  ;;  %v3398_v22 = vsel %vm878_vm6, %v6282_v52, %v3397_v21  ;;  %v3025_v38 = vrot.slane %v3023_v41, 1  ;;  %v3381_v18 = vor.u32 %v3380_v59, %v3376_v10  ;;  %v3631_v29 = vrot.slane %v2927_v46, 1 }
 0x1ad   : > { %v2476_v3 = vmul.f32 %v5138_v19, %v6220_v11  ;;  %v2354_v24 = vpop.f32.mrb[5].mxu0  ;;  %v3255_v44 = vsel %vm1135_vm5, %v3253_v30, %v3254_v35  ;;  %v2996_v20 = vrot.slane %v2994_v53, 1  ;;  %v3632_v47 = vrot.slane %v2911_v39, 1  ;;  %v5256_v30 = vld [vmem:[%s7291_s3 + $0x8] sm:$0xff]  }
 0x1ae   : > { %v2474_v7 = vmul.f32 %v6220_v11, %v2354_v24  ;;  %3297 = vrot.lane.b32.xlu1 %v3252_v2, %s5322_s26  ;;  %v5139_v9 = vpop.f32.mrb[6].mxu0  ;;  %3295 = vrot.lane.b32.xlu0 %v3249_v5, %s5322_s26  ;;  %v3026_v8 = vsel %vm878_vm6, %v6282_v52, %v3025_v38  ;;  %v2992_v6 = vshrl.u32 %v6291_v12, 16  ;;  %v3013_v43 = vrot.slane %v3011_v48, 1 }
 0x1af   : > { %v2513_v60 = vadd.f32 %v6227_v54, %v2476_v3  ;;  %v2477_v14 = vmul.f32 %v5139_v9, %v6220_v11  ;;  %v2357_v25 = vpop.f32.mrb[7].mxu0  ;;  %v2999_v58 = vshll.u32 %v6274_v51, 16  ;;  %v3633_v63 = vsel %vm1135_vm5, %v3631_v29, %v3632_v47 }
 0x1b0   : > { %v2511_v15 = vadd.f32 %v6227_v54, %v2474_v7  ;;  %v2475_v4 = vmul.f32 %v6220_v11, %v2357_v25  ;;  %v3014_v13 = vsel %vm878_vm6, %v3381_v18, %v3013_v43  ;;  %v2997_v42 = vor.u32 %v2996_v20, %v2992_v6 }
 0x1b1   : > { %v2514_v40 = vadd.f32 %v6227_v54, %v2477_v14  ;;  %v2545_v45 = vmax.f32 %v2513_v60, 0.0  ;;  %v3001_v51 = vrot.slane %v2999_v58, 1  ;;  %v3767_v0 = vshll.u32 %v6280_v27, 16 }
 0x1b2   : > { %v2512_v33 = vadd.f32 %v6227_v54, %v2475_v4  ;;  %3569 = vrot.lane.b32.xlu1 %v3398_v22, %s5326_s9  ;;  %4063 = vrot.lane.b32.xlu0 %v4017_v23, %s5324_s7  ;;  %v2543_v17 = vmax.f32 %v2511_v15, 0.0  ;;  %v3383_v9 = vshll.u32 %v2911_v39, 16  ;;  %v5255_v23 = vld [vmem:[%s7291_s3] sm:$0xff]  }
 0x1b3   : > { %v2546_v56 = vmax.f32 %v2514_v40, 0.0  ;;  %v3002_v5 = vsel %vm878_vm6, %v2997_v42, %v3001_v51  ;;  %v3769_v27 = vrot.slane %v3767_v0, 1  ;;  %5164 = vmatprep.subr.bf16.mxu1 %v5255_v23 }
 0x1b4   : > { %v2544_v34 = vmax.f32 %v2512_v33, 0.0  ;;  %v3385_v55 = vrot.slane %v3383_v9, 1  ;;  %5165 = vmatpush3.bf16.msra.mxu1 %v5255_v23 }
 0x1b5   : > { %v2574_v16 = vpack.c.bf16 %v2546_v56, %v2545_v45  ;;  %v3770_v37 = vsel %vm878_vm6, %v6282_v52, %v3769_v27  ;;  %5166 = vmatprep.subr.bf16.mxu1 %v5256_v30 }
 0x1b6   : > { %v2573_v32 = vpack.c.bf16 %v2544_v34, %v2543_v17  ;;  %3187 = vrot.lane.b32.xlu1 %v3026_v8, %s5325_s8  ;;  %3299 = vrot.lane.b32.xlu0 %v3255_v44, %s5322_s26  ;;  %v3386_v14 = vsel %vm878_vm6, %v3381_v18, %v3385_v55 }
 0x1b7   : > { %v2597_v26 = vshrl.u32 %v2574_v16, 16  ;;  %v2664_v49 = vshll.u32 %v2574_v16, 16 }
 0x1b8   : > { %v2594_v36 = vshrl.u32 %v2573_v32, 16  ;;  %v2660_v31 = vshll.u32 %v2573_v32, 16  ;;  %5167 = vmatpush3.bf16.msra.mxu1 %v5256_v30 }
 0x1b9   : > { %v2663_v50 = vrot.slane %v2597_v26, 7  ;;  %v2750_v1 = vrot.slane %v2664_v49, 7 }
 0x1ba   : > { %v2659_v62 = vrot.slane %v2594_v36, 7  ;;  %v2749_v61 = vrot.slane %v2660_v31, 7  ;;  %3185 = vrot.lane.b32.xlu1 %v3014_v13, %s5325_s8  ;;  %3679 = vrot.lane.b32.xlu0 %v3633_v63, %s5323_s29 }
 0x1bb   : > { %v2666_v19 = vor.u32 %v2664_v49, %v2663_v50  ;;  %v2798_v57 = vsel %vm5386_vm4, %v2663_v50, %v2750_v1 }
 0x1bc   : > { %2818 = vst.msk [vmem:[#allocation2 + $0x48] sm:$0x1] %vm696_vm3, %v2798_v57  ;;  %v2662_v3 = vor.u32 %v2660_v31, %v2659_v62  ;;  %v2797_v24 = vsel %vm5386_vm4, %v2659_v62, %v2749_v61 }
 0x1bd   : > { %v2782_v2 = vsel %vm5386_vm4, %v2597_v26, %v2666_v19  ;;  %2816 = vst.msk [vmem:[#allocation2 + $0x38] sm:$0x1] %vm696_vm3, %v2797_v24 }
 0x1be   : > { %2817 = vst.msk [vmem:[#allocation2 + $0x40] sm:$0xff] %vm694_vm2, %v2782_v2  ;;  %v2781_v7 = vsel %vm5386_vm4, %v2594_v36, %v2662_v3  ;;  %3183 = vrot.lane.b32.xlu0 %v3002_v5, %s5325_s8 }
 0x1bf   : > { %2815 = vst.msk [vmem:[#allocation2 + $0x30] sm:$0xff] %vm694_vm2, %v2781_v7 }
 0x1c2   : > { %3951 = vrot.lane.b32.xlu0 %v3770_v37, %s5327_s10 }
 0x1c3   : > { %v2914_v21 = vld [vmem:[#allocation2 + $0x48] sm:$0x1] }
 0x1c4   : > { %v3641_v40 = vrot.slane %v2914_v21, 1  ;;  %v6346_v22 = vld [vmem:[#allocation2 + $0x48] sm:$0x1]  ;;  %v6351_v53 = vld [vmem:[#allocation2 + $0x38] sm:$0x1]  ;;  %v3419_v34 = vshll.u32 %v2914_v21, 16 }
 0x1c5   : > { %v2898_v60 = vld [vmem:[#allocation2 + $0x40] sm:$0xff]  ;;  %v4022_v17 = vrot.slane %v6346_v22, 1  ;;  %v3257_v20 = vrot.slane %v6351_v53, 1  ;;  %v2867_v32 = vld [vmem:[#allocation2 + $0x48] sm:$0x1] }
 0x1c6   : > { %3349 = vrot.lane.b32.xlu1 %v2898_v60, %s5320_s24  ;;  %3567 = vrot.lane.b32.xlu0 %v3386_v14, %s5326_s9  ;;  %v2930_v25 = vld [vmem:[#allocation2 + $0x40] sm:$0xfe]  ;;  %v3414_v41 = vshll.u32 %v2898_v60, 16  ;;  %v6338_v59 = vld [vmem:[#allocation2 + $0x30] sm:$0xff]  ;;  %v3412_v29 = vshrl.u32 %v2898_v60, 16  ;;  %v3260_v50 = vrot.slane %v2867_v32, 1 }
 0x1c7   : > { %v3640_v15 = vrot.slane %v2930_v25, 1  ;;  %v2882_v4 = vld [vmem:[#allocation2 + $0x30] sm:$0xfe]  ;;  %v2977_v52 = vld [vmem:[#allocation2 + $0x40] sm:$0xfe]  ;;  %v3774_v47 = vshll.u32 %v6338_v59, 16 }
 0x1c8   : > { %v3256_v10 = vrot.slane %v2882_v4, 1  ;;  %v3416_v33 = vrot.slane %v3414_v41, 1  ;;  %v4021_v38 = vrot.slane %v2977_v52, 1  ;;  %v2883_v48 = vld [vmem:[#allocation2 + $0x40] sm:$0xfe]  ;;  %v3421_v62 = vrot.slane %v3419_v34, 1 }
 0x1c9   : > { %v3642_v56 = vsel %vm1135_vm5, %v3640_v15, %v3641_v40  ;;  %v3259_v49 = vrot.slane %v2883_v48, 1  ;;  %v2976_v1 = vld [vmem:[#allocation2 + $0x30] sm:$0xfe]  ;;  %v3047_v61 = vshll.u32 %v2867_v32, 16  ;;  %v2960_v19 = vld [vmem:[#allocation2 + $0x38] sm:$0x1] }
 0x1ca   : > { %3729 = vrot.lane.b32.xlu1 %v6338_v59, %s5321_s25  ;;  %3731 = vrot.lane.b32.xlu0 %v2898_v60, %s5321_s25  ;;  %v6366_v43 = vor.u32 %v3416_v33, %v3412_v29  ;;  %v3258_v36 = vsel %vm1135_vm5, %v3256_v10, %v3257_v20  ;;  %v4023_v31 = vsel %vm1135_vm5, %v4021_v38, %v4022_v17  ;;  %v3776_v57 = vrot.slane %v3774_v47, 1  ;;  %v2929_v7 = vld [vmem:[#allocation2 + $0x30] sm:$0xfe]  ;;  %v2913_v21 = vld [vmem:[#allocation2 + $0x38] sm:$0x1] }
 0x1cb   : > { %v3261_v2 = vsel %vm1135_vm5, %v3259_v49, %v3260_v50  ;;  %v4018_v5 = vrot.slane %v2976_v1, 1  ;;  %v3772_v27 = vshrl.u32 %v6338_v59, 16  ;;  %v4019_v37 = vrot.slane %v2960_v19, 1 }
 0x1cc   : > { %v5142_v46 = vpop.f32.mrb[8].mxu0  ;;  %v3422_v24 = vsel %vm878_vm6, %v6366_v43, %v3421_v62  ;;  %v3049_v14 = vrot.slane %v3047_v61, 1  ;;  %v3779_v25 = vshll.u32 %v2960_v19, 16  ;;  %v3637_v52 = vrot.slane %v2929_v7, 1 }
 0x1cd   : > { %v2480_v35 = vmul.f32 %v5142_v46, %v6220_v11  ;;  %v2370_v45 = vpop.f32.mrb[9].mxu0  ;;  %v3777_v41 = vor.u32 %v3776_v57, %v3772_v27  ;;  %v4020_v30 = vsel %vm1135_vm5, %v4018_v5, %v4019_v37  ;;  %v3638_v33 = vrot.slane %v2913_v21, 1 }
 0x1ce   : > { %v2478_v39 = vmul.f32 %v6220_v11, %v2370_v45  ;;  %3685 = vrot.lane.b32.xlu1 %v3642_v56, %s5323_s29  ;;  %v5143_v18 = vpop.f32.mrb[10].mxu0  ;;  %3347 = vrot.lane.b32.xlu0 %v6338_v59, %s5320_s24  ;;  %v3050_v59 = vsel %vm878_vm6, %v6366_v43, %v3049_v14  ;;  %v3781_v38 = vrot.slane %v3779_v25, 1  ;;  %v3791_v48 = vshll.u32 %v6346_v22, 16 }
 0x1cf   : > { %v2517_v16 = vadd.f32 %v6227_v54, %v2480_v35  ;;  %v2481_v8 = vmul.f32 %v5143_v18, %v6220_v11  ;;  %v2373_v44 = vpop.f32.mrb[11].mxu0  ;;  %v3035_v35 = vshll.u32 %v6351_v53, 16  ;;  %v3639_v29 = vsel %vm1135_vm5, %v3637_v52, %v3638_v33 }
 0x1d0   : > { %v2515_v6 = vadd.f32 %v6227_v54, %v2478_v39  ;;  %v2479_v26 = vmul.f32 %v6220_v11, %v2373_v44  ;;  %v5257_v39 = vld [vmem:[%s7291_s3 + $0x10] ss:$0 sps:$4 sm:$0x33]   ;;  %v3782_v34 = vsel %vm878_vm6, %v3777_v41, %v3781_v38  ;;  %v3793_v44 = vrot.slane %v3791_v48, 1 }
 0x1d1   : > { %v2518_v58 = vadd.f32 %v6227_v54, %v2481_v8  ;;  %v2549_v13 = vmax.f32 %v2517_v16, 0.0  ;;  %5203 = vmatprep.subr.msk.bf16.mxu1 %vm2300_vm7, %v5257_v39  ;;  %v4404_v22 = vsel %vm2300_vm7, %v5257_v39, 0  ;;  %v3037_v8 = vrot.slane %v3035_v35, 1 }
 0x1d2   : > { %v2516_v63 = vadd.f32 %v6227_v54, %v2479_v26  ;;  %3301 = vrot.lane.b32.xlu1 %v3258_v36, %s5322_s26  ;;  %4067 = vrot.lane.b32.xlu0 %v4023_v31, %s5324_s7  ;;  %v2547_v51 = vmax.f32 %v2515_v6, 0.0  ;;  %v3407_v20 = vshll.u32 %v2913_v21, 16  ;;  %v3794_v47 = vsel %vm878_vm6, %v6366_v43, %v3793_v44 }
 0x1d3   : > { %v2550_v42 = vmax.f32 %v2518_v58, 0.0  ;;  %5169 = vmatpush3.bf16.msra.mxu1 %v4404_v22  ;;  %v3038_v32 = vsel %vm878_vm6, %v3777_v41, %v3037_v8 }
 0x1d4   : > { %v2548_v0 = vmax.f32 %v2516_v63, 0.0  ;;  %v3409_v6 = vrot.slane %v3407_v20, 1 }
 0x1d5   : > { %v2576_v3 = vpack.c.bf16 %v2550_v42, %v2549_v13 }
 0x1d6   : > { %v2575_v9 = vpack.c.bf16 %v2548_v0, %v2547_v51  ;;  %3573 = vrot.lane.b32.xlu1 %v3422_v24, %s5326_s9  ;;  %3303 = vrot.lane.b32.xlu0 %v3261_v2, %s5322_s26  ;;  %v3410_v49 = vsel %vm878_vm6, %v3777_v41, %v3409_v6 }
 0x1d7   : > { %v2603_v55 = vshrl.u32 %v2576_v3, 16  ;;  %v2672_v60 = vshll.u32 %v2576_v3, 16 }
 0x1d8   : > { %v2600_v15 = vshrl.u32 %v2575_v9, 16  ;;  %v2668_v4 = vshll.u32 %v2575_v9, 16 }
 0x1d9   : > { %v2671_v23 = vrot.slane %v2603_v55, 7  ;;  %v2752_v40 = vrot.slane %v2672_v60, 7 }
 0x1da   : > { %v2667_v46 = vrot.slane %v2600_v15, 7  ;;  %v2751_v10 = vrot.slane %v2668_v4, 7  ;;  %3191 = vrot.lane.b32.xlu1 %v3050_v59, %s5325_s8  ;;  %4065 = vrot.lane.b32.xlu0 %v4020_v30, %s5324_s7 }
 0x1db   : > { %v2674_v45 = vor.u32 %v2672_v60, %v2671_v23  ;;  %v2800_v56 = vsel %vm5386_vm4, %v2671_v23, %v2752_v40 }
 0x1dc   : > { %2822 = vst.msk [vmem:[#allocation2 + $0x68] sm:$0x1] %vm696_vm3, %v2800_v56  ;;  %v2670_v18 = vor.u32 %v2668_v4, %v2667_v46  ;;  %v2799_v17 = vsel %vm5386_vm4, %v2667_v46, %v2751_v10 }
 0x1dd   : > { %v2784_v53 = vsel %vm5386_vm4, %v2603_v55, %v2674_v45  ;;  %2820 = vst.msk [vmem:[#allocation2 + $0x58] sm:$0x1] %vm696_vm3, %v2799_v17 }
 0x1de   : > { %2821 = vst.msk [vmem:[#allocation2 + $0x60] sm:$0xff] %vm694_vm2, %v2784_v53  ;;  %v2783_v16 = vsel %vm5386_vm4, %v2600_v15, %v2670_v18  ;;  %3953 = vrot.lane.b32.xlu1 %v3782_v34, %s5327_s10  ;;  %3683 = vrot.lane.b32.xlu0 %v3639_v29, %s5323_s29 }
 0x1df   : > { %2819 = vst.msk [vmem:[#allocation2 + $0x50] sm:$0xff] %vm694_vm2, %v2783_v16 }
 0x1e2   : > { %3189 = vrot.lane.b32.xlu1 %v3038_v32, %s5325_s8  ;;  %3955 = vrot.lane.b32.xlu0 %v3794_v47, %s5327_s10 }
 0x1e3   : > { %v2916_v36 = vld [vmem:[#allocation2 + $0x68] sm:$0x1] }
 0x1e4   : > { %v3647_v13 = vrot.slane %v2916_v36, 1  ;;  %v6421_v42 = vld [vmem:[#allocation2 + $0x68] sm:$0x1]  ;;  %v6423_v61 = vld [vmem:[#allocation2 + $0x58] sm:$0x1]  ;;  %v3443_v9 = vshll.u32 %v2916_v36, 16 }
 0x1e5   : > { %v2900_v26 = vld [vmem:[#allocation2 + $0x60] sm:$0xff]  ;;  %v4028_v27 = vrot.slane %v6421_v42, 1  ;;  %v3263_v25 = vrot.slane %v6423_v61, 1  ;;  %v2869_v21 = vld [vmem:[#allocation2 + $0x68] sm:$0x1] }
 0x1e6   : > { %3353 = vrot.lane.b32.xlu1 %v2900_v26, %s5320_s24  ;;  %3571 = vrot.lane.b32.xlu0 %v3410_v49, %s5326_s9  ;;  %v2932_v58 = vld [vmem:[#allocation2 + $0x60] sm:$0xfe]  ;;  %v3438_v31 = vshll.u32 %v2900_v26, 16  ;;  %v6416_v63 = vld [vmem:[#allocation2 + $0x50] sm:$0xff]  ;;  %v3436_v37 = vshrl.u32 %v2900_v26, 16  ;;  %v3266_v10 = vrot.slane %v2869_v21, 1 }
 0x1e7   : > { %v3646_v50 = vrot.slane %v2932_v58, 1  ;;  %v2884_v1 = vld [vmem:[#allocation2 + $0x50] sm:$0xfe]  ;;  %v2979_v43 = vld [vmem:[#allocation2 + $0x60] sm:$0xfe]  ;;  %v3798_v41 = vshll.u32 %v6416_v63, 16 }
 0x1e8   : > { %v3262_v19 = vrot.slane %v2884_v1, 1  ;;  %v3440_v57 = vrot.slane %v3438_v31, 1  ;;  %v4027_v24 = vrot.slane %v2979_v43, 1  ;;  %v2885_v2 = vld [vmem:[#allocation2 + $0x60] sm:$0xfe]  ;;  %v3445_v56 = vrot.slane %v3443_v9, 1 }
 0x1e9   : > { %v3648_v3 = vsel %vm1135_vm5, %v3646_v50, %v3647_v13  ;;  %v3265_v52 = vrot.slane %v2885_v2, 1  ;;  %v2978_v33 = vld [vmem:[#allocation2 + $0x50] sm:$0xfe]  ;;  %v3071_v38 = vshll.u32 %v2869_v21, 16  ;;  %v2962_v48 = vld [vmem:[#allocation2 + $0x58] sm:$0x1] }
 0x1ea   : > { %3733 = vrot.lane.b32.xlu1 %v6416_v63, %s5321_s25  ;;  %3735 = vrot.lane.b32.xlu0 %v2900_v26, %s5321_s25  ;;  %v6438_v23 = vor.u32 %v3440_v57, %v3436_v37  ;;  %v3264_v59 = vsel %vm1135_vm5, %v3262_v19, %v3263_v25  ;;  %v4029_v30 = vsel %vm1135_vm5, %v4027_v24, %v4028_v27  ;;  %v3800_v39 = vrot.slane %v3798_v41, 1  ;;  %v2931_v16 = vld [vmem:[#allocation2 + $0x50] sm:$0xfe]  ;;  %v2915_v49 = vld [vmem:[#allocation2 + $0x58] sm:$0x1] }
 0x1eb   : > { %v3267_v29 = vsel %vm1135_vm5, %v3265_v52, %v3266_v10  ;;  %v4024_v22 = vrot.slane %v2978_v33, 1  ;;  %v3796_v8 = vshrl.u32 %v6416_v63, 16  ;;  %v4025_v20 = vrot.slane %v2962_v48, 1 }
 0x1ec   : > { %v5146_v62 = vpop.f32.mrb[12].mxu0  ;;  %v3446_v34 = vsel %vm878_vm6, %v6438_v23, %v3445_v56  ;;  %v3073_v6 = vrot.slane %v3071_v38, 1  ;;  %v3803_v26 = vshll.u32 %v2962_v48, 16  ;;  %v3643_v50 = vrot.slane %v2931_v16, 1 }
 0x1ed   : > { %v2484_v51 = vmul.f32 %v5146_v62, %v6220_v11  ;;  %v2386_v0 = vpop.f32.mrb[13].mxu0  ;;  %v3801_v58 = vor.u32 %v3800_v39, %v3796_v8  ;;  %v4026_v13 = vsel %vm1135_vm5, %v4024_v22, %v4025_v20  ;;  %v3644_v57 = vrot.slane %v2915_v49, 1 }
 0x1ee   : > { %v2482_v5 = vmul.f32 %v6220_v11, %v2386_v0  ;;  %3689 = vrot.lane.b32.xlu1 %v3648_v3, %s5323_s29  ;;  %v5147_v7 = vpop.f32.mrb[14].mxu0  ;;  %3351 = vrot.lane.b32.xlu0 %v6416_v63, %s5320_s24  ;;  %v3074_v63 = vsel %vm878_vm6, %v6438_v23, %v3073_v6  ;;  %v3805_v24 = vrot.slane %v3803_v26, 1  ;;  %v3815_v2 = vshll.u32 %v6421_v42, 16 }
 0x1ef   : > { %v2521_v55 = vadd.f32 %v6227_v54, %v2484_v51  ;;  %v2485_v60 = vmul.f32 %v5147_v7, %v6220_v11  ;;  %v2389_v14 = vpop.f32.mrb[15].mxu0  ;;  %v3059_v51 = vshll.u32 %v6423_v61, 16  ;;  %v3645_v9 = vsel %vm1135_vm5, %v3643_v50, %v3644_v57 }
 0x1f0   : > { %v2519_v15 = vadd.f32 %v6227_v54, %v2482_v5  ;;  %v2483_v4 = vmul.f32 %v6220_v11, %v2389_v14  ;;  %v3806_v61 = vsel %vm878_vm6, %v3801_v58, %v3805_v24 }
 0x1f1   : > { %v2522_v40 = vadd.f32 %v6227_v54, %v2485_v60  ;;  %v2553_v35 = vmax.f32 %v2521_v55, 0.0  ;;  %v3061_v37 = vrot.slane %v3059_v51, 1  ;;  %v3817_v55 = vrot.slane %v3815_v2, 1 }
 0x1f2   : > { %v2520_v46 = vadd.f32 %v6227_v54, %v2483_v4  ;;  %3305 = vrot.lane.b32.xlu1 %v3264_v59, %s5322_s26  ;;  %4071 = vrot.lane.b32.xlu0 %v4029_v30, %s5324_s7  ;;  %v2551_v18 = vmax.f32 %v2519_v15, 0.0  ;;  %v3431_v60 = vshll.u32 %v2915_v49, 16 }
 0x1f3   : > { %v2554_v45 = vmax.f32 %v2522_v40, 0.0  ;;  %v3062_v14 = vsel %vm878_vm6, %v3801_v58, %v3061_v37  ;;  %v3818_v25 = vsel %vm878_vm6, %v6438_v23, %v3817_v55 }
 0x1f4   : > { %v2552_v17 = vmax.f32 %v2520_v46, 0.0  ;;  %v3433_v21 = vrot.slane %v3431_v60, 1 }
 0x1f5   : > { %v2578_v53 = vpack.c.bf16 %v2554_v45, %v2553_v35 }
 0x1f6   : > { %v2577_v44 = vpack.c.bf16 %v2552_v17, %v2551_v18  ;;  %3577 = vrot.lane.b32.xlu1 %v3446_v34, %s5326_s9  ;;  %3307 = vrot.lane.b32.xlu0 %v3267_v29, %s5322_s26  ;;  %v3434_v15 = vsel %vm878_vm6, %v3801_v58, %v3433_v21 }
 0x1f7   : > { %v2609_v32 = vshrl.u32 %v2578_v53, 16  ;;  %v2680_v47 = vshll.u32 %v2578_v53, 16 }
 0x1f8   : > { %v2606_v36 = vshrl.u32 %v2577_v44, 16  ;;  %v2676_v31 = vshll.u32 %v2577_v44, 16 }
 0x1f9   : > { %v2679_v1 = vrot.slane %v2609_v32, 7  ;;  %v2754_v43 = vrot.slane %v2680_v47, 7 }
 0x1fa   : > { %v2675_v62 = vrot.slane %v2606_v36, 7  ;;  %v2753_v19 = vrot.slane %v2676_v31, 7  ;;  %3195 = vrot.lane.b32.xlu1 %v3074_v63, %s5325_s8  ;;  %4069 = vrot.lane.b32.xlu0 %v4026_v13, %s5324_s7 }
 0x1fb   : > { %v2682_v0 = vor.u32 %v2680_v47, %v2679_v1  ;;  %v2802_v3 = vsel %vm5386_vm4, %v2679_v1, %v2754_v43 }
 0x1fc   : > { %2826 = vst.msk [vmem:[#allocation2 + $0x88] sm:$0x1] %vm696_vm3, %v2802_v3  ;;  %v2678_v5 = vor.u32 %v2676_v31, %v2675_v62  ;;  %v2801_v7 = vsel %vm5386_vm4, %v2675_v62, %v2753_v19 }
 0x1fd   : > { %v2786_v27 = vsel %vm5386_vm4, %v2609_v32, %v2682_v0  ;;  %2824 = vst.msk [vmem:[#allocation2 + $0x78] sm:$0x1] %vm696_vm3, %v2801_v7 }
 0x1fe   : > { %2825 = vst.msk [vmem:[#allocation2 + $0x80] sm:$0xff] %vm694_vm2, %v2786_v27  ;;  %v2785_v42 = vsel %vm5386_vm4, %v2606_v36, %v2678_v5  ;;  %3957 = vrot.lane.b32.xlu1 %v3806_v61, %s5327_s10  ;;  %3687 = vrot.lane.b32.xlu0 %v3645_v9, %s5323_s29 }
 0x1ff   : > { %2823 = vst.msk [vmem:[#allocation2 + $0x70] sm:$0xff] %vm694_vm2, %v2785_v42 }
 0x202   : > { %3193 = vrot.lane.b32.xlu1 %v3062_v14, %s5325_s8  ;;  %3959 = vrot.lane.b32.xlu0 %v3818_v25, %s5327_s10 }
 0x203   : > { %v2918_v52 = vld [vmem:[#allocation2 + $0x88] sm:$0x1] }
 0x204   : > { %v3653_v10 = vrot.slane %v2918_v52, 1  ;;  %v6488_v33 = vld [vmem:[#allocation2 + $0x88] sm:$0x1]  ;;  %v6490_v45 = vld [vmem:[#allocation2 + $0x78] sm:$0x1]  ;;  %v3467_v16 = vshll.u32 %v2918_v52, 16 }
 0x205   : > { %v2902_v41 = vld [vmem:[#allocation2 + $0x80] sm:$0xff]  ;;  %v4034_v22 = vrot.slane %v6488_v33, 1  ;;  %v3269_v47 = vrot.slane %v6490_v45, 1  ;;  %v2871_v6 = vld [vmem:[#allocation2 + $0x88] sm:$0x1] }
 0x206   : > { %3357 = vrot.lane.b32.xlu1 %v2902_v41, %s5320_s24  ;;  %3575 = vrot.lane.b32.xlu0 %v3434_v15, %s5326_s9  ;;  %v2934_v4 = vld [vmem:[#allocation2 + $0x80] sm:$0xfe]  ;;  %v3462_v40 = vshll.u32 %v2902_v41, 16  ;;  %v6483_v59 = vld [vmem:[#allocation2 + $0x70] sm:$0xff]  ;;  %v3460_v8 = vshrl.u32 %v2902_v41, 16  ;;  %v3272_v13 = vrot.slane %v2871_v6, 1 }
 0x207   : > { %v3652_v30 = vrot.slane %v2934_v4, 1  ;;  %v2886_v46 = vld [vmem:[#allocation2 + $0x70] sm:$0xfe]  ;;  %v2981_v23 = vld [vmem:[#allocation2 + $0x80] sm:$0xfe]  ;;  %v3822_v26 = vshll.u32 %v6483_v59, 16 }
 0x208   : > { %v3268_v56 = vrot.slane %v2886_v46, 1  ;;  %v3464_v38 = vrot.slane %v3462_v40, 1  ;;  %v4033_v17 = vrot.slane %v2981_v23, 1  ;;  %v2887_v53 = vld [vmem:[#allocation2 + $0x80] sm:$0xfe]  ;;  %v3095_v51 = vshll.u32 %v2871_v6, 16 }
 0x209   : > { %v3654_v18 = vsel %vm1135_vm5, %v3652_v30, %v3653_v10  ;;  %v3271_v36 = vrot.slane %v2887_v53, 1  ;;  %v2980_v62 = vld [vmem:[#allocation2 + $0x70] sm:$0xfe]  ;;  %v2964_v0 = vld [vmem:[#allocation2 + $0x78] sm:$0x1]  ;;  %v3824_v3 = vrot.slane %v3822_v26, 1 }
 0x20a   : > { %3737 = vrot.lane.b32.xlu1 %v6483_v59, %s5321_s25  ;;  %3739 = vrot.lane.b32.xlu0 %v2902_v41, %s5321_s25  ;;  %v6505_v31 = vor.u32 %v3464_v38, %v3460_v8  ;;  %v3270_v1 = vsel %vm1135_vm5, %v3268_v56, %v3269_v47  ;;  %v4035_v43 = vsel %vm1135_vm5, %v4033_v17, %v4034_v22  ;;  %v4030_v27 = vrot.slane %v2980_v62, 1  ;;  %v2933_v61 = vld [vmem:[#allocation2 + $0x70] sm:$0xfe]  ;;  %v2917_v21 = vld [vmem:[#allocation2 + $0x78] sm:$0x1] }
 0x20b   : > { %v3820_v9 = vshrl.u32 %v6483_v59, 16  ;;  %v4031_v37 = vrot.slane %v2964_v0, 1  ;;  %v3097_v14 = vrot.slane %v3095_v51, 1  ;;  %v3827_v25 = vshll.u32 %v2964_v0, 16 }
 0x20c   : > { %v5150_v35 = vpop.f32.mrb[16].mxu0  ;;  %v3649_v30 = vrot.slane %v2933_v61, 1  ;;  %v3650_v38 = vrot.slane %v2917_v21, 1  ;;  %v3839_v53 = vshll.u32 %v6488_v33, 16  ;;  %v3455_v47 = vshll.u32 %v2917_v21, 16 }
 0x20d   : > { %v2488_v48 = vmul.f32 %v5150_v35, %v6220_v11  ;;  %v2402_v39 = vpop.f32.mrb[17].mxu0  ;;  %v3825_v41 = vor.u32 %v3824_v3, %v3820_v9  ;;  %v3098_v23 = vsel %vm878_vm6, %v6505_v31, %v3097_v14  ;;  %v4032_v10 = vsel %vm1135_vm5, %v4030_v27, %v4031_v37  ;;  %v6581_v61 = vld [vmem:[%s7290_s2] ss:$0 sm:$0xff] }
 0x20e   : > { %v2486_v34 = vmul.f32 %v6220_v11, %v2402_v39  ;;  %3693 = vrot.lane.b32.xlu1 %v3654_v18, %s5323_s29  ;;  %v5151_v29 = vpop.f32.mrb[18].mxu0  ;;  %3355 = vrot.lane.b32.xlu0 %v6483_v59, %s5320_s24  ;;  %v3829_v17 = vrot.slane %v3827_v25, 1 }
 0x20f   : > { %v2525_v44 = vadd.f32 %v6227_v54, %v2488_v48  ;;  %v2489_v20 = vmul.f32 %v5151_v29, %v6220_v11  ;;  %v2405_v32 = vpop.f32.mrb[19].mxu0  ;;  %v3083_v48 = vshll.u32 %v6490_v45, 16 }
 0x210   : > { %v2523_v49 = vadd.f32 %v6227_v54, %v2486_v34  ;;  %v2487_v58 = vmul.f32 %v6220_v11, %v2405_v32  ;;  %v3469_v11 = vrot.slane %v3467_v16, 1  ;;  %v3830_v8 = vsel %vm878_vm6, %v3825_v41, %v3829_v17 }
 0x211   : > { %v2526_v50 = vadd.f32 %v6227_v54, %v2489_v20  ;;  %v2557_v19 = vmax.f32 %v2525_v44, 0.0  ;;  %v3651_v44 = vsel %vm1135_vm5, %v3649_v30, %v3650_v38  ;;  %v3085_v20 = vrot.slane %v3083_v48, 1 }
 0x212   : > { %v2524_v63 = vadd.f32 %v6227_v54, %v2487_v58  ;;  %3309 = vrot.lane.b32.xlu1 %v3270_v1, %s5322_s26  ;;  %4075 = vrot.lane.b32.xlu0 %v4035_v43, %s5324_s7  ;;  %v2555_v24 = vmax.f32 %v2523_v49, 0.0  ;;  %v3470_v7 = vsel %vm878_vm6, %v6505_v31, %v3469_v11  ;;  %v3273_v54 = vsel %vm1135_vm5, %v3271_v36, %v3272_v13 }
 0x213   : > { %v2558_v57 = vmax.f32 %v2526_v50, 0.0  ;;  %v3841_v32 = vrot.slane %v3839_v53, 1  ;;  %v3086_v26 = vsel %vm878_vm6, %v3825_v41, %v3085_v20  ;;  %v3457_v36 = vrot.slane %v3455_v47, 1 }
 0x214   : > { %v2556_v2 = vmax.f32 %v2524_v63, 0.0 }
 0x215   : > { %v2580_v5 = vpack.c.bf16 %v2558_v57, %v2557_v19  ;;  %v3842_v49 = vsel %vm878_vm6, %v6505_v31, %v3841_v32  ;;  %v3458_v43 = vsel %vm878_vm6, %v3825_v41, %v3457_v36 }
 0x216   : > { %v2579_v42 = vpack.c.bf16 %v2556_v2, %v2555_v24  ;;  %3581 = vrot.lane.b32.xlu1 %v3470_v7, %s5326_s9  ;;  %3311 = vrot.lane.b32.xlu0 %v3273_v54, %s5322_s26 }
 0x217   : > { %v2615_v55 = vshrl.u32 %v2580_v5, 16  ;;  %v2688_v60 = vshll.u32 %v2580_v5, 16 }
 0x218   : > { %v2612_v15 = vshrl.u32 %v2579_v42, 16  ;;  %v2684_v4 = vshll.u32 %v2579_v42, 16  ;;  %v6519_v52 = vpop.permute.xlu1 %3345  ;;  %v6521_v40 = vpop.permute.xlu0 %3727 }
 0x219   : > { %v2687_v59 = vrot.slane %v2615_v55, 7  ;;  %v2756_v46 = vrot.slane %v2688_v60, 7 }
 0x21a   : > { %v2683_v35 = vrot.slane %v2612_v15, 7  ;;  %v2755_v56 = vrot.slane %v2684_v4, 7  ;;  %3199 = vrot.lane.b32.xlu1 %v3098_v23, %s5325_s8  ;;  %4073 = vrot.lane.b32.xlu0 %v4032_v10, %s5324_s7 }
 0x21b   : > { %v2690_v39 = vor.u32 %v2688_v60, %v2687_v59  ;;  %v2804_v18 = vsel %vm5386_vm4, %v2687_v59, %v2756_v46  ;;  %v6597_v59 = vld [vmem:[%s7290_s2 + $0x1] ss:$0 sm:$0xff] }
 0x21c   : > { %2830 = vst.msk [vmem:[#allocation2 + $0xa8] sm:$0x1] %vm696_vm3, %v2804_v18  ;;  %v2686_v34 = vor.u32 %v2684_v4, %v2683_v35  ;;  %v2803_v29 = vsel %vm5386_vm4, %v2683_v35, %v2755_v56  ;;  %v6535_v22 = vpop.permute.xlu1 %3681  ;;  %v6537_v16 = vpop.permute.xlu0 %3343 }
 0x21d   : > { %v2788_v45 = vsel %vm5386_vm4, %v2615_v55, %v2690_v39  ;;  %2828 = vst.msk [vmem:[#allocation2 + $0x98] sm:$0x1] %vm696_vm3, %v2803_v29 }
 0x21e   : > { %2829 = vst.msk [vmem:[#allocation2 + $0xa0] sm:$0xff] %vm694_vm2, %v2788_v45  ;;  %v2787_v33 = vsel %vm5386_vm4, %v2612_v15, %v2686_v34  ;;  %3961 = vrot.lane.b32.xlu1 %v3830_v8, %s5327_s10  ;;  %3691 = vrot.lane.b32.xlu0 %v3651_v44, %s5323_s29 }
 0x21f   : > { %2827 = vst.msk [vmem:[#allocation2 + $0x90] sm:$0xff] %vm694_vm2, %v2787_v33 }
 0x220   : > { %v6550_v6 = vpop.permute.xlu0 %3295  ;;  %v6555_v58 = vpop.permute.xlu1 %3297 }
 0x222   : > { %3197 = vrot.lane.b32.xlu1 %v3086_v26, %s5325_s8  ;;  %3963 = vrot.lane.b32.xlu0 %v3842_v49, %s5327_s10 }
 0x223   : > { %v2920_v62 = vld [vmem:[#allocation2 + $0xa8] sm:$0x1] }
 0x224   : > { %v6559_v50 = vpop.permute.xlu0 %4063  ;;  %v6564_v13 = vpop.permute.xlu1 %3569  ;;  %v3659_v3 = vrot.slane %v2920_v62, 1  ;;  %v6573_v24 = vld [vmem:[#allocation2 + $0xa8] sm:$0x1]  ;;  %v6576_v7 = vld [vmem:[#allocation2 + $0x98] sm:$0x1]  ;;  %v3491_v4 = vshll.u32 %v2920_v62, 16 }
 0x225   : > { %v2904_v1 = vld [vmem:[#allocation2 + $0xa0] sm:$0xff]  ;;  %v4040_v15 = vrot.slane %v6573_v24, 1  ;;  %v3275_v35 = vrot.slane %v6576_v7, 1  ;;  %v2873_v56 = vld [vmem:[#allocation2 + $0xa8] sm:$0x1] }
 0x226   : > { %3361 = vrot.lane.b32.xlu1 %v2904_v1, %s5320_s24  ;;  %3579 = vrot.lane.b32.xlu0 %v3458_v43, %s5326_s9  ;;  %v2936_v63 = vld [vmem:[#allocation2 + $0xa0] sm:$0xfe]  ;;  %v3486_v19 = vshll.u32 %v2904_v1, 16  ;;  %v6568_v57 = vld [vmem:[#allocation2 + $0x90] sm:$0xff]  ;;  %v3484_v30 = vshrl.u32 %v2904_v1, 16  ;;  %v3278_v32 = vrot.slane %v2873_v56, 1 }
 0x227   : > { %v3658_v11 = vrot.slane %v2936_v63, 1  ;;  %v2888_v51 = vld [vmem:[#allocation2 + $0x90] sm:$0xfe]  ;;  %v2983_v0 = vld [vmem:[#allocation2 + $0xa0] sm:$0xfe]  ;;  %v3846_v2 = vshll.u32 %v6568_v57, 16 }
 0x228   : > { %v6566_v31 = vpop.permute.xlu0 %3299  ;;  %v3274_v54 = vrot.slane %v2888_v51, 1  ;;  %v3488_v27 = vrot.slane %v3486_v19, 1  ;;  %v4039_v60 = vrot.slane %v2983_v0, 1  ;;  %v2889_v14 = vld [vmem:[#allocation2 + $0xa0] sm:$0xfe]  ;;  %v6587_v25 = vpop.permute.xlu1 %3187  ;;  %v3844_v33 = vshrl.u32 %v6568_v57, 16 }
 0x229   : > { %v3660_v55 = vsel %vm1135_vm5, %v3658_v11, %v3659_v3  ;;  %v3848_v38 = vrot.slane %v3846_v2, 1  ;;  %v3277_v18 = vrot.slane %v2889_v14, 1  ;;  %v2966_v8 = vld [vmem:[#allocation2 + $0x98] sm:$0x1]  ;;  %v2982_v44 = vld [vmem:[#allocation2 + $0x90] sm:$0xfe] }
 0x22a   : > { %3741 = vrot.lane.b32.xlu1 %v6568_v57, %s5321_s25  ;;  %3743 = vrot.lane.b32.xlu0 %v2904_v1, %s5321_s25  ;;  %v6604_v17 = vor.u32 %v3488_v27, %v3484_v30  ;;  %v3276_v29 = vsel %vm1135_vm5, %v3274_v54, %v3275_v35  ;;  %v4041_v45 = vsel %vm1135_vm5, %v4039_v60, %v4040_v15  ;;  %v3119_v47 = vshll.u32 %v2873_v56, 16  ;;  %v6615_v43 = vld [vmem:[#allocation2 + $0x98] sm:$0x1]  ;;  %v2935_v51 = vld [vmem:[#allocation2 + $0x90] sm:$0xfe] }
 0x22b   : > { %v3493_v1 = vrot.slane %v3491_v4, 1  ;;  %v3851_v11 = vshll.u32 %v2966_v8, 16  ;;  %v6617_v0 = vor.u32 %v3848_v38, %v3844_v33  ;;  %v3279_v54 = vsel %vm1135_vm5, %v3277_v18, %v3278_v32 }
 0x22c   : > { %v5154_v5 = vpop.f32.mrb[20].mxu0  ;;  %v6584_v42 = vpop.permute.xlu0 %3679  ;;  %v3655_v14 = vrot.slane %v2935_v51, 1  ;;  %v3107_v18 = vshll.u32 %v6576_v7, 16 }
 0x22d   : > { %v2492_v9 = vmul.f32 %v6581_v61, %v5154_v5  ;;  %v2418_v37 = vpop.f32.mrb[21].mxu0  ;;  %v3186_v63 = vpop.permute.xlu1 %3185  ;;  %v3494_v5 = vsel %vm878_vm6, %v6604_v17, %v3493_v1 }
 0x22e   : > { %v2490_v21 = vmul.f32 %v6581_v61, %v2418_v37  ;;  %3697 = vrot.lane.b32.xlu1 %v3660_v55, %s5323_s29  ;;  %v5155_v41 = vpop.f32.mrb[22].mxu0  ;;  %3359 = vrot.lane.b32.xlu0 %v6568_v57, %s5320_s24  ;;  %v4036_v57 = vrot.slane %v2982_v44, 1  ;;  %v4037_v37 = vrot.slane %v2966_v8, 1 }
 0x22f   : > { %v2529_v46 = vadd.f32 %v6597_v59, %v2492_v9  ;;  %v2493_v23 = vmul.f32 %v6581_v61, %v5155_v41  ;;  %v2421_v10 = vpop.f32.mrb[23].mxu0  ;;  %v3121_v9 = vrot.slane %v3119_v47, 1 }
 0x230   : > { %v2527_v48 = vadd.f32 %v6597_v59, %v2490_v21  ;;  %v2491_v39 = vmul.f32 %v6581_v61, %v2421_v10  ;;  %v3184_v34 = vpop.permute.xlu0 %3183  ;;  %v3656_v21 = vrot.slane %v6615_v43, 1  ;;  %v4038_v30 = vsel %vm1135_vm5, %v4036_v57, %v4037_v37 }
 0x231   : > { %v2530_v53 = vadd.f32 %v6597_v59, %v2493_v23  ;;  %v2561_v26 = vmax.f32 %v2529_v46, 0.0  ;;  %v4096_v36 = vsel %vm694_vm2, %v6291_v12, %v3184_v34  ;;  %v3853_v46 = vrot.slane %v3851_v11, 1 }
 0x232   : > { %v2528_v20 = vadd.f32 %v6597_v59, %v2491_v39  ;;  %3313 = vrot.lane.b32.xlu1 %v3276_v29, %s5322_s26  ;;  %4079 = vrot.lane.b32.xlu0 %v4041_v45, %s5324_s7  ;;  %v2559_v62 = vmax.f32 %v2527_v48, 0.0  ;;  %v4128_v12 = vsel %vm2016_vm8, %v4096_v36, %v6550_v6  ;;  %v3122_v56 = vsel %vm878_vm6, %v6604_v17, %v3121_v9 }
 0x233   : > { %v2562_v49 = vmax.f32 %v2530_v53, 0.0  ;;  %v4160_v10 = vsel %vm2049_vm9, %v4128_v12, %v6537_v16  ;;  %v3863_v29 = vshll.u32 %v6573_v24, 16  ;;  %v3854_v24 = vsel %vm878_vm6, %v6617_v0, %v3853_v46 }
 0x234   : > { %v2560_v19 = vmax.f32 %v2528_v20, 0.0  ;;  %v3952_v2 = vpop.permute.xlu0 %3951  ;;  %v3109_v36 = vrot.slane %v3107_v18, 1 }
 0x235   : > { %v2582_v3 = vpack.c.bf16 %v2562_v49, %v2561_v26  ;;  %v5270_v26 = vld [vmem:[#allocation2 + $0x10] sm:$0xff]  ;;  %v3865_v1 = vrot.slane %v3863_v29, 1 }
 0x236   : > { %v2581_v27 = vpack.c.bf16 %v2560_v19, %v2559_v62  ;;  %3585 = vrot.lane.b32.xlu1 %v3494_v5, %s5326_s9  ;;  %3315 = vrot.lane.b32.xlu0 %v3279_v54, %s5322_s26  ;;  %v4098_v49 = vsel %vm694_vm2, %v5270_v26, %v3186_v63  ;;  %v3479_v62 = vshll.u32 %v6615_v43, 16  ;;  %v3110_v11 = vsel %vm878_vm6, %v6617_v0, %v3109_v36 }
 0x237   : > { %v2621_v55 = vshrl.u32 %v2582_v3, 16  ;;  %v2696_v60 = vshll.u32 %v2582_v3, 16  ;;  %v4130_v63 = vsel %vm2016_vm8, %v4098_v49, %v6555_v58 }
 0x238   : > { %v2618_v41 = vshrl.u32 %v2581_v27, 16  ;;  %v2692_v15 = vshll.u32 %v2581_v27, 16  ;;  %v6627_v4 = vpop.permute.xlu1 %3349  ;;  %v3568_v35 = vpop.permute.xlu0 %3567  ;;  %v3481_v51 = vrot.slane %v3479_v62, 1  ;;  %v4162_v43 = vsel %vm2049_vm9, %v4130_v63, %v6519_v52 }
 0x239   : > { %v2695_v23 = vrot.slane %v2621_v55, 7  ;;  %v2758_v6 = vrot.slane %v2696_v60, 7  ;;  %v4192_v39 = vsel %vm2082_vm10, %v4160_v10, %v3568_v35  ;;  %v4194_v54 = vsel %vm2082_vm10, %v4162_v43, %v6564_v13 }
 0x23a   : > { %v2691_v38 = vrot.slane %v2618_v41, 7  ;;  %v2757_v48 = vrot.slane %v2692_v15, 7  ;;  %3203 = vrot.lane.b32.xlu1 %v3122_v56, %s5325_s8  ;;  %4077 = vrot.lane.b32.xlu0 %v4038_v30, %s5324_s7  ;;  %v4224_v16 = vsel %vm2115_vm11, %v4192_v39, %v6584_v42  ;;  %v3657_v42 = vsel %vm1135_vm5, %v3655_v14, %v3656_v21  ;;  %v5271_v30 = vld [vmem:[#allocation2 + $0x20] sm:$0xff] }
 0x23b   : > { %v2698_v53 = vor.u32 %v2696_v60, %v2695_v23  ;;  %v2806_v34 = vsel %vm5386_vm4, %v2695_v23, %v2758_v6  ;;  %v4256_v33 = vsel %vm2148_vm12, %v4224_v16, %v6521_v40  ;;  %v4226_v13 = vsel %vm2115_vm11, %v4194_v54, %v6535_v22 }
 0x23c   : > { %2834 = vst.msk [vmem:[#allocation2 + $0xc8] sm:$0x1] %vm696_vm3, %v2806_v34  ;;  %v2694_v45 = vor.u32 %v2692_v15, %v2691_v38  ;;  %v2805_v8 = vsel %vm5386_vm4, %v2691_v38, %v2757_v48  ;;  %v3730_v44 = vpop.permute.xlu1 %3729  ;;  %v6651_v20 = vpop.permute.xlu0 %3731  ;;  %v4288_v32 = vsel %vm2181_vm14, %v4256_v33, %v3952_v2  ;;  %v4100_v46 = vsel %vm694_vm2, %v5271_v30, %v6587_v25 }
 0x23d   : > { %v2790_v7 = vsel %vm5386_vm4, %v2621_v55, %v2698_v53  ;;  %2832 = vst.msk [vmem:[#allocation2 + $0xb8] sm:$0x1] %vm696_vm3, %v2805_v8  ;;  %v4320_v40 = vsel %vm2214_vm13, %v4288_v32, %v6559_v50  ;;  %v3866_v50 = vsel %vm878_vm6, %v6604_v17, %v3865_v1  ;;  %v3482_v17 = vsel %vm878_vm6, %v6617_v0, %v3481_v51 }
 0x23e   : > { %2833 = vst.msk [vmem:[#allocation2 + $0xc0] sm:$0xff] %vm694_vm2, %v2790_v7  ;;  %v2789_v47 = vsel %vm5386_vm4, %v2618_v41, %v2694_v45  ;;  %3965 = vrot.lane.b32.xlu1 %v3854_v24, %s5327_s10  ;;  %3695 = vrot.lane.b32.xlu0 %v3657_v42, %s5323_s29  ;;  %v4258_v23 = vsel %vm2148_vm12, %v4226_v13, %v3730_v44 }
 0x23f   : > { %2831 = vst.msk [vmem:[#allocation2 + $0xb0] sm:$0xff] %vm694_vm2, %v2789_v47  ;;  %5170 = vmatprep.mubr.msk.bf16.mxu1 %vm2267_vm15, %v4320_v40 }
 0x240   : > { %v6668_v19 = vpop.permute.xlu1 %3685  ;;  %v6670_v57 = vpop.permute.xlu0 %3347 }
 0x242   : > { %3201 = vrot.lane.b32.xlu1 %v3110_v11, %s5325_s8  ;;  %3967 = vrot.lane.b32.xlu0 %v3866_v50, %s5327_s10 }
 0x243   : > { %v2922_v52 = vld [vmem:[#allocation2 + $0xc8] sm:$0x1] }
 0x244   : > { %v6680_v3 = vpop.permute.xlu1 %3301  ;;  %v6684_v2 = vpop.permute.xlu0 %4067  ;;  %v3665_v21 = vrot.slane %v2922_v52, 1  ;;  %v6709_v41 = vld [vmem:[#allocation2 + $0xb8] sm:$0x1]  ;;  %v3515_v56 = vshll.u32 %v2922_v52, 16  ;;  %v6733_v1 = vld [vmem:[#allocation2 + $0xc8] sm:$0x1] }
 0x245   : > { %v6686_v5 = vld [vmem:[#allocation2 + $0xc0] sm:$0xff]  ;;  %v6711_v15 = vld [vmem:[#allocation2 + $0xb8] sm:$0x1]  ;;  %v3281_v29 = vrot.slane %v6709_v41, 1 }
 0x246   : > { %3365 = vrot.lane.b32.xlu1 %v6686_v5, %s5320_s24  ;;  %3583 = vrot.lane.b32.xlu0 %v3482_v17, %s5326_s9  ;;  %v2938_v58 = vld [vmem:[#allocation2 + $0xc0] sm:$0xfe]  ;;  %v6697_v12 = vld [vmem:[#allocation2 + $0xb0] sm:$0xff]  ;;  %v3510_v9 = vshll.u32 %v6686_v5, 16  ;;  %v4043_v45 = vrot.slane %v6711_v15, 1  ;;  %v3875_v8 = vshll.u32 %v6711_v15, 16 }
 0x247   : > { %v3664_v55 = vrot.slane %v2938_v58, 1  ;;  %v2890_v0 = vld [vmem:[#allocation2 + $0xb0] sm:$0xfe]  ;;  %v3870_v14 = vshll.u32 %v6697_v12, 16  ;;  %v3508_v44 = vshrl.u32 %v6686_v5, 16  ;;  %v3868_v43 = vshrl.u32 %v6697_v12, 16 }
 0x248   : > { %v6695_v27 = vpop.permute.xlu1 %3573  ;;  %v6700_v37 = vpop.permute.xlu0 %3303  ;;  %v2984_v60 = vld [vmem:[#allocation2 + $0xb0] sm:$0xfe]  ;;  %v3280_v35 = vrot.slane %v2890_v0, 1  ;;  %v3512_v38 = vrot.slane %v3510_v9, 1  ;;  %v2921_v49 = vld [vmem:[#allocation2 + $0xb8] sm:$0x1] }
 0x249   : > { %v3666_v18 = vsel %vm1135_vm5, %v3664_v55, %v3665_v21  ;;  %v4042_v53 = vrot.slane %v2984_v60, 1  ;;  %v2937_v34 = vld [vmem:[#allocation2 + $0xb0] sm:$0xfe]  ;;  %v3872_v33 = vrot.slane %v3870_v14, 1  ;;  %v3517_v54 = vrot.slane %v3515_v56, 1 }
 0x24a   : > { %3745 = vrot.lane.b32.xlu1 %v6697_v12, %s5321_s25  ;;  %3747 = vrot.lane.b32.xlu0 %v6686_v5, %s5321_s25  ;;  %v3282_v26 = vsel %vm1135_vm5, %v3280_v35, %v3281_v29  ;;  %v3661_v36 = vrot.slane %v2937_v34, 1  ;;  %v6735_v62 = vor.u32 %v3512_v38, %v3508_v44  ;;  %v3662_v55 = vrot.slane %v2921_v49, 1  ;;  %v6750_v35 = vld [vmem:[#allocation2 + $0xc8] sm:$0x1] }
 0x24b   : > { %v4044_v51 = vsel %vm1135_vm5, %v4042_v53, %v4043_v45  ;;  %v3887_v0 = vshll.u32 %v6733_v1, 16  ;;  %v3873_v21 = vor.u32 %v3872_v33, %v3868_v43  ;;  %v4132_v56 = vsel %vm2016_vm8, %v4100_v46, %v6566_v31 }
 0x24c   : > { %v6716_v6 = vpop.permute.xlu1 %3191  ;;  %v5158_v10 = vpop.f32.mrb[24].mxu0  ;;  %v3503_v34 = vshll.u32 %v2921_v49, 16  ;;  %v3143_v31 = vshll.u32 %v6750_v35, 16 }
 0x24d   : > { %v2496_v22 = vmul.f32 %v6581_v61, %v5158_v10  ;;  %v4066_v48 = vpop.permute.xlu0 %4065  ;;  %v2434_v39 = vpop.f32.mrb[25].mxu0  ;;  %v3663_v10 = vsel %vm1135_vm5, %v3661_v36, %v3662_v55  ;;  %v3889_v53 = vrot.slane %v3887_v0, 1  ;;  %v4046_v0 = vrot.slane %v6733_v1, 1 }
 0x24e   : > { %v2494_v16 = vmul.f32 %v6581_v61, %v2434_v39  ;;  %3701 = vrot.lane.b32.xlu1 %v3666_v18, %s5323_s29  ;;  %v5159_v25 = vpop.f32.mrb[26].mxu0  ;;  %3363 = vrot.lane.b32.xlu0 %v6697_v12, %s5320_s24  ;;  %v3505_v49 = vrot.slane %v3503_v34, 1  ;;  %v3145_v55 = vrot.slane %v3143_v31, 1 }
 0x24f   : > { %v2533_v7 = vadd.f32 %v6597_v59, %v2496_v22  ;;  %v2497_v24 = vmul.f32 %v6581_v61, %v5159_v25  ;;  %v2437_v42 = vpop.f32.mrb[27].mxu0  ;;  %v3877_v22 = vrot.slane %v3875_v8, 1 }
 0x250   : > { %v2531_v32 = vadd.f32 %v6597_v59, %v2494_v16  ;;  %v2495_v47 = vmul.f32 %v6581_v61, %v2437_v42  ;;  %v3954_v40 = vpop.permute.xlu1 %3953  ;;  %v4164_v16 = vsel %vm2049_vm9, %v4132_v56, %v6670_v57 }
 0x251   : > { %v2534_v11 = vadd.f32 %v6597_v59, %v2497_v24  ;;  %v4290_v50 = vsel %vm2181_vm14, %v4258_v23, %v3954_v40  ;;  %v3684_v63 = vpop.permute.xlu0 %3683  ;;  %v2565_v52 = vmax.f32 %v2533_v7, 0.0  ;;  %v3518_v23 = vsel %vm878_vm6, %v6735_v62, %v3517_v54  ;;  %v2985_v7 = vld [vmem:[#allocation2 + $0xc0] sm:$0xfe] }
 0x252   : > { %v2532_v17 = vadd.f32 %v6597_v59, %v2495_v47  ;;  %3317 = vrot.lane.b32.xlu1 %v3282_v26, %s5322_s26  ;;  %4081 = vrot.lane.b32.xlu0 %v4044_v51, %s5324_s7  ;;  %v4322_v58 = vsel %vm2214_vm13, %v4290_v50, %v4066_v48  ;;  %v2563_v60 = vmax.f32 %v2531_v32, 0.0  ;;  %v3131_v48 = vshll.u32 %v6709_v41, 16 }
 0x253   : > { %v2566_v9 = vmax.f32 %v2534_v11, 0.0  ;;  %5171 = vmatmul.mubr.msk.bf16.vlgmr.msra.gmra.mrb[0].mxu1 %vm2267_vm15, %v4322_v58  ;;  %v3878_v8 = vsel %vm878_vm6, %v3873_v21, %v3877_v22  ;;  %v3890_v41 = vsel %vm878_vm6, %v6735_v62, %v3889_v53  ;;  %v4045_v43 = vrot.slane %v2985_v7, 1  ;;  %v2891_v22 = vld [vmem:[#allocation2 + $0xc0] sm:$0xfe] }
 0x254   : > { %v2564_v13 = vmax.f32 %v2532_v17, 0.0  ;;  %v3190_v14 = vpop.permute.xlu1 %3189  ;;  %v3133_v57 = vrot.slane %v3131_v48, 1  ;;  %v3506_v54 = vsel %vm878_vm6, %v3873_v21, %v3505_v49 }
 0x255   : > { %v2584_v15 = vpack.c.bf16 %v2566_v9, %v2565_v52  ;;  %v3956_v30 = vpop.permute.xlu0 %3955 }
 0x256   : > { %v2583_v38 = vpack.c.bf16 %v2564_v13, %v2563_v60  ;;  %3589 = vrot.lane.b32.xlu1 %v3518_v23, %s5326_s9  ;;  %3699 = vrot.lane.b32.xlu0 %v3663_v10, %s5323_s29  ;;  %v5272_v60 = vld [vmem:[#allocation2 + $0x30] sm:$0xff]  ;;  %v4047_v23 = vsel %vm1135_vm5, %v4045_v43, %v4046_v0 }
 0x257   : > { %v2627_v39 = vshrl.u32 %v2584_v15, 16  ;;  %v2704_v18 = vshll.u32 %v2584_v15, 16  ;;  %v4102_v13 = vsel %vm694_vm2, %v5272_v60, %v3190_v14 }
 0x258   : > { %v2624_v25 = vshrl.u32 %v2583_v38, 16  ;;  %v2700_v29 = vshll.u32 %v2583_v38, 16  ;;  %v6759_v45 = vpop.permute.xlu1 %3353 }
 0x259   : > { %v2703_v46 = vrot.slane %v2627_v39, 7  ;;  %v2760_v44 = vrot.slane %v2704_v18, 7  ;;  %v3572_v33 = vpop.permute.xlu0 %3571 }
 0x25a   : > { %v2699_v24 = vrot.slane %v2624_v25, 7  ;;  %v2759_v42 = vrot.slane %v2700_v29, 7  ;;  %v4196_v32 = vsel %vm2082_vm10, %v4164_v16, %v3572_v33  ;;  %3969 = vrot.lane.b32.xlu1 %v3878_v8, %s5327_s10  ;;  %3971 = vrot.lane.b32.xlu0 %v3890_v41, %s5327_s10  ;;  %v3284_v41 = vrot.slane %v6750_v35, 1 }
 0x25b   : > { %v2706_v47 = vor.u32 %v2704_v18, %v2703_v46  ;;  %v2808_v40 = vsel %vm5386_vm4, %v2703_v46, %v2760_v44  ;;  %v4228_v26 = vsel %vm2115_vm11, %v4196_v32, %v3684_v63  ;;  %v3134_v63 = vsel %vm878_vm6, %v3873_v21, %v3133_v57 }
 0x25c   : > { %2838 = vst.msk [vmem:[#allocation2 + $0xe8] sm:$0x1] %vm696_vm3, %v2808_v40  ;;  %v2702_v36 = vor.u32 %v2700_v29, %v2699_v24  ;;  %v2807_v11 = vsel %vm5386_vm4, %v2699_v24, %v2759_v42  ;;  %v4260_v50 = vsel %vm2148_vm12, %v4228_v26, %v6651_v20  ;;  %v6776_v51 = vpop.permute.xlu1 %3733  ;;  %v3283_v46 = vrot.slane %v2891_v22, 1 }
 0x25d   : > { %v2792_v17 = vsel %vm5386_vm4, %v2627_v39, %v2706_v47  ;;  %2836 = vst.msk [vmem:[#allocation2 + $0xd8] sm:$0x1] %vm696_vm3, %v2807_v11  ;;  %v6781_v58 = vpop.permute.xlu0 %3735  ;;  %v4292_v52 = vsel %vm2181_vm14, %v4260_v50, %v3956_v30  ;;  %v3146_v30 = vsel %vm878_vm6, %v6735_v62, %v3145_v55 }
 0x25e   : > { %2837 = vst.msk [vmem:[#allocation2 + $0xe0] sm:$0xff] %vm694_vm2, %v2792_v17  ;;  %v2791_v20 = vsel %vm5386_vm4, %v2624_v25, %v2702_v36  ;;  %3205 = vrot.lane.b32.xlu1 %v3134_v63, %s5325_s8  ;;  %3587 = vrot.lane.b32.xlu0 %v3506_v54, %s5326_s9  ;;  %v4324_v9 = vsel %vm2214_vm13, %v4292_v52, %v6684_v2 }
 0x25f   : > { %2835 = vst.msk [vmem:[#allocation2 + $0xd0] sm:$0xff] %vm694_vm2, %v2791_v20  ;;  %5174 = vmatprep.mubr.msk.bf16.mxu1 %vm2267_vm15, %v4324_v9  ;;  %v4134_v2 = vsel %vm2016_vm8, %v4102_v13, %v6680_v3  ;;  %v3285_v43 = vsel %vm1135_vm5, %v3283_v46, %v3284_v41 }
 0x260   : > { %v6797_v21 = vpop.permute.xlu1 %3689  ;;  %v4166_v56 = vsel %vm2049_vm9, %v4134_v2, %v6627_v4 }
 0x261   : > { %v6799_v15 = vpop.permute.xlu0 %3351  ;;  %v4198_v44 = vsel %vm2082_vm10, %v4166_v56, %v6695_v27 }
 0x262   : > { %3207 = vrot.lane.b32.xlu1 %v3146_v30, %s5325_s8  ;;  %4083 = vrot.lane.b32.xlu0 %v4047_v23, %s5324_s7  ;;  %v4230_v54 = vsel %vm2115_vm11, %v4198_v44, %v6668_v19 }
 0x264   : > { %v6808_v1 = vpop.permute.xlu1 %3305  ;;  %v2970_v10 = vld [vmem:[#allocation2 + $0xd8] sm:$0x1] }
 0x265   : > { %v6810_v14 = vpop.permute.xlu0 %4071  ;;  %v4049_v18 = vrot.slane %v2970_v10, 1  ;;  %v3899_v3 = vshll.u32 %v2970_v10, 16  ;;  %v6821_v34 = vld [vmem:[#allocation2 + $0xd8] sm:$0x1]  ;;  %v6844_v63 = vld [vmem:[#allocation2 + $0xe0] sm:$0xff] }
 0x266   : > { %v6814_v38 = vld [vmem:[#allocation2 + $0xd0] sm:$0xff]  ;;  %v3155_v57 = vshll.u32 %v6821_v34, 16  ;;  %v6838_v49 = vld [vmem:[#allocation2 + $0xd8] sm:$0x1]  ;;  %v3534_v19 = vshll.u32 %v6844_v63, 16 }
 0x267   : > { %v2986_v62 = vld [vmem:[#allocation2 + $0xd0] sm:$0xfe]  ;;  %3749 = vrot.lane.b32.xlu1 %v6814_v38, %s5321_s25  ;;  %v3894_v48 = vshll.u32 %v6814_v38, 16  ;;  %v3892_v16 = vshrl.u32 %v6814_v38, 16  ;;  %v3901_v32 = vrot.slane %v3899_v3, 1  ;;  %v3527_v55 = vshll.u32 %v6838_v49, 16 }
 0x268   : > { %v4048_v39 = vrot.slane %v2986_v62, 1  ;;  %v6819_v53 = vpop.permute.xlu1 %3577  ;;  %v2892_v17 = vld [vmem:[#allocation2 + $0xd0] sm:$0xfe]  ;;  %v3157_v9 = vrot.slane %v3155_v57, 1 }
 0x269   : > { %v3896_v25 = vrot.slane %v3894_v48, 1  ;;  %v6824_v4 = vpop.permute.xlu0 %3307  ;;  %v5162_v29 = vpop.f32.mrb[28].mxu0  ;;  %v3286_v30 = vrot.slane %v2892_v17, 1  ;;  %v2939_v22 = vld [vmem:[#allocation2 + $0xd0] sm:$0xfe]  ;;  %v3287_v48 = vrot.slane %v6821_v34, 1 }
 0x26a   : > { %v4050_v31 = vsel %vm1135_vm5, %v4048_v39, %v4049_v18  ;;  %v2500_v33 = vmul.f32 %v6581_v61, %v5162_v29  ;;  %v2450_v8 = vpop.f32.mrb[29].mxu0  ;;  %v5273_v39 = vld [vmem:[#allocation2 + $0x40] sm:$0xff]  ;;  %v3667_v44 = vrot.slane %v2939_v22, 1 }
 0x26b   : > { %4085 = vrot.lane.b32.xlu0 %v4050_v31, %s5324_s7  ;;  %v3897_v7 = vor.u32 %v3896_v25, %v3892_v16  ;;  %v2498_v24 = vmul.f32 %v6581_v61, %v2450_v8  ;;  %v5163_v42 = vpop.f32.mrb[30].mxu0  ;;  %v4104_v18 = vsel %vm694_vm2, %v5273_v39, %v6716_v6  ;;  %v3529_v16 = vrot.slane %v3527_v55, 1 }
 0x26c   : > { %v2537_v47 = vadd.f32 %v6597_v59, %v2500_v33  ;;  %v2501_v40 = vmul.f32 %v6581_v61, %v5163_v42  ;;  %v6836_v26 = vpop.permute.xlu1 %3195  ;;  %v2453_v27 = vpop.f32.mrb[31].mxu0  ;;  %v3288_v46 = vsel %vm1135_vm5, %v3286_v30, %v3287_v48  ;;  %v2924_v33 = vld [vmem:[#allocation2 + $0xe8] sm:$0x1]  ;;  %v3536_v42 = vrot.slane %v3534_v19, 1 }
 0x26d   : > { %v2535_v36 = vadd.f32 %v6597_v59, %v2498_v24  ;;  %v2499_v35 = vmul.f32 %v6581_v61, %v2453_v27  ;;  %v4070_v11 = vpop.permute.xlu0 %4069  ;;  %v3902_v50 = vsel %vm878_vm6, %v3897_v7, %v3901_v32  ;;  %v4262_v61 = vsel %vm2148_vm12, %v4230_v54, %v6776_v51 }
 0x26e   : > { %v2538_v52 = vadd.f32 %v6597_v59, %v2501_v40  ;;  %3973 = vrot.lane.b32.xlu1 %v3902_v50, %s5327_s10  ;;  %v2569_v0 = vmax.f32 %v2537_v47, 0.0  ;;  %v3158_v62 = vsel %vm878_vm6, %v3897_v7, %v3157_v9  ;;  %v3530_v34 = vsel %vm878_vm6, %v3897_v7, %v3529_v16  ;;  %v2940_v9 = vld [vmem:[#allocation2 + $0xe0] sm:$0xfe] }
 0x26f   : > { %3319 = vrot.lane.b32.xlu0 %v3285_v43, %s5322_s26  ;;  %v2536_v20 = vadd.f32 %v6597_v59, %v2499_v35  ;;  %v2567_v23 = vmax.f32 %v2535_v36, 0.0  ;;  %v4136_v6 = vsel %vm2016_vm8, %v4104_v18, %v6700_v37  ;;  %v3532_v47 = vshrl.u32 %v6844_v63, 16  ;;  %v2971_v43 = vld [vmem:[#allocation2 + $0xe8] sm:$0x1] }
 0x270   : > { %v2570_v60 = vmax.f32 %v2538_v52, 0.0  ;;  %v3958_v13 = vpop.permute.xlu1 %3957  ;;  %v3668_v36 = vrot.slane %v6838_v49, 1  ;;  %v3539_v35 = vshll.u32 %v2924_v33, 16  ;;  %v4168_v7 = vsel %vm2049_vm9, %v4136_v6, %v6799_v15 }
 0x271   : > { %v2568_v2 = vmax.f32 %v2536_v20, 0.0  ;;  %v4294_v10 = vsel %vm2181_vm14, %v4262_v61, %v3958_v13  ;;  %v3688_v56 = vpop.permute.xlu0 %3687  ;;  %v6885_v61 = vor.u32 %v3536_v42, %v3532_v47  ;;  %v3911_v13 = vshll.u32 %v2971_v43, 16  ;;  %v2877_v42 = vld [vmem:[#allocation2 + $0xe8] sm:$0x1] }
 0x272   : > { %v2586_v51 = vpack.c.bf16 %v2570_v60, %v2569_v0  ;;  %3209 = vrot.lane.b32.xlu1 %v3158_v62, %s5325_s8  ;;  %v4326_v59 = vsel %vm2214_vm13, %v4294_v10, %v4070_v11  ;;  %v3669_v49 = vsel %vm1135_vm5, %v3667_v44, %v3668_v36  ;;  %v3541_v60 = vrot.slane %v3539_v35, 1  ;;  %v2987_v62 = vld [vmem:[#allocation2 + $0xe0] sm:$0xfe] }
 0x273   : > { %3367 = vrot.lane.b32.xlu0 %v6814_v38, %s5320_s24  ;;  %v2585_v3 = vpack.c.bf16 %v2568_v2, %v2567_v23  ;;  %5175 = vmatmul.mubr.msk.bf16.gmra.mrb[4].mxu1 %vm2267_vm15, %v4326_v59  ;;  %v3670_v10 = vrot.slane %v2940_v9, 1  ;;  %v3913_v22 = vrot.slane %v3911_v13, 1  ;;  %v4051_v18 = vrot.slane %v2987_v62, 1 }
 0x274   : > { %v2633_v25 = vshrl.u32 %v2586_v51, 16  ;;  %v2712_v29 = vshll.u32 %v2586_v51, 16  ;;  %v6866_v31 = vpop.permute.xlu1 %3193  ;;  %v3542_v2 = vsel %vm878_vm6, %v6885_v61, %v3541_v60  ;;  %v3167_v35 = vshll.u32 %v2877_v42, 16 }
 0x275   : > { %v2630_v8 = vshrl.u32 %v2585_v3, 16  ;;  %v2708_v41 = vshll.u32 %v2585_v3, 16  ;;  %v3960_v24 = vpop.permute.xlu0 %3959  ;;  %v3914_v39 = vsel %vm878_vm6, %v6885_v61, %v3913_v22 }
 0x276   : > { %v2711_v32 = vrot.slane %v2633_v25, 7  ;;  %v2762_v57 = vrot.slane %v2712_v29, 7  ;;  %3321 = vrot.lane.b32.xlu1 %v3288_v46, %s5322_s26 }
 0x277   : > { %3591 = vrot.lane.b32.xlu0 %v3530_v34, %s5326_s9  ;;  %v2707_v40 = vrot.slane %v2630_v8, 7  ;;  %v2761_v27 = vrot.slane %v2708_v41, 7 }
 0x278   : > { %v2714_v11 = vor.u32 %v2712_v29, %v2711_v32  ;;  %v2810_v37 = vsel %vm5386_vm4, %v2711_v32, %v2762_v57  ;;  %v6880_v50 = vpop.permute.xlu1 %3357  ;;  %v4052_v29 = vrot.slane %v2971_v43, 1  ;;  %v2893_v57 = vld [vmem:[#allocation2 + $0xe0] sm:$0xfe] }
 0x279   : > { %2842 = vst.msk [vmem:[#allocation2 + $0x108] sm:$0x1] %vm696_vm3, %v2810_v37  ;;  %v2710_v17 = vor.u32 %v2708_v41, %v2707_v40  ;;  %v2809_v54 = vsel %vm5386_vm4, %v2707_v40, %v2761_v27  ;;  %v3576_v52 = vpop.permute.xlu0 %3575  ;;  %v3289_v37 = vrot.slane %v2893_v57, 1 }
 0x27a   : > { %v2794_v15 = vsel %vm5386_vm4, %v2633_v25, %v2714_v11  ;;  %2840 = vst.msk [vmem:[#allocation2 + $0xf8] sm:$0x1] %vm696_vm3, %v2809_v54  ;;  %2846 = vst.msk [vmem:[#allocation2 + $0x118] sm:$0x1] %vm696_vm3, %v2809_v54  ;;  %v4200_v20 = vsel %vm2082_vm10, %v4168_v7, %v3576_v52  ;;  %3369 = vrot.lane.b32.xlu1 %v6844_v63, %s5320_s24  ;;  %v3290_v54 = vrot.slane %v2877_v42, 1 }
 0x27b   : > { %3703 = vrot.lane.b32.xlu0 %v3669_v49, %s5323_s29  ;;  %2841 = vst.msk [vmem:[#allocation2 + $0x100] sm:$0xff] %vm694_vm2, %v2794_v15  ;;  %v2793_v55 = vsel %vm5386_vm4, %v2630_v8, %v2710_v17  ;;  %v4232_v0 = vsel %vm2115_vm11, %v4200_v20, %v3688_v56  ;;  %v3169_v15 = vrot.slane %v3167_v35, 1 }
 0x27c   : > { %2839 = vst.msk [vmem:[#allocation2 + $0xf0] sm:$0xff] %vm694_vm2, %v2793_v55  ;;  %2845 = vst.msk [vmem:[#allocation2 + $0x110] sm:$0xff] %vm694_vm2, %v2793_v55  ;;  %v4264_v30 = vsel %vm2148_vm12, %v4232_v0, %v6781_v58  ;;  %v6904_v19 = vpop.permute.xlu1 %3737  ;;  %v3671_v58 = vrot.slane %v2924_v33, 1  ;;  %v3291_v55 = vsel %vm1135_vm5, %v3289_v37, %v3290_v54 }
 0x27d   : > { %v6906_v23 = vpop.permute.xlu0 %3739  ;;  %v4296_v28 = vsel %vm2181_vm14, %v4264_v30, %v3960_v24  ;;  %v4053_v24 = vsel %vm1135_vm5, %v4051_v18, %v4052_v29  ;;  %v3170_v0 = vsel %vm878_vm6, %v6885_v61, %v3169_v15 }
 0x27e   : > { %3593 = vrot.lane.b32.xlu1 %v3542_v2, %s5326_s9  ;;  %v4328_v56 = vsel %vm2214_vm13, %v4296_v28, %v6810_v14  ;;  %v3672_v48 = vsel %vm1135_vm5, %v3670_v10, %v3671_v58  ;;  %v5274_v14 = vld [vmem:[#allocation2 + $0x50] sm:$0xff] }
 0x27f   : > { %3751 = vrot.lane.b32.xlu0 %v6844_v63, %s5321_s25  ;;  %5178 = vmatprep.mubr.msk.bf16.mxu1 %vm2267_vm15, %v4328_v56  ;;  %v4106_v16 = vsel %vm694_vm2, %v5274_v14, %v6866_v31 }
 0x280   : > { %v6917_v51 = vpop.permute.xlu1 %3693  ;;  %v4138_v6 = vsel %vm2016_vm8, %v4106_v16, %v6808_v1 }
 0x281   : > { %v6919_v59 = vpop.permute.xlu0 %3355  ;;  %v2972_v3 = vld [vmem:[#allocation2 + $0xf8] sm:$0x1]  ;;  %v4170_v7 = vsel %vm2049_vm9, %v4138_v6, %v6759_v45 }
 0x282   : > { %3705 = vrot.lane.b32.xlu1 %v3672_v48, %s5323_s29  ;;  %v3923_v8 = vshll.u32 %v2972_v3, 16  ;;  %v4055_v47 = vrot.slane %v2972_v3, 1  ;;  %v2878_v43 = vld [vmem:[#allocation2 + $0xf8] sm:$0x1]  ;;  %v4202_v52 = vsel %vm2082_vm10, %v4170_v7, %v6819_v53  ;;  %v2910_v30 = vld [vmem:[#allocation2 + $0x100] sm:$0xff] }
 0x283   : > { %3975 = vrot.lane.b32.xlu0 %v3914_v39, %s5327_s10  ;;  %v6928_v25 = vld [vmem:[#allocation2 + $0xf0] sm:$0xff]  ;;  %v3179_v45 = vshll.u32 %v2878_v43, 16  ;;  %v2925_v20 = vld [vmem:[#allocation2 + $0xf8] sm:$0x1]  ;;  %v4234_v60 = vsel %vm2115_vm11, %v4202_v52, %v6797_v21  ;;  %v3558_v48 = vshll.u32 %v2910_v30, 16  ;;  %v3293_v18 = vrot.slane %v2878_v43, 1 }
 0x284   : > { %v2988_v46 = vld [vmem:[#allocation2 + $0xf0] sm:$0xfe]  ;;  %v6930_v44 = vpop.permute.xlu1 %3309  ;;  %v3918_v33 = vshll.u32 %v6928_v25, 16  ;;  %v3916_v31 = vshrl.u32 %v6928_v25, 16  ;;  %v3925_v36 = vrot.slane %v3923_v8, 1  ;;  %v3551_v13 = vshll.u32 %v2925_v20, 16 }
 0x285   : > { %v6933_v41 = vpop.permute.xlu0 %4075  ;;  %v4054_v34 = vrot.slane %v2988_v46, 1  ;;  %v2894_v53 = vld [vmem:[#allocation2 + $0xf0] sm:$0xfe]  ;;  %v4266_v2 = vsel %vm2148_vm12, %v4234_v60, %v6904_v19  ;;  %v3181_v10 = vrot.slane %v3179_v45, 1  ;;  %v5275_v3 = vld [vmem:[#allocation2 + $0x60] sm:$0xff] }
 0x286   : > { %3753 = vrot.lane.b32.xlu1 %v6928_v25, %s5321_s25  ;;  %v3920_v32 = vrot.slane %v3918_v33, 1  ;;  %v3292_v58 = vrot.slane %v2894_v53, 1  ;;  %v2941_v22 = vld [vmem:[#allocation2 + $0xf0] sm:$0xfe]  ;;  %v3553_v19 = vrot.slane %v3551_v13, 1  ;;  %v4108_v14 = vsel %vm694_vm2, %v5275_v3, %v6836_v26 }
 0x287   : > { %4087 = vrot.lane.b32.xlu0 %v4053_v24, %s5324_s7  ;;  %v4056_v1 = vsel %vm1135_vm5, %v4054_v34, %v4055_v47  ;;  %v3673_v46 = vrot.slane %v2941_v22, 1  ;;  %v2926_v33 = vld [vmem:[#allocation2 + $0x108] sm:$0x1]  ;;  %v3560_v24 = vrot.slane %v3558_v48, 1  ;;  %v3674_v34 = vrot.slane %v2925_v20, 1  ;;  %v2958_v37 = vld [vmem:[#allocation2 + $0x110] sm:$0xff] }
 0x288   : > { %v3921_v40 = vor.u32 %v3920_v32, %v3916_v31  ;;  %v6942_v27 = vpop.permute.xlu1 %3581  ;;  %v3294_v8 = vsel %vm1135_vm5, %v3292_v58, %v3293_v18  ;;  %v4140_v42 = vsel %vm2016_vm8, %v4108_v14, %v6824_v4  ;;  %v3556_v31 = vshrl.u32 %v2910_v30, 16  ;;  %v2973_v32 = vld [vmem:[#allocation2 + $0x108] sm:$0x1]  ;;  %v2990_v3 = vld [vmem:[#allocation2 + $0x110] sm:$0xfe] }
 0x289   : > { %v6946_v11 = vpop.permute.xlu0 %3311  ;;  %v3563_v26 = vshll.u32 %v2926_v33, 16  ;;  %v4172_v57 = vsel %vm2049_vm9, %v4140_v42, %v6919_v59  ;;  %v3935_v4 = vshll.u32 %v2973_v32, 16  ;;  %v3677_v60 = vrot.slane %v2926_v33, 1 }
 0x28a   : > { %v3926_v17 = vsel %vm878_vm6, %v3921_v40, %v3925_v36  ;;  %v3182_v61 = vsel %vm878_vm6, %v3921_v40, %v3181_v10  ;;  %v3554_v29 = vsel %vm878_vm6, %v3921_v40, %v3553_v19  ;;  %v3675_v40 = vsel %vm1135_vm5, %v3673_v46, %v3674_v34  ;;  %v5276_v10 = vld [vmem:[#allocation2 + $0x70] sm:$0xff] }
 0x28b   : > { %4089 = vrot.lane.b32.xlu0 %v4056_v1, %s5324_s7  ;;  %3977 = vrot.lane.b32.xlu1 %v3926_v17, %s5327_s10  ;;  %v3561_v35 = vor.u32 %v3560_v24, %v3556_v31  ;;  %v2942_v1 = vld [vmem:[#allocation2 + $0x100] sm:$0xfe]  ;;  %v3565_v59 = vrot.slane %v3563_v26, 1  ;;  %v4060_v33 = vrot.slane %v2990_v3, 1 }
 0x28c   : > { %v6954_v49 = vpop.permute.xlu1 %3199  ;;  %v3676_v20 = vrot.slane %v2942_v1, 1 }
 0x28d   : > { %v4074_v9 = vpop.permute.xlu0 %4073  ;;  %v3566_v45 = vsel %vm878_vm6, %v3561_v35, %v3565_v59 }
 0x28f   : > { %3323 = vrot.lane.b32.xlu0 %v3291_v55, %s5322_s26  ;;  %3211 = vrot.lane.b32.xlu1 %v3170_v0, %s5325_s8  ;;  %v3942_v55 = vshll.u32 %v2958_v37, 16 }
 0x290   : > { %v3962_v28 = vpop.permute.xlu1 %3961 }
 0x291   : > { %v4298_v56 = vsel %vm2181_vm14, %v4266_v2, %v3962_v28  ;;  %v3692_v62 = vpop.permute.xlu0 %3691  ;;  %v2974_v2 = vld [vmem:[#allocation2 + $0x118] sm:$0x1]  ;;  %v3944_v28 = vrot.slane %v3942_v55, 1 }
 0x292   : > { %v4330_v21 = vsel %vm2214_vm13, %v4298_v56, %v4074_v9  ;;  %v2989_v9 = vld [vmem:[#allocation2 + $0x100] sm:$0xfe]  ;;  %v3947_v58 = vshll.u32 %v2974_v2, 16  ;;  %v4061_v24 = vrot.slane %v2974_v2, 1 }
 0x293   : > { %3371 = vrot.lane.b32.xlu0 %v6928_v25, %s5320_s24  ;;  %3213 = vrot.lane.b32.xlu1 %v3182_v61, %s5325_s8 }
 0x294   : > { %5179 = vmatmul.mubr.msk.bf16.gmra.mrb[8].mxu1 %vm2267_vm15, %v4330_v21  ;;  %v3198_v39 = vpop.permute.xlu1 %3197  ;;  %v3940_v21 = vshrl.u32 %v2958_v37, 16  ;;  %v4062_v42 = vsel %vm1135_vm5, %v4060_v33, %v4061_v24 }
 0x295   : > { %v3964_v16 = vpop.permute.xlu0 %3963  ;;  %v4110_v56 = vsel %vm694_vm2, %v5276_v10, %v3198_v39  ;;  %v3949_v39 = vrot.slane %v3947_v58, 1  ;;  %v5279_v10 = vld [vmem:[#allocation2 + $0xa0] sm:$0xff] }
 0x296   : > { %v4142_v19 = vsel %vm2016_vm8, %v4110_v56, %v6930_v44  ;;  %v3945_v18 = vor.u32 %v3944_v28, %v3940_v21 }
 0x297   : > { %3595 = vrot.lane.b32.xlu0 %v3554_v29, %s5326_s9  ;;  %3325 = vrot.lane.b32.xlu1 %v3294_v8, %s5322_s26 }
 0x298   : > { %v6980_v6 = vpop.permute.xlu1 %3361  ;;  %v3950_v46 = vsel %vm878_vm6, %v3945_v18, %v3949_v39 }
 0x299   : > { %v3580_v47 = vpop.permute.xlu0 %3579 }
 0x29a   : > { %v4204_v36 = vsel %vm2082_vm10, %v4172_v57, %v3580_v47 }
 0x29b   : > { %3707 = vrot.lane.b32.xlu0 %v3675_v40, %s5323_s29  ;;  %v4236_v7 = vsel %vm2115_vm11, %v4204_v36, %v3692_v62  ;;  %3373 = vrot.lane.b32.xlu1 %v2910_v30, %s5320_s24  ;;  %v4058_v62 = vrot.slane %v2973_v32, 1  ;;  %v5277_v40 = vld [vmem:[#allocation2 + $0x80] sm:$0xff] }
 0x29c   : > { %v4268_v43 = vsel %vm2148_vm12, %v4236_v7, %v6906_v23  ;;  %v3742_v17 = vpop.permute.xlu1 %3741  ;;  %v3937_v23 = vrot.slane %v3935_v4, 1  ;;  %v4112_v36 = vsel %vm694_vm2, %v5277_v40, %v6954_v49 }
 0x29d   : > { %v6991_v54 = vpop.permute.xlu0 %3743  ;;  %v4300_v52 = vsel %vm2181_vm14, %v4268_v43, %v3964_v16  ;;  %v4174_v16 = vsel %vm2049_vm9, %v4142_v19, %v6880_v50 }
 0x29e   : > { %v4332_v15 = vsel %vm2214_vm13, %v4300_v52, %v6933_v41  ;;  %v3938_v53 = vsel %vm878_vm6, %v3561_v35, %v3937_v23  ;;  %v3678_v41 = vsel %vm1135_vm5, %v3676_v20, %v3677_v60  ;;  %v4206_v44 = vsel %vm2082_vm10, %v4174_v16, %v6942_v27 }
 0x29f   : > { %3755 = vrot.lane.b32.xlu0 %v2910_v30, %s5321_s25  ;;  %5182 = vmatprep.mubr.msk.bf16.mxu1 %vm2267_vm15, %v4332_v15  ;;  %v4057_v30 = vrot.slane %v2989_v9, 1  ;;  %v4238_v31 = vsel %vm2115_vm11, %v4206_v44, %v6917_v51  ;;  %v4144_v51 = vsel %vm2016_vm8, %v4112_v36, %v6946_v11 }
 0x2a0   : > { %3597 = vrot.lane.b32.xlu1 %v3566_v45, %s5326_s9  ;;  %v7000_v0 = vpop.permute.xlu1 %3697  ;;  %v4270_v50 = vsel %vm2148_vm12, %v4238_v31, %v3742_v17  ;;  %v5278_v45 = vld [vmem:[#allocation2 + $0x90] sm:$0xff]  ;;  %s7134_s9 = scalar_lea.vmem %s7293_s5, %s5054_s20 }
 0x2a1   : > { %v3360_v13 = vpop.permute.xlu0 %3359  ;;  %v4059_v48 = vsel %vm1135_vm5, %v4057_v30, %v4058_v62 }
 0x2a2   : > { %v4176_v4 = vsel %vm2049_vm9, %v4144_v51, %v3360_v13 }
 0x2a3   : > { %3979 = vrot.lane.b32.xlu0 %v3938_v53, %s5327_s10 }
 0x2a4   : > { %3709 = vrot.lane.b32.xlu1 %v3678_v41, %s5323_s29  ;;  %v3314_v61 = vpop.permute.xlu1 %3313 }
 0x2a5   : > { %v4080_v22 = vpop.permute.xlu0 %4079 }
 0x2a7   : > { %4091 = vrot.lane.b32.xlu0 %v4059_v48, %s5324_s7 }
 0x2a8   : > { %3757 = vrot.lane.b32.xlu1 %v2958_v37, %s5321_s25  ;;  %v3586_v14 = vpop.permute.xlu1 %3585 }
 0x2a9   : > { %v3316_v29 = vpop.permute.xlu0 %3315 }
 0x2ac   : > { %3981 = vrot.lane.b32.xlu1 %v3950_v46, %s5327_s10  ;;  %v3204_v8 = vpop.permute.xlu1 %3203 }
 0x2ad   : > { %v4078_v34 = vpop.permute.xlu0 %4077  ;;  %v4116_v56 = vsel %vm694_vm2, %v5279_v10, %v3204_v8 }
 0x2b0   : > { %4093 = vrot.lane.b32.xlu1 %v4062_v42, %s5324_s7  ;;  %v3966_v26 = vpop.permute.xlu1 %3965 }
 0x2b1   : > { %v4302_v32 = vsel %vm2181_vm14, %v4270_v50, %v3966_v26  ;;  %v3696_v57 = vpop.permute.xlu0 %3695 }
 0x2b2   : > { %v4334_v47 = vsel %vm2214_vm13, %v4302_v32, %v4078_v34 }
 0x2b3   : > { %5183 = vmatmul.mubr.msk.bf16.gmra.mrb[12].mxu1 %vm2267_vm15, %v4334_v47 }
 0x2b4   : > { %v3202_v27 = vpop.permute.xlu1 %3201 }
 0x2b5   : > { %v3968_v35 = vpop.permute.xlu0 %3967  ;;  %v4114_v11 = vsel %vm694_vm2, %v5278_v45, %v3202_v27 }
 0x2b6   : > { %v4146_v55 = vsel %vm2016_vm8, %v4114_v11, %v3314_v61 }
 0x2b7   : > { %v4178_v60 = vsel %vm2049_vm9, %v4146_v55, %v6980_v6  ;;  %v4148_v6 = vsel %vm2016_vm8, %v4116_v56, %v3316_v29 }
 0x2b8   : > { %v3366_v7 = vpop.permute.xlu1 %3365  ;;  %v4210_v13 = vsel %vm2082_vm10, %v4178_v60, %v3586_v14 }
 0x2b9   : > { %v3584_v1 = vpop.permute.xlu0 %3583  ;;  %v4242_v2 = vsel %vm2115_vm11, %v4210_v13, %v7000_v0 }
 0x2ba   : > { %v4208_v37 = vsel %vm2082_vm10, %v4176_v4, %v3584_v1 }
 0x2bb   : > { %v4240_v43 = vsel %vm2115_vm11, %v4208_v37, %v3696_v57 }
 0x2bc   : > { %v4272_v17 = vsel %vm2148_vm12, %v4240_v43, %v6991_v54  ;;  %v3746_v59 = vpop.permute.xlu1 %3745 }
 0x2bd   : > { %v3748_v52 = vpop.permute.xlu0 %3747  ;;  %v4304_v15 = vsel %vm2181_vm14, %v4272_v17, %v3968_v35  ;;  %v4274_v41 = vsel %vm2148_vm12, %v4242_v2, %v3746_v59 }
 0x2be   : > { %v4336_v49 = vsel %vm2214_vm13, %v4304_v15, %v4080_v22 }
 0x2bf   : > { %5186 = vmatprep.mubr.msk.bf16.mxu1 %vm2267_vm15, %v4336_v49 }
 0x2c0   : > { %v3702_v20 = vpop.permute.xlu1 %3701 }
 0x2c1   : > { %v3364_v9 = vpop.permute.xlu0 %3363 }
 0x2c2   : > { %v4180_v22 = vsel %vm2049_vm9, %v4148_v6, %v3364_v9 }
 0x2c4   : > { %v3318_v23 = vpop.permute.xlu1 %3317 }
 0x2c5   : > { %v4082_v54 = vpop.permute.xlu0 %4081 }
 0x2c8   : > { %v3590_v53 = vpop.permute.xlu1 %3589 }
 0x2c9   : > { %v3700_v30 = vpop.permute.xlu0 %3699 }
 0x2cc   : > { %v3970_v28 = vpop.permute.xlu1 %3969 }
 0x2cd   : > { %v4306_v62 = vsel %vm2181_vm14, %v4274_v41, %v3970_v28  ;;  %v3972_v61 = vpop.permute.xlu0 %3971 }
 0x2ce   : > { %v4338_v21 = vsel %vm2214_vm13, %v4306_v62, %v4082_v54 }
 0x2cf   : > { %5187 = vmatmul.mubr.msk.bf16.gmra.mrb[16].mxu1 %vm2267_vm15, %v4338_v21 }
 0x2d0   : > { %v3206_v58 = vpop.permute.xlu1 %3205 }
 0x2d1   : > { %v3588_v48 = vpop.permute.xlu0 %3587  ;;  %v4118_v19 = vsel %vm694_vm2, %v6697_v12, %v3206_v58 }
 0x2d2   : > { %v4212_v0 = vsel %vm2082_vm10, %v4180_v22, %v3588_v48  ;;  %v4150_v16 = vsel %vm2016_vm8, %v4118_v19, %v3318_v23 }
 0x2d3   : > { %v4244_v18 = vsel %vm2115_vm11, %v4212_v0, %v3700_v30  ;;  %v4182_v33 = vsel %vm2049_vm9, %v4150_v16, %v3366_v7 }
 0x2d4   : > { %v4276_v3 = vsel %vm2148_vm12, %v4244_v18, %v3748_v52  ;;  %v3208_v46 = vpop.permute.xlu1 %3207  ;;  %v4214_v44 = vsel %vm2082_vm10, %v4182_v33, %v3590_v53 }
 0x2d5   : > { %v4308_v14 = vsel %vm2181_vm14, %v4276_v3, %v3972_v61  ;;  %v4084_v39 = vpop.permute.xlu0 %4083  ;;  %v4246_v24 = vsel %vm2115_vm11, %v4214_v44, %v3702_v20  ;;  %v4120_v7 = vsel %vm694_vm2, %v6686_v5, %v3208_v46 }
 0x2d6   : > { %v4340_v29 = vsel %vm2214_vm13, %v4308_v14, %v4084_v39 }
 0x2d7   : > { %5190 = vmatprep.mubr.msk.bf16.mxu1 %vm2267_vm15, %v4340_v29 }
 0x2d9   : > { %v3750_v8 = vpop.permute.xlu1 %3749 }
 0x2da   : > { %v4278_v34 = vsel %vm2148_vm12, %v4246_v24, %v3750_v8 }
 0x2dd   : > { %v4086_v12 = vpop.permute.xlu0 %4085 }
 0x2e0   : > { %v3974_v42 = vpop.permute.xlu1 %3973 }
 0x2e1   : > { %v3320_v31 = vpop.permute.xlu0 %3319  ;;  %v4310_v50 = vsel %vm2181_vm14, %v4278_v34, %v3974_v42 }
 0x2e2   : > { %v4342_v26 = vsel %vm2214_vm13, %v4310_v50, %v4086_v12  ;;  %v4152_v4 = vsel %vm2016_vm8, %v4120_v7, %v3320_v31 }
 0x2e3   : > { %5191 = vmatmul.mubr.msk.bf16.gmra.mrb[20].mxu1 %vm2267_vm15, %v4342_v26 }
 0x2e4   : > { %v3210_v32 = vpop.permute.xlu1 %3209 }
 0x2e5   : > { %v3368_v57 = vpop.permute.xlu0 %3367  ;;  %v4122_v15 = vsel %vm694_vm2, %v6814_v38, %v3210_v32  ;;  %v7116_v32 = vld [vmem:[%s7292_s4 + $0x1] ss:$0 sm:$0xff] }
 0x2e6   : > { %v4184_v1 = vsel %vm2049_vm9, %v4152_v4, %v3368_v57 }
 0x2e8   : > { %v3322_v47 = vpop.permute.xlu1 %3321 }
 0x2e9   : > { %v3592_v27 = vpop.permute.xlu0 %3591  ;;  %v4154_v5 = vsel %vm2016_vm8, %v4122_v15, %v3322_v47  ;;  %v5280_v47 = vld [vmem:[%s5374_s23 + $0x8] sm:$0xf]  ;;  %v5283_v15 = vld [vmem:[%s5374_s23 + $0x4] sm:$0xf] }
 0x2ea   : > { %v4216_v17 = vsel %vm2082_vm10, %v4184_v1, %v3592_v27  ;;  %v4643_v27 = vunpack.c.l.bf16 %v5280_v47 }
 0x2ec   : > { %v3370_v40 = vpop.permute.xlu1 %3369 }
 0x2ed   : > { %v3704_v36 = vpop.permute.xlu0 %3703  ;;  %v4186_v9 = vsel %vm2049_vm9, %v4154_v5, %v3370_v40 }
 0x2ee   : > { %v4248_v59 = vsel %vm2115_vm11, %v4216_v17, %v3704_v36 }
 0x2f0   : > { %v3594_v35 = vpop.permute.xlu1 %3593 }
 0x2f1   : > { %v3752_v51 = vpop.permute.xlu0 %3751  ;;  %v4218_v55 = vsel %vm2082_vm10, %v4186_v9, %v3594_v35  ;;  %v5281_v35 = vld [vmem:[%s5374_s23] sm:$0xf] }
 0x2f2   : > { %v4280_v52 = vsel %vm2148_vm12, %v4248_v59, %v3752_v51  ;;  %v4641_v51 = vunpack.c.l.bf16 %v5281_v35 }
 0x2f4   : > { %v3706_v37 = vpop.permute.xlu1 %3705 }
 0x2f5   : > { %v3976_v43 = vpop.permute.xlu0 %3975  ;;  %v4250_v23 = vsel %vm2115_vm11, %v4218_v55, %v3706_v37  ;;  %v5282_v37 = vld [vmem:[%s5374_s23 + $0xc] sm:$0xf] }
 0x2f6   : > { %v4312_v49 = vsel %vm2181_vm14, %v4280_v52, %v3976_v43  ;;  %v4644_v43 = vunpack.c.l.bf16 %v5282_v37 }
 0x2f8   : > { %v3754_v45 = vpop.permute.xlu1 %3753 }
 0x2f9   : > { %v4088_v11 = vpop.permute.xlu0 %4087  ;;  %v4282_v54 = vsel %vm2148_vm12, %v4250_v23, %v3754_v45 }
 0x2fa   : > { %v4344_v20 = vsel %vm2214_vm13, %v4312_v49, %v4088_v11  ;;  %v4642_v49 = vunpack.c.l.bf16 %v5283_v15 }
 0x2fb   : > { %5194 = vmatprep.mubr.msk.bf16.mxu1 %vm2267_vm15, %v4344_v20 }
 0x2fd   : > { %v4090_v60 = vpop.permute.xlu0 %4089  ;;  %v3978_v38 = vpop.permute.xlu1 %3977 }
 0x2fe   : > { %v4314_v13 = vsel %vm2181_vm14, %v4282_v54, %v3978_v38 }
 0x2ff   : > { %v4346_v53 = vsel %vm2214_vm13, %v4314_v13, %v4090_v60 }
 0x300   : > { %5195 = vmatmul.mubr.msk.bf16.gmra.mrb[24].mxu1 %vm2267_vm15, %v4346_v53 }
 0x301   : > { %v3324_v30 = vpop.permute.xlu0 %3323  ;;  %v3212_v2 = vpop.permute.xlu1 %3211 }
 0x302   : > { %v4124_v21 = vsel %vm694_vm2, %v6844_v63, %v3212_v2 }
 0x303   : > { %v4156_v58 = vsel %vm2016_vm8, %v4124_v21, %v3324_v30  ;;  %v5284_v30 = vld [vmem:[%s5374_s23 + $0x18] sm:$0xf] }
 0x304   : > { %v4647_v2 = vunpack.c.l.bf16 %v5284_v30 }
 0x305   : > { %v3372_v41 = vpop.permute.xlu0 %3371  ;;  %v3214_v28 = vpop.permute.xlu1 %3213 }
 0x306   : > { %v4188_v48 = vsel %vm2049_vm9, %v4156_v58, %v3372_v41  ;;  %v4126_v29 = vsel %vm694_vm2, %v6928_v25, %v3214_v28  ;;  %v7111_v25 = vld [vmem:[%s7292_s4] ss:$0 sm:$0xff] }
 0x309   : > { %v3596_v10 = vpop.permute.xlu0 %3595  ;;  %v3326_v56 = vpop.permute.xlu1 %3325 }
 0x30a   : > { %v4220_v19 = vsel %vm2082_vm10, %v4188_v48, %v3596_v10  ;;  %v4158_v33 = vsel %vm2016_vm8, %v4126_v29, %v3326_v56  ;;  %v5285_v10 = vld [vmem:[%s5374_s23 + $0x10] sm:$0xf] }
 0x30b   : > { %v4645_v56 = vunpack.c.l.bf16 %v5285_v10 }
 0x30d   : > { %v3708_v62 = vpop.permute.xlu0 %3707  ;;  %v3374_v61 = vpop.permute.xlu1 %3373 }
 0x30e   : > { %v4252_v3 = vsel %vm2115_vm11, %v4220_v19, %v3708_v62  ;;  %v4190_v44 = vsel %vm2049_vm9, %v4158_v33, %v3374_v61  ;;  %v5287_v19 = vld [vmem:[%s5374_s23 + $0x14] sm:$0xf] }
 0x311   : > { %v3756_v6 = vpop.permute.xlu0 %3755 }
 0x312   : > { %v3598_v22 = vpop.permute.xlu1 %3597  ;;  %v4284_v14 = vsel %vm2148_vm12, %v4252_v3, %v3756_v6  ;;  %v5286_v6 = vld [vmem:[%s5374_s23 + $0x1c] sm:$0xf] }
 0x313   : > { %v4222_v12 = vsel %vm2082_vm10, %v4190_v44, %v3598_v22  ;;  %v4648_v58 = vunpack.c.l.bf16 %v5286_v6 }
 0x315   : > { %v3980_v0 = vpop.permute.xlu0 %3979 }
 0x316   : > { %v3710_v18 = vpop.permute.xlu1 %3709  ;;  %v4316_v39 = vsel %vm2181_vm14, %v4284_v14, %v3980_v0 }
 0x317   : > { %v4254_v24 = vsel %vm2115_vm11, %v4222_v12, %v3710_v18  ;;  %v4646_v18 = vunpack.c.l.bf16 %v5287_v19 }
 0x319   : > { %v4092_v16 = vpop.permute.xlu0 %4091 }
 0x31a   : > { %v4348_v46 = vsel %vm2214_vm13, %v4316_v39, %v4092_v16  ;;  %v3758_v63 = vpop.permute.xlu1 %3757 }
 0x31b   : > { %5198 = vmatprep.mubr.msk.bf16.mxu1 %vm2267_vm15, %v4348_v46  ;;  %v4286_v34 = vsel %vm2148_vm12, %v4254_v24, %v3758_v63 }
 0x31e   : > { %v3982_v8 = vpop.permute.xlu1 %3981 }
 0x31f   : > { %v4318_v42 = vsel %vm2181_vm14, %v4286_v34, %v3982_v8  ;;  %v5288_v34 = vld [vmem:[%s5374_s23 + $0x28] sm:$0xf] }
 0x322   : > { %v4094_v31 = vpop.permute.xlu1 %4093 }
 0x323   : > { %v4350_v50 = vsel %vm2214_vm13, %v4318_v42, %v4094_v31  ;;  %v4651_v42 = vunpack.c.l.bf16 %v5288_v34 }
 0x324   : > { %5199 = vmatmul.mubr.msk.bf16.gmra.mrb[28].mxu1 %vm2267_vm15, %v4350_v50 }
 0x326   : > { %v5172_v26 = vpop.f32.mrb[0].mxu1 }
 0x327   : > { %v4574_v57 = vmul.f32 %v5172_v26, %v7111_v25  ;;  %v4440_v40 = vpop.f32.mrb[1].mxu1  ;;  %v5289_v26 = vld [vmem:[%s5374_s23 + $0x20] sm:$0xf] }
 0x328   : > { %v4572_v36 = vmul.f32 %v7111_v25, %v4440_v40  ;;  %v5173_v7 = vpop.f32.mrb[2].mxu1 }
 0x329   : > { %v4611_v4 = vadd.f32 %v7116_v32, %v4574_v57  ;;  %v4575_v1 = vmul.f32 %v5173_v7, %v7111_v25  ;;  %v4443_v17 = vpop.f32.mrb[3].mxu1  ;;  %v4649_v57 = vunpack.c.l.bf16 %v5289_v26 }
 0x32a   : > { %v4609_v59 = vadd.f32 %v7116_v32, %v4572_v36  ;;  %v4573_v52 = vmul.f32 %v7111_v25, %v4443_v17  ;;  %v5290_v36 = vld [vmem:[%s5374_s23 + $0x2c] sm:$0xf] }
 0x32b   : > { %v4675_v45 = vadd.f32 %v4643_v27, %v4611_v4  ;;  %v4612_v11 = vadd.f32 %v7116_v32, %v4575_v1  ;;  %v4652_v35 = vunpack.c.l.bf16 %v5290_v36  ;;  %v5291_v1 = vld [vmem:[%s5374_s23 + $0x24] sm:$0xf] }
 0x32c   : > { %v4673_v5 = vadd.f32 %v4641_v51, %v4609_v59  ;;  %v4610_v20 = vadd.f32 %v7116_v32, %v4573_v52  ;;  %v4650_v37 = vunpack.c.l.bf16 %v5291_v1 }
 0x32d   : > { %v5058_v9 = vpack.c.bf16 %v4675_v45, %v4675_v45  ;;  %v4676_v55 = vadd.f32 %v4644_v43, %v4612_v11 }
 0x32e   : > { %v5056_v23 = vpack.c.bf16 %v4673_v5, %v4673_v5  ;;  %v4674_v60 = vadd.f32 %v4642_v49, %v4610_v20 }
 0x32f   : > { %4836 = vst.msk [vmem:[%s7134_s9 + $0x8] sm:$0xf] %vm4833_vm0, %v5058_v9  ;;  %v5059_v54 = vpack.c.bf16 %v4676_v55, %v4676_v55 }
 0x330   : > { %4834 = vst.msk [vmem:[%s7134_s9] sm:$0xf] %vm4833_vm0, %v5056_v23  ;;  %v5057_v38 = vpack.c.bf16 %v4674_v60, %v4674_v60  ;;  %v5292_v23 = vld [vmem:[%s5374_s23 + $0x38] sm:$0xf] }
 0x331   : > { %4837 = vst.msk [vmem:[%s7134_s9 + $0xc] sm:$0xf] %vm4833_vm0, %v5059_v54  ;;  %v4655_v60 = vunpack.c.l.bf16 %v5292_v23 }
 0x332   : > { %4835 = vst.msk [vmem:[%s7134_s9 + $0x4] sm:$0xf] %vm4833_vm0, %v5057_v38 }
 0x346   : > { %v5176_v13 = vpop.f32.mrb[4].mxu1 }
 0x347   : > { %v4578_v53 = vmul.f32 %v5176_v13, %v7111_v25  ;;  %v4456_v41 = vpop.f32.mrb[5].mxu1  ;;  %v5293_v13 = vld [vmem:[%s5374_s23 + $0x30] sm:$0xf] }
 0x348   : > { %v4576_v28 = vmul.f32 %v7111_v25, %v4456_v41  ;;  %v5177_v62 = vpop.f32.mrb[6].mxu1 }
 0x349   : > { %v4615_v61 = vadd.f32 %v7116_v32, %v4578_v53  ;;  %v4579_v21 = vmul.f32 %v5177_v62, %v7111_v25  ;;  %v4459_v22 = vpop.f32.mrb[7].mxu1  ;;  %v4653_v53 = vunpack.c.l.bf16 %v5293_v13 }
 0x34a   : > { %v4613_v48 = vadd.f32 %v7116_v32, %v4576_v28  ;;  %v4577_v0 = vmul.f32 %v7111_v25, %v4459_v22  ;;  %v5294_v28 = vld [vmem:[%s5374_s23 + $0x3c] sm:$0xf] }
 0x34b   : > { %v4679_v3 = vadd.f32 %v4647_v2, %v4615_v61  ;;  %v4616_v14 = vadd.f32 %v7116_v32, %v4579_v21  ;;  %v4656_v10 = vunpack.c.l.bf16 %v5294_v28  ;;  %v5295_v21 = vld [vmem:[%s5374_s23 + $0x34] sm:$0xf] }
 0x34c   : > { %v4677_v39 = vadd.f32 %v4645_v56, %v4613_v48  ;;  %v4614_v16 = vadd.f32 %v7116_v32, %v4577_v0  ;;  %v4654_v6 = vunpack.c.l.bf16 %v5295_v21 }
 0x34d   : > { %v5062_v46 = vpack.c.bf16 %v4679_v3, %v4679_v3  ;;  %v4680_v63 = vadd.f32 %v4648_v58, %v4616_v14 }
 0x34e   : > { %v5060_v29 = vpack.c.bf16 %v4677_v39, %v4677_v39  ;;  %v4678_v33 = vadd.f32 %v4646_v18, %v4614_v16 }
 0x34f   : > { %4840 = vst.msk [vmem:[%s7134_s9 + $0x18] sm:$0xf] %vm4833_vm0, %v5062_v46  ;;  %v5063_v44 = vpack.c.bf16 %v4680_v63, %v4680_v63 }
 0x350   : > { %4838 = vst.msk [vmem:[%s7134_s9 + $0x10] sm:$0xf] %vm4833_vm0, %v5060_v29  ;;  %v5061_v8 = vpack.c.bf16 %v4678_v33, %v4678_v33  ;;  %v5296_v29 = vld [vmem:[%s5374_s23 + $0x48] sm:$0xf] }
 0x351   : > { %4841 = vst.msk [vmem:[%s7134_s9 + $0x1c] sm:$0xf] %vm4833_vm0, %v5063_v44  ;;  %v4659_v33 = vunpack.c.l.bf16 %v5296_v29 }
 0x352   : > { %4839 = vst.msk [vmem:[%s7134_s9 + $0x14] sm:$0xf] %vm4833_vm0, %v5061_v8 }
 0x367   : > { %v5180_v12 = vpop.f32.mrb[8].mxu1 }
 0x368   : > { %v4582_v24 = vmul.f32 %v5180_v12, %v7111_v25  ;;  %v4472_v31 = vpop.f32.mrb[9].mxu1  ;;  %v5297_v12 = vld [vmem:[%s5374_s23 + $0x40] sm:$0xf] }
 0x369   : > { %v4580_v50 = vmul.f32 %v7111_v25, %v4472_v31  ;;  %v5181_v47 = vpop.f32.mrb[10].mxu1 }
 0x36a   : > { %v4619_v27 = vadd.f32 %v7116_v32, %v4582_v24  ;;  %v4583_v40 = vmul.f32 %v5181_v47, %v7111_v25  ;;  %v4475_v51 = vpop.f32.mrb[11].mxu1  ;;  %v4657_v24 = vunpack.c.l.bf16 %v5297_v12 }
 0x36b   : > { %v4617_v7 = vadd.f32 %v7116_v32, %v4580_v50  ;;  %v4581_v4 = vmul.f32 %v7111_v25, %v4475_v51  ;;  %v5298_v50 = vld [vmem:[%s5374_s23 + $0x4c] sm:$0xf] }
 0x36c   : > { %v4683_v43 = vadd.f32 %v4651_v42, %v4619_v27  ;;  %v4620_v17 = vadd.f32 %v7116_v32, %v4583_v40  ;;  %v4660_v26 = vunpack.c.l.bf16 %v5298_v50  ;;  %v5299_v40 = vld [vmem:[%s5374_s23 + $0x44] sm:$0xf] }
 0x36d   : > { %v4681_v59 = vadd.f32 %v4649_v57, %v4617_v7  ;;  %v4618_v52 = vadd.f32 %v7116_v32, %v4581_v4  ;;  %v4658_v36 = vunpack.c.l.bf16 %v5299_v40 }
 0x36e   : > { %v5066_v15 = vpack.c.bf16 %v4683_v43, %v4683_v43  ;;  %v4684_v49 = vadd.f32 %v4652_v35, %v4620_v17 }
 0x36f   : > { %v5064_v45 = vpack.c.bf16 %v4681_v59, %v4681_v59  ;;  %v4682_v11 = vadd.f32 %v4650_v37, %v4618_v52 }
 0x370   : > { %4844 = vst.msk [vmem:[%s7134_s9 + $0x28] sm:$0xf] %vm4833_vm0, %v5066_v15  ;;  %v5067_v5 = vpack.c.bf16 %v4684_v49, %v4684_v49 }
 0x371   : > { %4842 = vst.msk [vmem:[%s7134_s9 + $0x20] sm:$0xf] %vm4833_vm0, %v5064_v45  ;;  %v5065_v20 = vpack.c.bf16 %v4682_v11, %v4682_v11  ;;  %v5300_v45 = vld [vmem:[%s5374_s23 + $0x58] sm:$0xf] }
 0x372   : > { %4845 = vst.msk [vmem:[%s7134_s9 + $0x2c] sm:$0xf] %vm4833_vm0, %v5067_v5  ;;  %v4663_v11 = vunpack.c.l.bf16 %v5300_v45 }
 0x373   : > { %4843 = vst.msk [vmem:[%s7134_s9 + $0x24] sm:$0xf] %vm4833_vm0, %v5065_v20 }
 0x386   : > { %v5184_v9 = vpop.f32.mrb[12].mxu1 }
 0x387   : > { %v4586_v55 = vmul.f32 %v5184_v9, %v7111_v25  ;;  %v4488_v54 = vpop.f32.mrb[13].mxu1  ;;  %v5301_v9 = vld [vmem:[%s5374_s23 + $0x50] sm:$0xf] }
 0x388   : > { %v4584_v38 = vmul.f32 %v7111_v25, %v4488_v54  ;;  %v5185_v30 = vpop.f32.mrb[14].mxu1 }
 0x389   : > { %v4623_v2 = vadd.f32 %v7116_v32, %v4586_v55  ;;  %v4587_v41 = vmul.f32 %v5185_v30, %v7111_v25  ;;  %v4491_v56 = vpop.f32.mrb[15].mxu1  ;;  %v4661_v55 = vunpack.c.l.bf16 %v5301_v9 }
 0x38a   : > { %v4621_v62 = vadd.f32 %v7116_v32, %v4584_v38  ;;  %v4585_v61 = vmul.f32 %v7111_v25, %v4491_v56  ;;  %v5302_v38 = vld [vmem:[%s5374_s23 + $0x5c] sm:$0xf] }
 0x38b   : > { %v4687_v58 = vadd.f32 %v4655_v60, %v4623_v2  ;;  %v4624_v22 = vadd.f32 %v7116_v32, %v4587_v41  ;;  %v4664_v13 = vunpack.c.l.bf16 %v5302_v38  ;;  %v5303_v41 = vld [vmem:[%s5374_s23 + $0x54] sm:$0xf] }
 0x38c   : > { %v4685_v48 = vadd.f32 %v4653_v53, %v4621_v62  ;;  %v4622_v0 = vadd.f32 %v7116_v32, %v4585_v61  ;;  %v4662_v28 = vunpack.c.l.bf16 %v5303_v41 }
 0x38d   : > { %v5070_v19 = vpack.c.bf16 %v4687_v58, %v4687_v58  ;;  %v4688_v18 = vadd.f32 %v4656_v10, %v4624_v22 }
 0x38e   : > { %v5068_v3 = vpack.c.bf16 %v4685_v48, %v4685_v48  ;;  %v4686_v14 = vadd.f32 %v4654_v6, %v4622_v0 }
 0x38f   : > { %4848 = vst.msk [vmem:[%s7134_s9 + $0x38] sm:$0xf] %vm4833_vm0, %v5070_v19  ;;  %v5071_v39 = vpack.c.bf16 %v4688_v18, %v4688_v18 }
 0x390   : > { %4846 = vst.msk [vmem:[%s7134_s9 + $0x30] sm:$0xf] %vm4833_vm0, %v5068_v3  ;;  %v5069_v16 = vpack.c.bf16 %v4686_v14, %v4686_v14  ;;  %v5304_v3 = vld [vmem:[%s5374_s23 + $0x68] sm:$0xf] }
 0x391   : > { %4849 = vst.msk [vmem:[%s7134_s9 + $0x3c] sm:$0xf] %vm4833_vm0, %v5071_v39  ;;  %v4667_v14 = vunpack.c.l.bf16 %v5304_v3 }
 0x392   : > { %4847 = vst.msk [vmem:[%s7134_s9 + $0x34] sm:$0xf] %vm4833_vm0, %v5069_v16 }
 0x3a2   : > { %v5188_v46 = vpop.f32.mrb[16].mxu1 }
 0x3a3   : > { %v4590_v63 = vmul.f32 %v5188_v46, %v7111_v25  ;;  %v4504_v44 = vpop.f32.mrb[17].mxu1  ;;  %v5305_v46 = vld [vmem:[%s5374_s23 + $0x60] sm:$0xf] }
 0x3a4   : > { %v4588_v8 = vmul.f32 %v7111_v25, %v4504_v44  ;;  %v5189_v34 = vpop.f32.mrb[18].mxu1 }
 0x3a5   : > { %v4627_v42 = vadd.f32 %v7116_v32, %v4590_v63  ;;  %v4591_v31 = vmul.f32 %v5189_v34, %v7111_v25  ;;  %v4507_v57 = vpop.f32.mrb[19].mxu1  ;;  %v4665_v63 = vunpack.c.l.bf16 %v5305_v46 }
 0x3a6   : > { %v4625_v47 = vadd.f32 %v7116_v32, %v4588_v8  ;;  %v4589_v27 = vmul.f32 %v7111_v25, %v4507_v57  ;;  %v5306_v8 = vld [vmem:[%s5374_s23 + $0x6c] sm:$0xf] }
 0x3a7   : > { %v4691_v35 = vadd.f32 %v4659_v33, %v4627_v42  ;;  %v4628_v51 = vadd.f32 %v7116_v32, %v4591_v31  ;;  %v4668_v12 = vunpack.c.l.bf16 %v5306_v8  ;;  %v5307_v31 = vld [vmem:[%s5374_s23 + $0x64] sm:$0xf] }
 0x3a8   : > { %v4689_v7 = vadd.f32 %v4657_v24, %v4625_v47  ;;  %v4626_v4 = vadd.f32 %v7116_v32, %v4589_v27  ;;  %v4666_v50 = vunpack.c.l.bf16 %v5307_v31 }
 0x3a9   : > { %v5074_v1 = vpack.c.bf16 %v4691_v35, %v4691_v35  ;;  %v4692_v37 = vadd.f32 %v4660_v26, %v4628_v51 }
 0x3aa   : > { %v5072_v43 = vpack.c.bf16 %v4689_v7, %v4689_v7  ;;  %v4690_v17 = vadd.f32 %v4658_v36, %v4626_v4 }
 0x3ab   : > { %4852 = vst.msk [vmem:[%s7134_s9 + $0x48] sm:$0xf] %vm4833_vm0, %v5074_v1  ;;  %v5075_v59 = vpack.c.bf16 %v4692_v37, %v4692_v37 }
 0x3ac   : > { %4850 = vst.msk [vmem:[%s7134_s9 + $0x40] sm:$0xf] %vm4833_vm0, %v5072_v43  ;;  %v5073_v52 = vpack.c.bf16 %v4690_v17, %v4690_v17  ;;  %v5308_v43 = vld [vmem:[%s5374_s23 + $0x78] sm:$0xf] }
 0x3ad   : > { %4853 = vst.msk [vmem:[%s7134_s9 + $0x4c] sm:$0xf] %vm4833_vm0, %v5075_v59  ;;  %v4671_v17 = vunpack.c.l.bf16 %v5308_v43 }
 0x3ae   : > { %4851 = vst.msk [vmem:[%s7134_s9 + $0x44] sm:$0xf] %vm4833_vm0, %v5073_v52 }
 0x3b6   : > { %v5192_v15 = vpop.f32.mrb[20].mxu1 }
 0x3b7   : > { %v4594_v49 = vmul.f32 %v5192_v15, %v7111_v25  ;;  %v4520_v5 = vpop.f32.mrb[21].mxu1  ;;  %v5309_v15 = vld [vmem:[%s5374_s23 + $0x70] sm:$0xf] }
 0x3b8   : > { %v4592_v20 = vmul.f32 %v7111_v25, %v4520_v5  ;;  %v5193_v23 = vpop.f32.mrb[22].mxu1 }
 0x3b9   : > { %v4631_v60 = vadd.f32 %v7116_v32, %v4594_v49  ;;  %v4595_v54 = vmul.f32 %v5193_v23, %v7111_v25  ;;  %v4523_v53 = vpop.f32.mrb[23].mxu1  ;;  %v4669_v49 = vunpack.c.l.bf16 %v5309_v15 }
 0x3ba   : > { %v4629_v30 = vadd.f32 %v7116_v32, %v4592_v20  ;;  %v4593_v2 = vmul.f32 %v7111_v25, %v4523_v53  ;;  %v5310_v20 = vld [vmem:[%s5374_s23 + $0x7c] sm:$0xf] }
 0x3bb   : > { %v4695_v10 = vadd.f32 %v4663_v11, %v4631_v60  ;;  %v4632_v56 = vadd.f32 %v7116_v32, %v4595_v54  ;;  %v4672_v9 = vunpack.c.l.bf16 %v5310_v20  ;;  %v5311_v54 = vld [vmem:[%s5374_s23 + $0x74] sm:$0xf] }
 0x3bc   : > { %v4693_v62 = vadd.f32 %v4661_v55, %v4629_v30  ;;  %v4630_v61 = vadd.f32 %v7116_v32, %v4593_v2  ;;  %v4670_v38 = vunpack.c.l.bf16 %v5311_v54 }
 0x3bd   : > { %v5078_v21 = vpack.c.bf16 %v4695_v10, %v4695_v10  ;;  %v4696_v6 = vadd.f32 %v4664_v13, %v4632_v56 }
 0x3be   : > { %v5076_v58 = vpack.c.bf16 %v4693_v62, %v4693_v62  ;;  %v4694_v22 = vadd.f32 %v4662_v28, %v4630_v61 }
 0x3bf   : > { %4856 = vst.msk [vmem:[%s7134_s9 + $0x58] sm:$0xf] %vm4833_vm0, %v5078_v21  ;;  %v5079_v48 = vpack.c.bf16 %v4696_v6, %v4696_v6 }
 0x3c0   : > { %4854 = vst.msk [vmem:[%s7134_s9 + $0x50] sm:$0xf] %vm4833_vm0, %v5076_v58  ;;  %v5077_v0 = vpack.c.bf16 %v4694_v22, %v4694_v22 }
 0x3c1   : > { %4857 = vst.msk [vmem:[%s7134_s9 + $0x5c] sm:$0xf] %vm4833_vm0, %v5079_v48 }
 0x3c2   : > { %4855 = vst.msk [vmem:[%s7134_s9 + $0x54] sm:$0xf] %vm4833_vm0, %v5077_v0 }
 0x3d3   : > { %v5196_v19 = vpop.f32.mrb[24].mxu1 }
 0x3d4   : > { %v4598_v18 = vmul.f32 %v5196_v19, %v7111_v25  ;;  %v4536_v39 = vpop.f32.mrb[25].mxu1 }
 0x3d5   : > { %v4596_v16 = vmul.f32 %v7111_v25, %v4536_v39  ;;  %v5197_v29 = vpop.f32.mrb[26].mxu1 }
 0x3d6   : > { %v4635_v33 = vadd.f32 %v7116_v32, %v4598_v18  ;;  %v4599_v44 = vmul.f32 %v5197_v29, %v7111_v25  ;;  %v4539_v24 = vpop.f32.mrb[27].mxu1 }
 0x3d7   : > { %v4633_v34 = vadd.f32 %v7116_v32, %v4596_v16  ;;  %v4597_v42 = vmul.f32 %v7111_v25, %v4539_v24 }
 0x3d8   : > { %v4699_v26 = vadd.f32 %v4667_v14, %v4635_v33  ;;  %v4636_v57 = vadd.f32 %v7116_v32, %v4599_v44 }
 0x3d9   : > { %v4697_v47 = vadd.f32 %v4665_v63, %v4633_v34  ;;  %v4634_v27 = vadd.f32 %v7116_v32, %v4597_v42 }
 0x3da   : > { %v5082_v40 = vpack.c.bf16 %v4699_v26, %v4699_v26  ;;  %v4700_v36 = vadd.f32 %v4668_v12, %v4636_v57 }
 0x3db   : > { %v5080_v35 = vpack.c.bf16 %v4697_v47, %v4697_v47  ;;  %v4698_v51 = vadd.f32 %v4666_v50, %v4634_v27 }
 0x3dc   : > { %4860 = vst.msk [vmem:[%s7134_s9 + $0x68] sm:$0xf] %vm4833_vm0, %v5082_v40  ;;  %v5083_v7 = vpack.c.bf16 %v4700_v36, %v4700_v36 }
 0x3dd   : > { %4858 = vst.msk [vmem:[%s7134_s9 + $0x60] sm:$0xf] %vm4833_vm0, %v5080_v35  ;;  %v5081_v4 = vpack.c.bf16 %v4698_v51, %v4698_v51 }
 0x3de   : > { %4861 = vst.msk [vmem:[%s7134_s9 + $0x6c] sm:$0xf] %vm4833_vm0, %v5083_v7 }
 0x3df   : > { %4859 = vst.msk [vmem:[%s7134_s9 + $0x64] sm:$0xf] %vm4833_vm0, %v5081_v4 }
 0x3f7   : > { %v5200_v1 = vpop.f32.mrb[28].mxu1 }
 0x3f8   : > { %v4602_v37 = vmul.f32 %v5200_v1, %v7111_v25  ;;  %v4552_v59 = vpop.f32.mrb[29].mxu1 }
 0x3f9   : > { %v4600_v52 = vmul.f32 %v7111_v25, %v4552_v59  ;;  %v5201_v45 = vpop.f32.mrb[30].mxu1 }
 0x3fa   : > { %v4639_v11 = vadd.f32 %v7116_v32, %v4602_v37  ;;  %v4603_v5 = vmul.f32 %v5201_v45, %v7111_v25  ;;  %v4555_v55 = vpop.f32.mrb[31].mxu1 }
 0x3fb   : > { %v4637_v23 = vadd.f32 %v7116_v32, %v4600_v52  ;;  %v4601_v60 = vmul.f32 %v7111_v25, %v4555_v55 }
 0x3fc   : > { %v4703_v13 = vadd.f32 %v4671_v17, %v4639_v11  ;;  %v4640_v53 = vadd.f32 %v7116_v32, %v4603_v5 }
 0x3fd   : > { %v4701_v30 = vadd.f32 %v4669_v49, %v4637_v23  ;;  %v4638_v2 = vadd.f32 %v7116_v32, %v4601_v60 }
 0x3fe   : > { %v5086_v41 = vpack.c.bf16 %v4703_v13, %v4703_v13  ;;  %v4704_v28 = vadd.f32 %v4672_v9, %v4640_v53 }
 0x3ff   : > { %v5084_v10 = vpack.c.bf16 %v4701_v30, %v4701_v30  ;;  %v4702_v56 = vadd.f32 %v4670_v38, %v4638_v2 }
 0x400   : > { %4864 = vst.msk [vmem:[%s7134_s9 + $0x78] sm:$0xf] %vm4833_vm0, %v5086_v41  ;;  %v5087_v62 = vpack.c.bf16 %v4704_v28, %v4704_v28 }
 0x401   : > { %4862 = vst.msk [vmem:[%s7134_s9 + $0x70] sm:$0xf] %vm4833_vm0, %v5084_v10  ;;  %v5085_v61 = vpack.c.bf16 %v4702_v56, %v4702_v56 }
 0x402   : > { %4865 = vst.msk [vmem:[%s7134_s9 + $0x7c] sm:$0xf] %vm4833_vm0, %v5087_v62 }
 0x403   : > { %4863 = vst.msk [vmem:[%s7134_s9 + $0x74] sm:$0xf] %vm4833_vm0, %v5085_v61 }
 0x404 PF: > { %s15_s18 = sadd.s32 1, %s5318_s18  }
 0x405   : > { %p12_p4 = scmp.ge.s32.totalorder %s15_s18, 4  }
 0x407   :  { %14 = sbr.rel (!%p12_p4) target bundleno = 1 (0x1), region = 73 }

</bundles_post_ra>
